<compile_context>
chip_gen: v7x
topology: tpu7x:2x2x1
jax: 0.10.0
libtpu: 0.0.40
codegen_flags: <defaults>
</compile_context>

<pallas_src>
import functools

import jax
import jax.numpy as jnp
from jax.experimental import pallas as pl
from jax.experimental.pallas import tpu as pltpu


# ----------------------------------------------------------------------------
# Fused Pallas kernel: LayerNorms + Q/KV projections + attention + out-proj
# ----------------------------------------------------------------------------
def _fused_hopfield_kernel(s_ref, ref_ref, gs_ref, bs_ref,
                           wq_ref, bq_ref, wkv_ref, bkv_ref,
                           wo_ref, bo_ref, o_ref,
                           *, num_heads, head_dim):
    f32 = jnp.float32
    eps = 1e-5

    # ---- LayerNorm on the state (query/support) patterns -------------------
    s = s_ref[...].astype(f32)                                   # (L, d)
    mean = jnp.mean(s, axis=-1, keepdims=True)
    var = jnp.mean((s - mean) ** 2, axis=-1, keepdims=True)
    state_n = (s - mean) * jax.lax.rsqrt(var + eps)
    state_n = state_n * gs_ref[...] + bs_ref[...]

    # ---- Shared LayerNorm statistics for stored & projection patterns ------
    # (same reference-set tensor; the two affine transforms are folded into
    #  the K / V weights on the host, so only the normalized tensor is needed)
    r = ref_ref[...].astype(f32)                                 # (M, d_stored)
    rmean = jnp.mean(r, axis=-1, keepdims=True)
    rvar = jnp.mean((r - rmean) ** 2, axis=-1, keepdims=True)
    rnorm = (r - rmean) * jax.lax.rsqrt(rvar + eps)

    # ---- Projections --------------------------------------------------------
    # Q: beta is pre-folded into wq / bq.
    q = jnp.dot(state_n, wq_ref[...], preferred_element_type=f32) + bq_ref[...]
    # K | V in a single MXU pass over the long (d_stored) contraction.
    kv = jnp.dot(rnorm, wkv_ref[...], preferred_element_type=f32) + bkv_ref[...]

    hdk = num_heads * head_dim
    k = kv[:, :hdk]                                              # (M, hdk)
    v = kv[:, hdk:]                                              # (M, hdk)

    # ---- Per-head attention (static unroll, lane slices) --------------------
    head_outs = []
    for h in range(num_heads):
        lo = h * head_dim
        hi = lo + head_dim
        qh = q[:, lo:hi]                                         # (L, dk)
        kh = k[:, lo:hi]                                         # (M, dk)
        vh = v[:, lo:hi]                                         # (M, dk)
        sc = jax.lax.dot_general(qh, kh, (((1,), (1,)), ((), ())),
                                 preferred_element_type=f32)     # (L, M)
        sc = sc - jnp.max(sc, axis=-1, keepdims=True)
        p = jnp.exp(sc)
        p = p / jnp.sum(p, axis=-1, keepdims=True)
        head_outs.append(jnp.dot(p, vh, preferred_element_type=f32))
    o_heads = jnp.concatenate(head_outs, axis=-1)                # (L, hdk)

    # ---- Output projection + residual ---------------------------------------
    out = jnp.dot(o_heads, wo_ref[...], preferred_element_type=f32) + bo_ref[...]
    o_ref[...] = (s + out).astype(o_ref.dtype)


def fused_hopfield(fparams, s_flat, ref, *, num_heads, head_dim):
    """s_flat: (L, d), ref: (M, d_stored) -> (L, d) = s_flat + Hopfield(s_flat)."""
    L, d = s_flat.shape
    M, d_stored = ref.shape
    hdk = num_heads * head_dim

    kernel = functools.partial(_fused_hopfield_kernel,
                               num_heads=num_heads, head_dim=head_dim)
    return pl.pallas_call(
        kernel,
        out_shape=jax.ShapeDtypeStruct((L, d), jnp.float32),
        grid=(1,),
        in_specs=[
            pl.BlockSpec((L, d), lambda i: (0, 0)),              # state
            pl.BlockSpec((M, d_stored), lambda i: (0, 0)),       # reference set
            pl.BlockSpec((1, d), lambda i: (0, 0)),              # ln_state gamma
            pl.BlockSpec((1, d), lambda i: (0, 0)),              # ln_state beta
            pl.BlockSpec((d, hdk), lambda i: (0, 0)),            # Wq (beta folded)
            pl.BlockSpec((1, hdk), lambda i: (0, 0)),            # bq (beta folded)
            pl.BlockSpec((d_stored, 2 * hdk), lambda i: (0, 0)), # Wk|Wv (LN folded)
            pl.BlockSpec((1, 2 * hdk), lambda i: (0, 0)),        # bk|bv (LN folded)
            pl.BlockSpec((hdk, d), lambda i: (0, 0)),            # Wo
            pl.BlockSpec((1, d), lambda i: (0, 0)),              # bo
        ],
        out_specs=pl.BlockSpec((L, d), lambda i: (0, 0)),
        compiler_params=pltpu.CompilerParams(
            dimension_semantics=("arbitrary",)),
    )(s_flat, ref,
      fparams['ln_state_g'], fparams['ln_state_b'],
      fparams['Wq_t'], fparams['bq'],
      fparams['Wkv_t'], fparams['bkv'],
      fparams['Wo_t'], fparams['bo'])


# ----------------------------------------------------------------------------
# HopfieldBlock forward (glue in plain JAX, hot path in the fused kernel)
# ----------------------------------------------------------------------------
def hopfield_block_forward(fparams, query_embedding, supportActives_embedding,
                           supportInactives_embedding, supportSetActivesSize,
                           supportSetInactivesSize, referenceSet_embedding,
                           *, num_heads, head_dim):
    del supportSetActivesSize, supportSetInactivesSize  # unused (as in PyTorch)

    S = jnp.concatenate(
        [query_embedding, supportActives_embedding, supportInactives_embedding],
        axis=1)                                              # (B, T, d)
    B, T, d = S.shape
    L = B * T
    s_flat = S.reshape(L, d)
    ref = referenceSet_embedding[0]                          # (M, d_stored)

    s_out = fused_hopfield(fparams, s_flat, ref,
                           num_heads=num_heads, head_dim=head_dim)

    S_r = s_out.reshape(B, T, d)
    query_out = S_r[:, 0:1, :]                               # (B, 1, d)
    actives_out = S_r[:, 1:13, :]                            # (B, 12, d)  (hardcoded as in module)
    inactives_out = S_r[:, 13:, :]                           # (B, T-13, d)
    return query_out, actives_out, inactives_out


# ----------------------------------------------------------------------------
# Raw (PyTorch-layout) parameters and the exact folding into fused kernel params
# ----------------------------------------------------------------------------
def init_raw_params(key, d, d_stored, num_heads, head_dim):
    hdk = num_heads * head_dim
    ks = jax.random.split(key, 12)

    def lin_w(k, out_dim, in_dim):
        return (jax.random.normal(k, (out_dim, in_dim), jnp.float32)
                / jnp.sqrt(jnp.float32(in_dim)))

    return dict(
        # LayerNorm affine params (non-trivial values to exercise the folding)
        ln_state_g=1.0 + 0.1 * jax.random.normal(ks[4], (1, d), jnp.float32),
        ln_state_b=0.1 * jax.random.normal(ks[5], (1, d), jnp.float32),
        ln_stored_g=1.0 + 0.1 * jax.random.normal(ks[6], (1, d_stored), jnp.float32),
        ln_stored_b=0.1 * jax.random.normal(ks[7], (1, d_stored), jnp.float32),
        ln_proj_g=1.0 + 0.1 * jax.random.normal(ks[8], (1, d_stored), jnp.float32),
        ln_proj_b=0.1 * jax.random.normal(ks[9], (1, d_stored), jnp.float32),
        # projection weights, stored pre-transposed (Din, Dout)
        Wq_t=lin_w(ks[0], hdk, d).T,
        Wk_t=lin_w(ks[1], hdk, d_stored).T,
        Wv_t=lin_w(ks[2], hdk, d_stored).T,
        bq=0.01 * jax.random.normal(ks[10], (hdk,), jnp.float32),
        bk=0.01 * jax.random.normal(ks[11], (hdk,), jnp.float32),
        bv=jnp.zeros((hdk,), jnp.float32),
        Wo_t=lin_w(ks[3], d, hdk).T,
        bo=jnp.zeros((d,), jnp.float32),
    )


def fuse_params(raw, beta):
    """Exact algebraic fold:
       K = LN_stored(ref) @ Wk + bk = norm(ref) @ (g_st*Wk) + (b_st@Wk + bk)
       V = LN_proj(ref)   @ Wv + bv = norm(ref) @ (g_p *Wv) + (b_p @Wv + bv)
       Q = (LN_state(s) @ Wq + bq) * beta = LN_state(s) @ (beta*Wq) + beta*bq
    """
    g_st = raw['ln_stored_g'].reshape(-1, 1)     # (d_stored, 1)
    b_st = raw['ln_stored_b'].reshape(1, -1)     # (1, d_stored)
    g_p = raw['ln_proj_g'].reshape(-1, 1)
    b_p = raw['ln_proj_b'].reshape(1, -1)

    Wk_eff = g_st * raw['Wk_t']                                   # (d_stored, hdk)
    bk_eff = b_st @ raw['Wk_t'] + raw['bk'].reshape(1, -1)        # (1, hdk)
    Wv_eff = g_p * raw['Wv_t']
    bv_eff = b_p @ raw['Wv_t'] + raw['bv'].reshape(1, -1)

    return dict(
        ln_state_g=raw['ln_state_g'],
        ln_state_b=raw['ln_state_b'],
        Wq_t=raw['Wq_t'] * beta,
        bq=(raw['bq'] * beta).reshape(1, -1),
        Wkv_t=jnp.concatenate([Wk_eff, Wv_eff], axis=1),          # (d_stored, 2*hdk)
        bkv=jnp.concatenate([bk_eff, bv_eff], axis=1),            # (1, 2*hdk)
        Wo_t=raw['Wo_t'],
        bo=raw['bo'].reshape(1, -1),
    )


# ----------------------------------------------------------------------------
# Pure-JAX reference (un-fused, un-folded) for correctness checking
# ----------------------------------------------------------------------------
def reference_forward(raw, query_embedding, supportActives_embedding,
                      supportInactives_embedding, referenceSet_embedding,
                      *, num_heads, head_dim, beta):
    S = jnp.concatenate(
        [query_embedding, supportActives_embedding, supportInactives_embedding],
        axis=1)
    B, T, d = S.shape
    L = B * T
    state = S.reshape(L, d)
    ref = referenceSet_embedding[0]

    def ln(x, g, b):
        m = jnp.mean(x, axis=-1, keepdims=True)
        v = jnp.mean((x - m) ** 2, axis=-1, keepdims=True)
        return (x - m) / jnp.sqrt(v + 1e-5) * g + b

    sn = ln(state, raw['ln_state_g'], raw['ln_state_b'])
    stn = ln(ref, raw['ln_stored_g'], raw['ln_stored_b'])
    pn = ln(ref, raw['ln_proj_g'], raw['ln_proj_b'])

    q = (sn @ raw['Wq_t'] + raw['bq']) * beta
    k = stn @ raw['Wk_t'] + raw['bk']
    v = pn @ raw['Wv_t'] + raw['bv']

    H, dk = num_heads, head_dim
    qh = q.reshape(L, H, dk).transpose(1, 0, 2)
    kh = k.reshape(-1, H, dk).transpose(1, 0, 2)
    vh = v.reshape(-1, H, dk).transpose(1, 0, 2)
    sc = jnp.einsum('hld,hmd->hlm', qh, kh)
    p = jax.nn.softmax(sc, axis=-1)
    oh = jnp.einsum('hlm,hmd->hld', p, vh)
    o = oh.transpose(1, 0, 2).reshape(L, H * dk)
    out = o @ raw['Wo_t'] + raw['bo']
    S_r = (state + out).reshape(B, T, d)
    return S_r[:, 0:1, :], S_r[:, 1:13, :], S_r[:, 13:, :]


# ----------------------------------------------------------------------------
if __name__ == "__main__":
    # Small config (config.model.*)
    d_assoc = 32                 # associationSpace_dim
    d_stored = d_assoc + 4938    # stored_pattern_size / pattern_projection_size
    num_heads = 2                # hopfield.heads
    head_dim = 8                 # hopfield.dim_QK
    beta = 0.125                 # hopfield.beta (scaling)

    B = 2
    n_actives = 12               # forward slices S_r[:, 1:13, :] -> must be 12
    n_inactives = 4
    M_ref = 8                    # reference-set size

    key = jax.random.PRNGKey(0)
    k_params, k_q, k_a, k_i, k_r = jax.random.split(key, 5)

    raw_params = init_raw_params(k_params, d_assoc, d_stored, num_heads, head_dim)
    fused_params = jax.tree_util.tree_map(
        jnp.asarray, fuse_params(raw_params, beta))   # folded once, outside jit

    query_embedding = jax.random.normal(k_q, (B, 1, d_assoc), jnp.float32)
    supportActives_embedding = jax.random.normal(k_a, (B, n_actives, d_assoc), jnp.float32)
    supportInactives_embedding = jax.random.normal(k_i, (B, n_inactives, d_assoc), jnp.float32)
    referenceSet_embedding = jax.random.normal(k_r, (1, M_ref, d_stored), jnp.float32)

    fwd = jax.jit(functools.partial(
        hopfield_block_forward, num_heads=num_heads, head_dim=head_dim))

    q_out, act_out, inact_out = fwd(
        fused_params, query_embedding, supportActives_embedding,
        supportInactives_embedding, n_actives, n_inactives,
        referenceSet_embedding)
    jax.block_until_ready((q_out, act_out, inact_out))

    assert q_out.shape == (B, 1, d_assoc)
    assert act_out.shape == (B, 12, d_assoc)
    assert inact_out.shape == (B, 1 + n_actives + n_inactives - 13, d_assoc)

    # Correctness check against the un-fused, un-folded pure-JAX reference.
    q_ref, a_ref, i_ref = reference_forward(
        raw_params, query_embedding, supportActives_embedding,
        supportInactives_embedding, referenceSet_embedding,
        num_heads=num_heads, head_dim=head_dim, beta=beta)
    for got, want in ((q_out, q_ref), (act_out, a_ref), (inact_out, i_ref)):
        assert jnp.allclose(got, want, rtol=5e-3, atol=5e-3), (
            float(jnp.max(jnp.abs(got - want))))

    print("KERNEL_OK")
</pallas_src>

<mosaic_0001>
module attributes {stable_mosaic.version = 11 : i64} {
  func.func @_fused_hopfield_kernel(%arg0: i32, %arg1: memref<34x32xf32, #tpu.memory_space<vmem>>, %arg2: memref<8x4970xf32, #tpu.memory_space<vmem>>, %arg3: memref<1x32xf32, #tpu.memory_space<vmem>>, %arg4: memref<1x32xf32, #tpu.memory_space<vmem>>, %arg5: memref<32x16xf32, #tpu.memory_space<vmem>>, %arg6: memref<1x16xf32, #tpu.memory_space<vmem>>, %arg7: memref<4970x32xf32, #tpu.memory_space<vmem>>, %arg8: memref<1x32xf32, #tpu.memory_space<vmem>>, %arg9: memref<16x32xf32, #tpu.memory_space<vmem>>, %arg10: memref<1x32xf32, #tpu.memory_space<vmem>>, %arg11: memref<34x32xf32, #tpu.memory_space<vmem>>) attributes {dimension_semantics = [#tpu.dimension_semantics<arbitrary>], iteration_bounds = array<i64: 1>, scalar_prefetch = 0 : i64, scratch_operands = 0 : i64, tpu.core_type = #tpu.core_type<tc>, window_params = [{pipeline_mode = #tpu.pipeline_mode<synchronous>, transform_indices = @transform_0, window_bounds = array<i64: 34, 32>}, {pipeline_mode = #tpu.pipeline_mode<synchronous>, transform_indices = @transform_1, window_bounds = array<i64: 8, 4970>}, {pipeline_mode = #tpu.pipeline_mode<synchronous>, transform_indices = @transform_2, window_bounds = array<i64: 1, 32>}, {pipeline_mode = #tpu.pipeline_mode<synchronous>, transform_indices = @transform_3, window_bounds = array<i64: 1, 32>}, {pipeline_mode = #tpu.pipeline_mode<synchronous>, transform_indices = @transform_4, window_bounds = array<i64: 32, 16>}, {pipeline_mode = #tpu.pipeline_mode<synchronous>, transform_indices = @transform_5, window_bounds = array<i64: 1, 16>}, {pipeline_mode = #tpu.pipeline_mode<synchronous>, transform_indices = @transform_6, window_bounds = array<i64: 4970, 32>}, {pipeline_mode = #tpu.pipeline_mode<synchronous>, transform_indices = @transform_7, window_bounds = array<i64: 1, 32>}, {pipeline_mode = #tpu.pipeline_mode<synchronous>, transform_indices = @transform_8, window_bounds = array<i64: 16, 32>}, {pipeline_mode = #tpu.pipeline_mode<synchronous>, transform_indices = @transform_9, window_bounds = array<i64: 1, 32>}, {pipeline_mode = #tpu.pipeline_mode<synchronous>, transform_indices = @transform_10, window_bounds = array<i64: 34, 32>}]} {
    %c0 = arith.constant 0 : index
    %c0_0 = arith.constant 0 : index
    %0 = vector.load %arg1[%c0, %c0_0] : memref<34x32xf32, #tpu.memory_space<vmem>>, vector<34x32xf32>
    %cst = arith.constant dense<0.000000e+00> : vector<34xf32>
    %1 = vector.multi_reduction <add>, %0, %cst [1] : vector<34x32xf32> to vector<34xf32>
    %2 = vector.shape_cast %1 : vector<34xf32> to vector<34x1xf32>
    %cst_1 = arith.constant 3.200000e+01 : f32
    %3 = vector.broadcast %cst_1 : f32 to vector<34x1xf32>
    %4 = arith.divf %2, %3 : vector<34x1xf32>
    %5 = vector.broadcast %4 : vector<34x1xf32> to vector<34x32xf32>
    %6 = arith.subf %0, %5 : vector<34x32xf32>
    %7 = arith.mulf %6, %6 : vector<34x32xf32>
    %cst_2 = arith.constant dense<0.000000e+00> : vector<34xf32>
    %8 = vector.multi_reduction <add>, %7, %cst_2 [1] : vector<34x32xf32> to vector<34xf32>
    %9 = vector.shape_cast %8 : vector<34xf32> to vector<34x1xf32>
    %cst_3 = arith.constant 3.200000e+01 : f32
    %10 = vector.broadcast %cst_3 : f32 to vector<34x1xf32>
    %11 = arith.divf %9, %10 : vector<34x1xf32>
    %12 = vector.broadcast %4 : vector<34x1xf32> to vector<34x32xf32>
    %13 = arith.subf %0, %12 : vector<34x32xf32>
    %cst_4 = arith.constant 9.99999974E-6 : f32
    %14 = vector.broadcast %cst_4 : f32 to vector<34x1xf32>
    %15 = arith.addf %11, %14 : vector<34x1xf32>
    %16 = math.rsqrt %15 : vector<34x1xf32>
    %17 = vector.broadcast %16 : vector<34x1xf32> to vector<34x32xf32>
    %18 = arith.mulf %13, %17 : vector<34x32xf32>
    %c0_5 = arith.constant 0 : index
    %c0_6 = arith.constant 0 : index
    %19 = vector.load %arg3[%c0_5, %c0_6] : memref<1x32xf32, #tpu.memory_space<vmem>>, vector<1x32xf32>
    %20 = vector.broadcast %19 : vector<1x32xf32> to vector<34x32xf32>
    %21 = arith.mulf %18, %20 : vector<34x32xf32>
    %c0_7 = arith.constant 0 : index
    %c0_8 = arith.constant 0 : index
    %22 = vector.load %arg4[%c0_7, %c0_8] : memref<1x32xf32, #tpu.memory_space<vmem>>, vector<1x32xf32>
    %23 = vector.broadcast %22 : vector<1x32xf32> to vector<34x32xf32>
    %24 = arith.addf %21, %23 : vector<34x32xf32>
    %c0_9 = arith.constant 0 : index
    %c0_10 = arith.constant 0 : index
    %25 = vector.load %arg2[%c0_9, %c0_10] : memref<8x4970xf32, #tpu.memory_space<vmem>>, vector<8x4970xf32>
    %cst_11 = arith.constant dense<0.000000e+00> : vector<8xf32>
    %26 = vector.multi_reduction <add>, %25, %cst_11 [1] : vector<8x4970xf32> to vector<8xf32>
    %27 = vector.shape_cast %26 : vector<8xf32> to vector<8x1xf32>
    %cst_12 = arith.constant 4.970000e+03 : f32
    %28 = vector.broadcast %cst_12 : f32 to vector<8x1xf32>
    %29 = arith.divf %27, %28 : vector<8x1xf32>
    %30 = vector.broadcast %29 : vector<8x1xf32> to vector<8x4970xf32>
    %31 = arith.subf %25, %30 : vector<8x4970xf32>
    %32 = arith.mulf %31, %31 : vector<8x4970xf32>
    %cst_13 = arith.constant dense<0.000000e+00> : vector<8xf32>
    %33 = vector.multi_reduction <add>, %32, %cst_13 [1] : vector<8x4970xf32> to vector<8xf32>
    %34 = vector.shape_cast %33 : vector<8xf32> to vector<8x1xf32>
    %cst_14 = arith.constant 4.970000e+03 : f32
    %35 = vector.broadcast %cst_14 : f32 to vector<8x1xf32>
    %36 = arith.divf %34, %35 : vector<8x1xf32>
    %37 = vector.broadcast %29 : vector<8x1xf32> to vector<8x4970xf32>
    %38 = arith.subf %25, %37 : vector<8x4970xf32>
    %cst_15 = arith.constant 9.99999974E-6 : f32
    %39 = vector.broadcast %cst_15 : f32 to vector<8x1xf32>
    %40 = arith.addf %36, %39 : vector<8x1xf32>
    %41 = math.rsqrt %40 : vector<8x1xf32>
    %42 = vector.broadcast %41 : vector<8x1xf32> to vector<8x4970xf32>
    %43 = arith.mulf %38, %42 : vector<8x4970xf32>
    %c0_16 = arith.constant 0 : index
    %c0_17 = arith.constant 0 : index
    %44 = vector.load %arg5[%c0_16, %c0_17] : memref<32x16xf32, #tpu.memory_space<vmem>>, vector<32x16xf32>
    %cst_18 = arith.constant dense<0.000000e+00> : vector<34x16xf32>
    %45 = tpu.matmul %24, %44, %cst_18 {dimension_numbers = #tpu.dot_dimension_numbers<[1], [0], [0], [1], [0, 0, 1, 1], [], []>} : vector<34x32xf32>, vector<32x16xf32>, vector<34x16xf32> -> vector<34x16xf32>
    %c0_19 = arith.constant 0 : index
    %c0_20 = arith.constant 0 : index
    %46 = vector.load %arg6[%c0_19, %c0_20] : memref<1x16xf32, #tpu.memory_space<vmem>>, vector<1x16xf32>
    %47 = vector.broadcast %46 : vector<1x16xf32> to vector<34x16xf32>
    %48 = arith.addf %45, %47 : vector<34x16xf32>
    %c0_21 = arith.constant 0 : index
    %c0_22 = arith.constant 0 : index
    %49 = vector.load %arg7[%c0_21, %c0_22] : memref<4970x32xf32, #tpu.memory_space<vmem>>, vector<4970x32xf32>
    %cst_23 = arith.constant dense<0.000000e+00> : vector<8x32xf32>
    %50 = tpu.matmul %43, %49, %cst_23 {dimension_numbers = #tpu.dot_dimension_numbers<[1], [0], [0], [1], [0, 0, 1, 1], [], []>} : vector<8x4970xf32>, vector<4970x32xf32>, vector<8x32xf32> -> vector<8x32xf32>
    %c0_24 = arith.constant 0 : index
    %c0_25 = arith.constant 0 : index
    %51 = vector.load %arg8[%c0_24, %c0_25] : memref<1x32xf32, #tpu.memory_space<vmem>>, vector<1x32xf32>
    %52 = vector.broadcast %51 : vector<1x32xf32> to vector<8x32xf32>
    %53 = arith.addf %50, %52 : vector<8x32xf32>
    %54 = vector.extract_strided_slice %53 {offsets = [0, 0], sizes = [8, 16], strides = [1, 1]} : vector<8x32xf32> to vector<8x16xf32>
    %55 = vector.extract_strided_slice %53 {offsets = [0, 16], sizes = [8, 16], strides = [1, 1]} : vector<8x32xf32> to vector<8x16xf32>
    %56 = vector.extract_strided_slice %48 {offsets = [0, 0], sizes = [34, 8], strides = [1, 1]} : vector<34x16xf32> to vector<34x8xf32>
    %57 = vector.extract_strided_slice %54 {offsets = [0, 0], sizes = [8, 8], strides = [1, 1]} : vector<8x16xf32> to vector<8x8xf32>
    %58 = vector.extract_strided_slice %55 {offsets = [0, 0], sizes = [8, 8], strides = [1, 1]} : vector<8x16xf32> to vector<8x8xf32>
    %cst_26 = arith.constant dense<0.000000e+00> : vector<34x8xf32>
    %59 = tpu.matmul %56, %57, %cst_26 {dimension_numbers = #tpu.dot_dimension_numbers<[1], [1], [0], [0], [0, 0, 1, 0], [], []>} : vector<34x8xf32>, vector<8x8xf32>, vector<34x8xf32> -> vector<34x8xf32>
    %cst_27 = arith.constant dense<0xFF800000> : vector<34xf32>
    %60 = vector.multi_reduction <maximumf>, %59, %cst_27 [1] : vector<34x8xf32> to vector<34xf32>
    %61 = vector.shape_cast %60 : vector<34xf32> to vector<34x1xf32>
    %62 = vector.broadcast %61 : vector<34x1xf32> to vector<34x8xf32>
    %63 = arith.subf %59, %62 : vector<34x8xf32>
    %64 = math.exp %63 : vector<34x8xf32>
    %cst_28 = arith.constant dense<0.000000e+00> : vector<34xf32>
    %65 = vector.multi_reduction <add>, %64, %cst_28 [1] : vector<34x8xf32> to vector<34xf32>
    %66 = vector.shape_cast %65 : vector<34xf32> to vector<34x1xf32>
    %67 = vector.broadcast %66 : vector<34x1xf32> to vector<34x8xf32>
    %68 = arith.divf %64, %67 : vector<34x8xf32>
    %cst_29 = arith.constant dense<0.000000e+00> : vector<34x8xf32>
    %69 = tpu.matmul %68, %58, %cst_29 {dimension_numbers = #tpu.dot_dimension_numbers<[1], [0], [0], [1], [0, 0, 1, 1], [], []>} : vector<34x8xf32>, vector<8x8xf32>, vector<34x8xf32> -> vector<34x8xf32>
    %70 = vector.extract_strided_slice %48 {offsets = [0, 8], sizes = [34, 8], strides = [1, 1]} : vector<34x16xf32> to vector<34x8xf32>
    %71 = vector.extract_strided_slice %54 {offsets = [0, 8], sizes = [8, 8], strides = [1, 1]} : vector<8x16xf32> to vector<8x8xf32>
    %72 = vector.extract_strided_slice %55 {offsets = [0, 8], sizes = [8, 8], strides = [1, 1]} : vector<8x16xf32> to vector<8x8xf32>
    %cst_30 = arith.constant dense<0.000000e+00> : vector<34x8xf32>
    %73 = tpu.matmul %70, %71, %cst_30 {dimension_numbers = #tpu.dot_dimension_numbers<[1], [1], [0], [0], [0, 0, 1, 0], [], []>} : vector<34x8xf32>, vector<8x8xf32>, vector<34x8xf32> -> vector<34x8xf32>
    %cst_31 = arith.constant dense<0xFF800000> : vector<34xf32>
    %74 = vector.multi_reduction <maximumf>, %73, %cst_31 [1] : vector<34x8xf32> to vector<34xf32>
    %75 = vector.shape_cast %74 : vector<34xf32> to vector<34x1xf32>
    %76 = vector.broadcast %75 : vector<34x1xf32> to vector<34x8xf32>
    %77 = arith.subf %73, %76 : vector<34x8xf32>
    %78 = math.exp %77 : vector<34x8xf32>
    %cst_32 = arith.constant dense<0.000000e+00> : vector<34xf32>
    %79 = vector.multi_reduction <add>, %78, %cst_32 [1] : vector<34x8xf32> to vector<34xf32>
    %80 = vector.shape_cast %79 : vector<34xf32> to vector<34x1xf32>
    %81 = vector.broadcast %80 : vector<34x1xf32> to vector<34x8xf32>
    %82 = arith.divf %78, %81 : vector<34x8xf32>
    %cst_33 = arith.constant dense<0.000000e+00> : vector<34x8xf32>
    %83 = tpu.matmul %82, %72, %cst_33 {dimension_numbers = #tpu.dot_dimension_numbers<[1], [0], [0], [1], [0, 0, 1, 1], [], []>} : vector<34x8xf32>, vector<8x8xf32>, vector<34x8xf32> -> vector<34x8xf32>
    %84 = tpu.concatenate %69, %83 in 1 : vector<34x8xf32>, vector<34x8xf32> -> vector<34x16xf32>
    %c0_34 = arith.constant 0 : index
    %c0_35 = arith.constant 0 : index
    %85 = vector.load %arg9[%c0_34, %c0_35] : memref<16x32xf32, #tpu.memory_space<vmem>>, vector<16x32xf32>
    %cst_36 = arith.constant dense<0.000000e+00> : vector<34x32xf32>
    %86 = tpu.matmul %84, %85, %cst_36 {dimension_numbers = #tpu.dot_dimension_numbers<[1], [0], [0], [1], [0, 0, 1, 1], [], []>} : vector<34x16xf32>, vector<16x32xf32>, vector<34x32xf32> -> vector<34x32xf32>
    %c0_37 = arith.constant 0 : index
    %c0_38 = arith.constant 0 : index
    %87 = vector.load %arg10[%c0_37, %c0_38] : memref<1x32xf32, #tpu.memory_space<vmem>>, vector<1x32xf32>
    %88 = vector.broadcast %87 : vector<1x32xf32> to vector<34x32xf32>
    %89 = arith.addf %86, %88 : vector<34x32xf32>
    %90 = arith.addf %0, %89 : vector<34x32xf32>
    %c0_39 = arith.constant 0 : index
    %c0_40 = arith.constant 0 : index
    %91 = vector.load %arg11[%c0_39, %c0_40] : memref<34x32xf32, #tpu.memory_space<vmem>>, vector<34x32xf32>
    tpu.vector_store %arg11[%c0_39, %c0_40], %90 {strides = array<i32>} : memref<34x32xf32, #tpu.memory_space<vmem>>, vector<34x32xf32>,
    return
  }
  func.func @transform_0(%arg0: i32) -> (i32, i32) {
    %c0_i32 = arith.constant 0 : i32
    %c0_i32_0 = arith.constant 0 : i32
    %c0_i32_1 = arith.constant 0 : i32
    return %c0_i32, %c0_i32_0 : i32, i32
  }
  func.func @transform_1(%arg0: i32) -> (i32, i32) {
    %c0_i32 = arith.constant 0 : i32
    %c0_i32_0 = arith.constant 0 : i32
    %c0_i32_1 = arith.constant 0 : i32
    return %c0_i32, %c0_i32_0 : i32, i32
  }
  func.func @transform_2(%arg0: i32) -> (i32, i32) {
    %c0_i32 = arith.constant 0 : i32
    %c0_i32_0 = arith.constant 0 : i32
    %c0_i32_1 = arith.constant 0 : i32
    return %c0_i32, %c0_i32_0 : i32, i32
  }
  func.func @transform_3(%arg0: i32) -> (i32, i32) {
    %c0_i32 = arith.constant 0 : i32
    %c0_i32_0 = arith.constant 0 : i32
    %c0_i32_1 = arith.constant 0 : i32
    return %c0_i32, %c0_i32_0 : i32, i32
  }
  func.func @transform_4(%arg0: i32) -> (i32, i32) {
    %c0_i32 = arith.constant 0 : i32
    %c0_i32_0 = arith.constant 0 : i32
    %c0_i32_1 = arith.constant 0 : i32
    return %c0_i32, %c0_i32_0 : i32, i32
  }
  func.func @transform_5(%arg0: i32) -> (i32, i32) {
    %c0_i32 = arith.constant 0 : i32
    %c0_i32_0 = arith.constant 0 : i32
    %c0_i32_1 = arith.constant 0 : i32
    return %c0_i32, %c0_i32_0 : i32, i32
  }
  func.func @transform_6(%arg0: i32) -> (i32, i32) {
    %c0_i32 = arith.constant 0 : i32
    %c0_i32_0 = arith.constant 0 : i32
    %c0_i32_1 = arith.constant 0 : i32
    return %c0_i32, %c0_i32_0 : i32, i32
  }
  func.func @transform_7(%arg0: i32) -> (i32, i32) {
    %c0_i32 = arith.constant 0 : i32
    %c0_i32_0 = arith.constant 0 : i32
    %c0_i32_1 = arith.constant 0 : i32
    return %c0_i32, %c0_i32_0 : i32, i32
  }
  func.func @transform_8(%arg0: i32) -> (i32, i32) {
    %c0_i32 = arith.constant 0 : i32
    %c0_i32_0 = arith.constant 0 : i32
    %c0_i32_1 = arith.constant 0 : i32
    return %c0_i32, %c0_i32_0 : i32, i32
  }
  func.func @transform_9(%arg0: i32) -> (i32, i32) {
    %c0_i32 = arith.constant 0 : i32
    %c0_i32_0 = arith.constant 0 : i32
    %c0_i32_1 = arith.constant 0 : i32
    return %c0_i32, %c0_i32_0 : i32, i32
  }
  func.func @transform_10(%arg0: i32) -> (i32, i32) {
    %c0_i32 = arith.constant 0 : i32
    %c0_i32_0 = arith.constant 0 : i32
    %c0_i32_1 = arith.constant 0 : i32
    return %c0_i32, %c0_i32_0 : i32, i32
  }
}

</mosaic_0001>

<bundles_post_ra>
// kernel: hopfield_block_forward.1
= control target key start
LH: loop header
LB: loop body
LE: loop exit
PB: predicated region body
PF: predicated region fallthrough
CT: control target
= control target key end

     0   :  { %vm40_vm0 = vcmask 261120   ;;  %vm53_vm1 = vcmask 254976   ;;  %vm208_vm2 = vcmask 867328   ;;  %vm4839_vm3 = vmmov 0   ;;  %s4841_s30 = smov 120   ;;  %s4845_s11 = smov 8   ;;  %s7672_s0 = inlined_call_operand.vmem [shape: f32[34,32], index: 0, kind: input, shape index: {}]   ;;  %s7673_s1 = inlined_call_operand.vmem [shape: f32[8,4970], index: 1, kind: input, shape index: {}]   ;;  %s7674_s4 = inlined_call_operand.vmem [shape: f32[32,16], index: 4, kind: input, shape index: {}]   ;;  %s7675_s6 = inlined_call_operand.vmem [shape: f32[4970,32], index: 6, kind: input, shape index: {}]   ;;  %s7676_s2 = inlined_call_operand.vmem [shape: f32[1,32], index: 2, kind: input, shape index: {}]   ;;  %s7677_s3 = inlined_call_operand.vmem [shape: f32[1,32], index: 3, kind: input, shape index: {}]   ;;  %s7678_s5 = inlined_call_operand.vmem [shape: f32[1,16], index: 5, kind: input, shape index: {}]   ;;  %s7679_s7 = inlined_call_operand.vmem [shape: f32[1,32], index: 7, kind: input, shape index: {}]   ;;  %s7680_s8 = inlined_call_operand.vmem [shape: f32[16,32], index: 8, kind: input, shape index: {}]   ;;  %s7681_s9 = inlined_call_operand.vmem [shape: f32[1,32], index: 9, kind: input, shape index: {}]   ;;  %s7682_s10 = inlined_call_operand.vmem [shape: f32[34,32], index: 10, kind: output, shape index: {}]  }
   0x1   :  { %v4904_v0 = vld [vmem:[%s7672_s0 + $0x8] sm:$0xff]  ;;  %v4909_v1 = vld [vmem:[%s7673_s1] sm:$0xff]  ;;  %v4921_v4 = vld [vmem:[%s7673_s1 + $0x10] sm:$0xff]  ;;  %vm1124_vm4 = vcmask 1041408   ;;  %vm4842_vm5 = vmmov 1   ;;  %vm2528_vm7 = vcmask 64512  }
   0x2   :  { %v4914_v2 = vld [vmem:[%s7673_s1 + $0x8] sm:$0xff]  ;;  %v44_v3 = vsel %vm40_vm0, %v4904_v0, 0.0  ;;  %v4928_v6 = vld [vmem:[%s7673_s1 + $0x18] sm:$0xff]  ;;  %v4934_v8 = vld [vmem:[%s7673_s1 + $0x20] sm:$0xff]  ;;  %vm2649_vm8 = vcmask 58368   ;;  %vm3112_vm9 = vcmask 130048  }
   0x3   :  { %v171_v5 = vadd.f32 %v4914_v2, %v4909_v1  ;;  %45 = vadd.xlane.f32.xlu1 %v44_v3  ;;  %v4940_v10 = vld [vmem:[%s7673_s1 + $0x28] sm:$0xff]  ;;  %v4946_v12 = vld [vmem:[%s7673_s1 + $0x30] sm:$0xff]  ;;  %v4952_v14 = vld [vmem:[%s7673_s1 + $0x38] sm:$0xff] }
   0x4   :  { %v4958_v16 = vld [vmem:[%s7673_s1 + $0x40] sm:$0xff]  ;;  %v4964_v18 = vld [vmem:[%s7672_s0 + $0x10] sm:$0xff]  ;;  %v4969_v19 = vld [vmem:[%s7673_s1 + $0x48] sm:$0xff] }
   0x5   :  { %v172_v7 = vadd.f32 %v171_v5, %v4921_v4  ;;  %v47_v20 = vsel %vm40_vm0, %v4964_v18, 0.0  ;;  %v4976_v21 = vld [vmem:[%s7672_s0 + $0x20] sm:$0x3]  ;;  %v4982_v23 = vld [vmem:[%s7673_s1 + $0x50] sm:$0xff]  ;;  %v4990_v26 = vld [vmem:[%s7673_s1 + $0x58] sm:$0xff] }
   0x6   :  { %v54_v24 = vsel %vm53_vm1, %v4976_v21, 0.0  ;;  %v4996_v28 = vld [vmem:[%s7673_s1 + $0x60] sm:$0xff]  ;;  %v5002_v30 = vld [vmem:[%s7673_s1 + $0x68] sm:$0xff]  ;;  %v5008_v32 = vld [vmem:[%s7673_s1 + $0x70] sm:$0xff] }
   0x7   :  { %v173_v9 = vadd.f32 %v172_v7, %v4928_v6  ;;  %48 = vadd.xlane.f32.xlu1 %v47_v20  ;;  %v5014_v34 = vld [vmem:[%s7673_s1 + $0x78] sm:$0xff]  ;;  %v5020_v36 = vld [vmem:[%s7673_s1 + $0x80] sm:$0xff]  ;;  %v5026_v38 = vld [vmem:[%s7673_s1 + $0x88] sm:$0xff] }
   0x8   :  { %v5032_v40 = vld [vmem:[%s7673_s1 + $0x90] sm:$0xff]  ;;  %v5038_v42 = vld [vmem:[%s7673_s1 + $0x98] sm:$0xff]  ;;  %v5044_v44 = vld [vmem:[%s7673_s1 + $0xa0] sm:$0xff] }
   0x9   :  { %v174_v11 = vadd.f32 %v173_v9, %v4934_v8  ;;  %v5050_v46 = vld [vmem:[%s7673_s1 + $0xa8] sm:$0xff]  ;;  %v5056_v48 = vld [vmem:[%s7673_s1 + $0xb0] sm:$0xff]  ;;  %v5062_v50 = vld [vmem:[%s7673_s1 + $0xb8] sm:$0xff] }
   0xa   :  { %v5068_v52 = vld [vmem:[%s7673_s1 + $0xc0] sm:$0xff]  ;;  %v5074_v54 = vld [vmem:[%s7673_s1 + $0xc8] sm:$0xff]  ;;  %v5080_v56 = vld [vmem:[%s7673_s1 + $0xd0] sm:$0xff] }
   0xb   :  { %v175_v13 = vadd.f32 %v174_v11, %v4940_v10  ;;  %55 = vadd.xlane.f32.xlu1 %v54_v24  ;;  %v5086_v58 = vld [vmem:[%s7673_s1 + $0xd8] sm:$0xff]  ;;  %v5092_v60 = vld [vmem:[%s7673_s1 + $0xe0] sm:$0xff]  ;;  %v5098_v62 = vld [vmem:[%s7673_s1 + $0xe8] sm:$0xff] }
   0xc   :  { %v5104_v3 = vld [vmem:[%s7673_s1 + $0xf0] sm:$0xff]  ;;  %v5110_v7 = vld [vmem:[%s7673_s1 + $0xf8] sm:$0xff]  ;;  %v5116_v11 = vld [vmem:[%s7673_s1 + $0x100] sm:$0xff] }
   0xd   :  { %v176_v15 = vadd.f32 %v175_v13, %v4946_v12  ;;  %v5128_v20 = vld [vmem:[%s7673_s1 + $0x110] sm:$0xff]  ;;  %v5134_v24 = vld [vmem:[%s7673_s1 + $0x118] sm:$0xff]  ;;  %vm4766_vm6 = vmpackc.low %vm1124_vm4, %vm4842_vm5 }
   0xf   :  { %v177_v17 = vadd.f32 %v176_v15, %v4952_v14  ;;  %v5122_v15 = vld [vmem:[%s7673_s1 + $0x108] sm:$0xff] }
  0x11   :  { %v178_v22 = vadd.f32 %v177_v17, %v4958_v16 }
  0x13   :  { %v179_v25 = vadd.f32 %v178_v22, %v4969_v19 }
  0x15   :  { %v180_v27 = vadd.f32 %v179_v25, %v4982_v23 }
  0x17   :  { %v181_v29 = vadd.f32 %v180_v27, %v4990_v26  ;;  %v5140_v27 = vld [vmem:[%s7673_s1 + $0x120] sm:$0xff] }
  0x19   :  { %v182_v31 = vadd.f32 %v181_v29, %v4996_v28  ;;  %v5145_v29 = vld [vmem:[%s7673_s1 + $0x130] sm:$0xff] }
  0x1b   :  { %v183_v33 = vadd.f32 %v182_v31, %v5002_v30 }
  0x1d   :  { %v184_v35 = vadd.f32 %v183_v33, %v5008_v32  ;;  %v5151_v33 = vld [vmem:[%s7673_s1 + $0x128] sm:$0xff] }
  0x1f   :  { %v185_v37 = vadd.f32 %v184_v35, %v5014_v34 }
  0x21   :  { %v186_v39 = vadd.f32 %v185_v37, %v5020_v36  ;;  %v209_v37 = vsel %vm208_vm2, %v5145_v29, 0.0 }
  0x23   :  { %v187_v41 = vadd.f32 %v186_v39, %v5026_v38 }
  0x25   :  { %v188_v43 = vadd.f32 %v187_v41, %v5032_v40 }
  0x27   :  { %v189_v45 = vadd.f32 %v188_v43, %v5038_v42  ;;  %v35_v43 = vld [vmem:[%s7672_s0] sm:$0xff] }
  0x29   :  { %v190_v47 = vadd.f32 %v189_v45, %v5044_v44  ;;  %v41_v45 = vsel %vm40_vm0, %v35_v43, 0.0 }
  0x2b   :  { %v191_v49 = vadd.f32 %v190_v47, %v5050_v46  ;;  %v38_v47 = vld [vmem:[%s7672_s0 + $0x18] sm:$0xff] }
  0x2d   :  { %v192_v51 = vadd.f32 %v191_v49, %v5056_v48  ;;  %v50_v49 = vsel %vm40_vm0, %v38_v47, 0.0 }
  0x2f   :  { %v193_v53 = vadd.f32 %v192_v51, %v5062_v50 }
  0x31   :  { %v194_v55 = vadd.f32 %v193_v53, %v5068_v52 }
  0x33   :  { %v195_v57 = vadd.f32 %v194_v55, %v5074_v54 }
  0x35   :  { %v196_v59 = vadd.f32 %v195_v57, %v5080_v56 }
  0x37   :  { %v197_v61 = vadd.f32 %v196_v59, %v5086_v58 }
  0x39   :  { %v198_v63 = vadd.f32 %v197_v61, %v5092_v60 }
  0x3b   :  { %v199_v5 = vadd.f32 %v198_v63, %v5098_v62 }
  0x3d   :  { %v200_v9 = vadd.f32 %v199_v5, %v5104_v3 }
  0x3f   :  { %v201_v13 = vadd.f32 %v200_v9, %v5110_v7 }
  0x41   :  { %v202_v17 = vadd.f32 %v201_v13, %v5116_v11 }
  0x43   :  { %v203_v22 = vadd.f32 %v202_v17, %v5122_v15 }
  0x45   :  { %v204_v25 = vadd.f32 %v203_v22, %v5128_v20 }
  0x47   :  { %v205_v31 = vadd.f32 %v204_v25, %v5134_v24 }
  0x49   :  { %v206_v35 = vadd.f32 %v205_v31, %v5140_v27 }
  0x4b   :  { %v207_v39 = vadd.f32 %v206_v35, %v5151_v33 }
  0x4d   :  { %v210_v41 = vadd.f32 %v209_v37, %v207_v39 }
  0x4f   :  { %211 = vadd.xlane.f32.xlu0 %v210_v41 }
  0x53   :  { %42 = vadd.xlane.f32.xlu0 %v41_v45 }
  0x57   :  { %51 = vadd.xlane.f32.xlu0 %v50_v49 }
  0x90   :  { %v46_v51 = vpop.xlane.xlu1 %45 }
  0x91   :  { %v59_v53 = vmul.f32 0.03125, %v46_v51 }
  0x93   :  { %v5166_v55 = vsub.f32 %v4904_v0, %v59_v53 }
  0x94   :  { %v49_v63 = vpop.xlane.xlu1 %48 }
  0x95   :  { %v69_v57 = vmul.f32 %v5166_v55, %v5166_v55  ;;  %v60_v13 = vmul.f32 0.03125, %v49_v63 }
  0x97   :  { %v76_v59 = vsel %vm40_vm0, %v69_v57, 0.0  ;;  %v5174_v35 = vsub.f32 %v4964_v18, %v60_v13 }
  0x98   :  { %77 = vadd.xlane.f32.xlu1 %v76_v59  ;;  %v56_v9 = vpop.xlane.xlu1 %55 }
  0x99   :  { %v62_v17 = vmul.f32 0.03125, %v56_v9  ;;  %v70_v51 = vmul.f32 %v5174_v35, %v5174_v35 }
  0x9b   :  { %v5177_v37 = vsub.f32 %v4976_v21, %v62_v17  ;;  %v79_v53 = vsel %vm40_vm0, %v70_v51, 0.0 }
  0xdc   :  { %v212_v61 = vpop.xlane.xlu0 %211 }
  0xdd   :  { %v5171_v25 = vmul.f32 0.00020120724, %v212_v61 }
  0xdf   :  { %v5185_v45 = vsub.f32 %v4909_v1, %v5171_v25  ;;  %v5189_v49 = vsub.f32 %v4914_v2, %v5171_v25  ;;  %v5203_v2 = vsub.f32 %v4921_v4, %v5171_v25  ;;  %v5213_v63 = vsub.f32 %v4928_v6, %v5171_v25 }
  0xe0   :  { %v43_v5 = vpop.xlane.xlu0 %42  ;;  %v5217_v4 = vsub.f32 %v4934_v8, %v5171_v25  ;;  %v5223_v13 = vsub.f32 %v4940_v10, %v5171_v25  ;;  %v5229_v6 = vsub.f32 %v4946_v12, %v5171_v25  ;;  %v5241_v51 = vsub.f32 %v4958_v16, %v5171_v25 }
  0xe1   :  { %v58_v31 = vmul.f32 0.03125, %v43_v5  ;;  %v254_v57 = vmul.f32 %v5185_v45, %v5185_v45  ;;  %v255_v59 = vmul.f32 %v5189_v49, %v5189_v49  ;;  %v256_v5 = vmul.f32 %v5203_v2, %v5203_v2 }
  0xe2   :  { %v257_v17 = vmul.f32 %v5213_v63, %v5213_v63  ;;  %v258_v8 = vmul.f32 %v5217_v4, %v5217_v4  ;;  %v259_v10 = vmul.f32 %v5223_v13, %v5223_v13  ;;  %v260_v12 = vmul.f32 %v5229_v6, %v5229_v6 }
  0xe3   :  { %v5179_v39 = vsub.f32 %v35_v43, %v58_v31  ;;  %v72_v43 = vmul.f32 %v5177_v37, %v5177_v37  ;;  %v293_v9 = vadd.f32 %v255_v59, %v254_v57  ;;  %v262_v16 = vmul.f32 %v5241_v51, %v5241_v51 }
  0xe4   :  { %v52_v22 = vpop.xlane.xlu0 %51  ;;  %v5259_v57 = vsub.f32 %v4990_v26, %v5171_v25 }
  0xe5   :  { %v61_v0 = vmul.f32 0.03125, %v52_v22  ;;  %v68_v18 = vmul.f32 %v5179_v39, %v5179_v39  ;;  %v85_v61 = vsel %vm53_vm1, %v72_v43, 0.0  ;;  %v294_v22 = vadd.f32 %v293_v9, %v256_v5 }
  0xe6   :  { %v5247_v43 = vsub.f32 %v4969_v19, %v5171_v25  ;;  %v5271_v9 = vsub.f32 %v5002_v30, %v5171_v25  ;;  %v265_v26 = vmul.f32 %v5259_v57, %v5259_v57  ;;  %v378_v30 = vld [vmem:[%s7674_s4 + $0x10] sm:$0xff] }
  0xe7   :  { %v5181_v41 = vsub.f32 %v38_v47, %v61_v0  ;;  %v73_v47 = vsel %vm40_vm0, %v68_v18, 0.0  ;;  %v295_v31 = vadd.f32 %v294_v22, %v257_v17  ;;  %v5235_v0 = vsub.f32 %v4952_v14, %v5171_v25 }
  0xe8   :  { %74 = vadd.xlane.f32.xlu0 %v73_v47  ;;  %v263_v19 = vmul.f32 %v5247_v43, %v5247_v43  ;;  %v4838_v22 = vmov 0.0|0.0  }
  0xe9   :  { %v71_v21 = vmul.f32 %v5181_v41, %v5181_v41  ;;  %v296_v18 = vadd.f32 %v295_v31, %v258_v8  ;;  %v261_v14 = vmul.f32 %v5235_v0, %v5235_v0  ;;  %4132 = vmatprep.subr.bf16.mxu0 %v4838_v22  ;;  %v377_v8 = vld [vmem:[%s7674_s4 + $0x8] sm:$0xff]  ;;  %v4840_v31 = vmov 0.0  }
  0xea   :  { %3999 = vmatprep.mubr.msk.f32.mxu0 %vm4839_vm3, %v4840_v31 }
  0xeb   :  { %v82_v1 = vsel %vm40_vm0, %v71_v21, 0.0  ;;  %v297_v21 = vadd.f32 %v296_v18, %v259_v10  ;;  %v5289_v10 = vsub.f32 %v5008_v32, %v5171_v25 }
  0xec   :  { %83 = vadd.xlane.f32.xlu1 %v82_v1  ;;  %80 = vadd.xlane.f32.xlu0 %v79_v53  ;;  %v5253_v1 = vsub.f32 %v4982_v23, %v5171_v25 }
  0xed   :  { %v298_v47 = vadd.f32 %v297_v21, %v260_v12 }
  0xee   :  { %v264_v23 = vmul.f32 %v5253_v1, %v5253_v1 }
  0xef   :  { %v299_v53 = vadd.f32 %v298_v47, %v261_v14  ;;  %v379_v14 = vld [vmem:[%s7674_s4 + $0x18] sm:$0xff]  ;;  %v5298_v47 = vsub.f32 %v5014_v34, %v5171_v25  ;;  %v5311_v34 = vsub.f32 %v5026_v38, %v5171_v25 }
  0xf0   :  { %86 = vadd.xlane.f32.xlu1 %v85_v61  ;;  %v5265_v61 = vsub.f32 %v4996_v28, %v5171_v25  ;;  %v376_v28 = vld [vmem:[%s7674_s4] sm:$0xff]  ;;  %v4136_v32 = vpack.c.bf16 %v379_v14, %v378_v30 }
  0xf1   :  { %v300_v59 = vadd.f32 %v299_v53, %v262_v16  ;;  %v4133_v21 = vpack.c.bf16 %v377_v8, %v376_v28  ;;  %v267_v16 = vmul.f32 %v5271_v9, %v5271_v9  ;;  %v5323_v8 = vsub.f32 %v5038_v42, %v5171_v25 }
  0xf2   :  { %v266_v18 = vmul.f32 %v5265_v61, %v5265_v61  ;;  %v271_v38 = vmul.f32 %v5311_v34, %v5311_v34 }
  0xf3   :  { %v301_v5 = vadd.f32 %v300_v59, %v263_v19  ;;  %4134 = vmatpush3.bf16.msra.mxu0 %v4133_v21  ;;  %v5305_v19 = vsub.f32 %v5020_v36, %v5171_v25  ;;  %v268_v59 = vmul.f32 %v5289_v10, %v5289_v10  ;;  %v5335_v21 = vsub.f32 %v5050_v46, %v5171_v25 }
  0xf4   :  { %4135 = vmatprep.subr.bf16.mxu0 %v4838_v22  ;;  %v273_v42 = vmul.f32 %v5323_v8, %v5323_v8 }
  0xf5   :  { %v302_v17 = vadd.f32 %v301_v5, %v264_v23  ;;  %v269_v5 = vmul.f32 %v5298_v47, %v5298_v47  ;;  %v270_v36 = vmul.f32 %v5305_v19, %v5305_v19  ;;  %v275_v46 = vmul.f32 %v5335_v21, %v5335_v21 }
  0xf7   :  { %v303_v12 = vadd.f32 %v302_v17, %v265_v26  ;;  %4137 = vmatpush3.bf16.msra.mxu0 %v4136_v32  ;;  %v5317_v17 = vsub.f32 %v5032_v40, %v5171_v25  ;;  %v5347_v32 = vsub.f32 %v5062_v50, %v5171_v25 }
  0xf9   :  { %v304_v53 = vadd.f32 %v303_v12, %v266_v18  ;;  %v5329_v18 = vsub.f32 %v5044_v44, %v5171_v25  ;;  %v272_v40 = vmul.f32 %v5317_v17, %v5317_v17  ;;  %v277_v50 = vmul.f32 %v5347_v32, %v5347_v32 }
  0xfb   :  { %v305_v23 = vadd.f32 %v304_v53, %v267_v16  ;;  %v5341_v16 = vsub.f32 %v5056_v48, %v5171_v25  ;;  %v274_v44 = vmul.f32 %v5329_v18, %v5329_v18 }
  0xfd   :  { %v306_v26 = vadd.f32 %v305_v23, %v268_v59  ;;  %v5353_v23 = vsub.f32 %v5068_v52, %v5171_v25  ;;  %v276_v48 = vmul.f32 %v5341_v16, %v5341_v16 }
  0xff   :  { %v307_v28 = vadd.f32 %v306_v26, %v269_v5  ;;  %v5359_v26 = vsub.f32 %v5074_v54, %v5171_v25  ;;  %v278_v52 = vmul.f32 %v5353_v23, %v5353_v23 }
 0x101   :  { %v308_v30 = vadd.f32 %v307_v28, %v270_v36  ;;  %v5365_v28 = vsub.f32 %v5080_v56, %v5171_v25  ;;  %v279_v54 = vmul.f32 %v5359_v26, %v5359_v26  ;;  %v509_v56 = vld [vmem:[%s7675_s6 + $0x88] sm:$0xff] }
 0x103   :  { %v309_v12 = vadd.f32 %v308_v30, %v271_v38  ;;  %v5371_v30 = vsub.f32 %v5086_v58, %v5171_v25  ;;  %v5386_v58 = vsub.f32 %v5092_v60, %v5171_v25 }
 0x105   :  { %v310_v14 = vadd.f32 %v309_v12, %v272_v40  ;;  %v508_v12 = vld [vmem:[%s7675_s6 + $0x80] sm:$0xff] }
 0x107   :  { %v311_v53 = vadd.f32 %v310_v14, %v273_v42  ;;  %v540_v42 = vld [vmem:[%s7675_s6 + $0x180] sm:$0xff]  ;;  %v280_v14 = vmul.f32 %v5365_v28, %v5365_v28 }
 0x109   :  { %v312_v59 = vadd.f32 %v311_v53, %v274_v44  ;;  %v4138_v53 = vpack.c.bf16 %v509_v56, %v508_v12  ;;  %v494_v12 = vld [vmem:[%s7675_s6 + $0x10] sm:$0xff]  ;;  %v5419_v56 = vsub.f32 %v5104_v3, %v5171_v25  ;;  %v496_v3 = vld [vmem:[%s7675_s6 + $0x20] sm:$0xff] }
 0x10b   :  { %v313_v5 = vadd.f32 %v312_v59, %v275_v46  ;;  %v541_v46 = vld [vmem:[%s7675_s6 + $0x188] sm:$0xff]  ;;  %v492_v59 = vld [vmem:[%s7675_s6] sm:$0xff]  ;;  %4139 = vmatprep.subr.bf16.mxu1 %v4138_v53 }
 0x10c   :  { %v512_v53 = vld [vmem:[%s7675_s6 + $0xa0] sm:$0xff] }
 0x10d   :  { %v314_v36 = vadd.f32 %v313_v5, %v276_v48  ;;  %v493_v48 = vld [vmem:[%s7675_s6 + $0x8] sm:$0xff]  ;;  %v4170_v5 = vpack.c.bf16 %v541_v46, %v540_v42  ;;  %v282_v42 = vmul.f32 %v5386_v58, %v5386_v58 }
 0x10e   :  { %v4140_v60 = vpack.c.bf16 %v493_v48, %v492_v59  ;;  %v513_v46 = vld [vmem:[%s7675_s6 + $0xa8] sm:$0xff]  ;;  %v5434_v48 = vsub.f32 %v5110_v7, %v5171_v25  ;;  %v5449_v7 = vsub.f32 %v5116_v11, %v5171_v25 }
 0x10f   :  { %v315_v38 = vadd.f32 %v314_v36, %v277_v50  ;;  %v510_v50 = vld [vmem:[%s7675_s6 + $0x90] sm:$0xff]  ;;  %v5404_v36 = vsub.f32 %v5098_v62, %v5171_v25  ;;  %4171 = vmatprep.subr.bf16.mxu0 %v4170_v5  ;;  %v495_v62 = vld [vmem:[%s7675_s6 + $0x18] sm:$0xff]  ;;  %v4146_v59 = vpack.c.bf16 %v513_v46, %v512_v53 }
 0x110   :  { %4141 = vmatpush3.bf16.msra.mxu1 %v4140_v60  ;;  %v285_v11 = vmul.f32 %v5434_v48, %v5434_v48 }
 0x111   :  { %v316_v40 = vadd.f32 %v315_v38, %v278_v52  ;;  %v281_v52 = vmul.f32 %v5371_v30, %v5371_v30  ;;  %v283_v5 = vmul.f32 %v5404_v36, %v5404_v36 }
 0x113   :  { %v317_v44 = vadd.f32 %v316_v40, %v279_v54  ;;  %v511_v54 = vld [vmem:[%s7675_s6 + $0x98] sm:$0xff] }
 0x114   :  { %v4142_v40 = vpack.c.bf16 %v511_v54, %v510_v50  ;;  %v497_v50 = vld [vmem:[%s7675_s6 + $0x28] sm:$0xff]  ;;  %v515_v54 = vld [vmem:[%s7675_s6 + $0xb8] sm:$0xff] }
 0x115   :  { %v318_v38 = vadd.f32 %v317_v44, %v280_v14  ;;  %v4144_v44 = vpack.c.bf16 %v495_v62, %v494_v12 }
 0x116   :  { %4143 = vmatprep.subr.bf16.mxu1 %v4142_v40  ;;  %v284_v40 = vmul.f32 %v5419_v56, %v5419_v56 }
 0x117   :  { %v319_v14 = vadd.f32 %v318_v38, %v281_v52  ;;  %4145 = vmatpush3.bf16.msra.mxu1 %v4144_v44  ;;  %v4148_v52 = vpack.c.bf16 %v497_v50, %v496_v3  ;;  %v514_v38 = vld [vmem:[%s7675_s6 + $0xb0] sm:$0xff]  ;;  %v5461_v44 = vsub.f32 %v5122_v15, %v5171_v25  ;;  %v286_v3 = vmul.f32 %v5449_v7, %v5449_v7 }
 0x118   :  { %4147 = vmatprep.subr.bf16.mxu1 %v4146_v59  ;;  %v4150_v62 = vpack.c.bf16 %v515_v54, %v514_v38  ;;  %v5467_v59 = vsub.f32 %v5128_v20, %v5171_v25  ;;  %v5485_v54 = vsub.f32 %v5145_v29, %v5171_v25 }
 0x119   :  { %v320_v60 = vadd.f32 %v319_v14, %v282_v42  ;;  %v498_v42 = vld [vmem:[%s7675_s6 + $0x30] sm:$0xff]  ;;  %v499_v14 = vld [vmem:[%s7675_s6 + $0x38] sm:$0xff]  ;;  %v287_v15 = vmul.f32 %v5461_v44, %v5461_v44 }
 0x11a   :  { %v4152_v46 = vpack.c.bf16 %v499_v14, %v498_v42  ;;  %v288_v20 = vmul.f32 %v5467_v59, %v5467_v59  ;;  %v292_v42 = vmul.f32 %v5485_v54, %v5485_v54 }
 0x11b   :  { %v321_v12 = vadd.f32 %v320_v60, %v283_v5  ;;  %4149 = vmatpush3.bf16.msra.mxu1 %v4148_v52  ;;  %v5473_v60 = vsub.f32 %v5134_v24, %v5171_v25  ;;  %v5479_v52 = vsub.f32 %v5140_v27, %v5171_v25  ;;  %v5489_v24 = vsub.f32 %v5151_v33, %v5171_v25  ;;  %v516_v25 = vld [vmem:[%s7675_s6 + $0xc0] sm:$0xff] }
 0x11c   :  { %4151 = vmatprep.subr.bf16.mxu1 %v4150_v62 }
 0x11d   :  { %v322_v53 = vadd.f32 %v321_v12, %v284_v40  ;;  %v289_v40 = vmul.f32 %v5473_v60, %v5473_v60  ;;  %v290_v27 = vmul.f32 %v5479_v52, %v5479_v52  ;;  %v291_v14 = vmul.f32 %v5489_v24, %v5489_v24 }
 0x11f   :  { %v323_v5 = vadd.f32 %v322_v53, %v285_v11  ;;  %4153 = vmatpush3.bf16.msra.mxu1 %v4152_v46  ;;  %v330_v53 = vsel %vm208_vm2, %v292_v42, 0.0  ;;  %v517_v46 = vld [vmem:[%s7675_s6 + $0xc8] sm:$0xff]  ;;  %v520_v42 = vld [vmem:[%s7675_s6 + $0xe0] sm:$0xff] }
 0x121   :  { %v324_v50 = vadd.f32 %v323_v5, %v286_v3  ;;  %v4154_v3 = vpack.c.bf16 %v517_v46, %v516_v25  ;;  %v500_v5 = vld [vmem:[%s7675_s6 + $0x40] sm:$0xff]  ;;  %v522_v25 = vld [vmem:[%s7675_s6 + $0xf0] sm:$0xff]  ;;  %v523_v46 = vld [vmem:[%s7675_s6 + $0xf8] sm:$0xff] }
 0x123   :  { %v325_v38 = vadd.f32 %v324_v50, %v287_v15  ;;  %v501_v15 = vld [vmem:[%s7675_s6 + $0x48] sm:$0xff]  ;;  %4155 = vmatprep.subr.bf16.mxu1 %v4154_v3  ;;  %v4166_v3 = vpack.c.bf16 %v523_v46, %v522_v25 }
 0x124   :  { %v4156_v50 = vpack.c.bf16 %v501_v15, %v500_v5  ;;  %v506_v5 = vld [vmem:[%s7675_s6 + $0x70] sm:$0xff]  ;;  %v507_v15 = vld [vmem:[%s7675_s6 + $0x78] sm:$0xff] }
 0x125   :  { %v326_v12 = vadd.f32 %v325_v38, %v288_v20  ;;  %v518_v20 = vld [vmem:[%s7675_s6 + $0xd0] sm:$0xff]  ;;  %v519_v38 = vld [vmem:[%s7675_s6 + $0xd8] sm:$0xff] }
 0x126   :  { %4157 = vmatpush3.bf16.msra.mxu1 %v4156_v50  ;;  %v4168_v50 = vpack.c.bf16 %v507_v15, %v506_v5 }
 0x127   :  { %v327_v62 = vadd.f32 %v326_v12, %v289_v40  ;;  %v4158_v40 = vpack.c.bf16 %v519_v38, %v518_v20  ;;  %v502_v12 = vld [vmem:[%s7675_s6 + $0x50] sm:$0xff]  ;;  %v572_v20 = vld [vmem:[%s7675_s6 + $0x280] sm:$0xff]  ;;  %v573_v38 = vld [vmem:[%s7675_s6 + $0x288] sm:$0xff] }
 0x129   :  { %v328_v29 = vadd.f32 %v327_v62, %v290_v27  ;;  %v503_v27 = vld [vmem:[%s7675_s6 + $0x58] sm:$0xff]  ;;  %4159 = vmatprep.subr.bf16.mxu1 %v4158_v40  ;;  %v4202_v40 = vpack.c.bf16 %v573_v38, %v572_v20 }
 0x12a   :  { %v4160_v62 = vpack.c.bf16 %v503_v27, %v502_v12  ;;  %v78_v12 = vpop.xlane.xlu1 %77 }
 0x12b   :  { %v329_v11 = vadd.f32 %v328_v29, %v291_v14  ;;  %v521_v14 = vld [vmem:[%s7675_s6 + $0xe8] sm:$0xff]  ;;  %v89_v27 = vmul.f32 0.03125, %v78_v12 }
 0x12c   :  { %4161 = vmatpush3.bf16.msra.mxu1 %v4160_v62  ;;  %v4162_v29 = vpack.c.bf16 %v521_v14, %v520_v42 }
 0x12d   :  { %v331_v33 = vadd.f32 %v330_v53, %v329_v11  ;;  %v504_v11 = vld [vmem:[%s7675_s6 + $0x60] sm:$0xff]  ;;  %v505_v53 = vld [vmem:[%s7675_s6 + $0x68] sm:$0xff]  ;;  %v94_v62 = vadd.f32 1e-05, %v89_v27 }
 0x12e   :  { %4163 = vmatprep.subr.bf16.mxu1 %v4162_v29  ;;  %v524_v27 = vld [vmem:[%s7675_s6 + $0x100] sm:$0xff] }
 0x12f   :  { %332 = vadd.xlane.f32.xlu0 %v331_v33  ;;  %v4164_v33 = vpack.c.bf16 %v505_v53, %v504_v11  ;;  %4781 = vrsqrt.f32 %v94_v62  ;;  %v525_v62 = vld [vmem:[%s7675_s6 + $0x108] sm:$0xff] }
 0x131   :  { %4165 = vmatpush3.bf16.msra.mxu1 %v4164_v33 }
 0x132   :  { %4167 = vmatprep.subr.bf16.mxu1 %v4166_v3 }
 0x135   :  { %4169 = vmatpush3.bf16.msra.mxu1 %v4168_v50 }
 0x136   :  { %4203 = vmatprep.subr.bf16.mxu1 %v4202_v40 }
 0x139   :  { %v4782_v20 = vpop.eup %4781 }
 0x13a   :  { %v104_v12 = vmul.f32 %v4782_v20, %v5166_v55  ;;  %v543_v55 = vld [vmem:[%s7675_s6 + $0x198] sm:$0xff]  ;;  %v544_v20 = vld [vmem:[%s7675_s6 + $0x1a0] sm:$0xff] }
 0x175   :  { %v75_v42 = vpop.xlane.xlu0 %74 }
 0x176   :  { %v88_v14 = vmul.f32 0.03125, %v75_v42  ;;  %v3232_v42 = vld [vmem:[%s7676_s2] ss:$0 sm:$0xff] }
 0x178   :  { %v93_v11 = vadd.f32 1e-05, %v88_v14  ;;  %v542_v14 = vld [vmem:[%s7675_s6 + $0x190] sm:$0xff] }
 0x179   :  { %v84_v29 = vpop.xlane.xlu1 %83  ;;  %v81_v33 = vpop.xlane.xlu0 %80 }
 0x17a   :  { %v91_v53 = vmul.f32 0.03125, %v84_v29  ;;  %4783 = vrsqrt.f32 %v93_v11  ;;  %v90_v25 = vmul.f32 0.03125, %v81_v33  ;;  %v3233_v11 = vld [vmem:[%s7677_s3] ss:$0 sm:$0xff] }
 0x17c   :  { %v96_v3 = vadd.f32 1e-05, %v91_v53  ;;  %v95_v5 = vadd.f32 1e-05, %v90_v25  ;;  %v4172_v53 = vpack.c.bf16 %v525_v62, %v524_v27  ;;  %v116_v25 = vmul.f32 %v3232_v42, %v104_v12 }
 0x17d   :  { %v87_v46 = vpop.xlane.xlu1 %86 }
 0x17e   :  { %v92_v15 = vmul.f32 0.03125, %v87_v46  ;;  %4785 = vrsqrt.f32 %v95_v5  ;;  %v526_v5 = vld [vmem:[%s7675_s6 + $0x110] sm:$0xff] }
 0x17f   :  { %4787 = vrsqrt.f32 %v96_v3  ;;  %v4174_v3 = vpack.c.bf16 %v543_v55, %v542_v14  ;;  %v528_v14 = vld [vmem:[%s7675_s6 + $0x120] sm:$0xff]  ;;  %v529_v55 = vld [vmem:[%s7675_s6 + $0x128] sm:$0xff] }
 0x180   :  { %v97_v50 = vadd.f32 1e-05, %v92_v15  ;;  %v527_v15 = vld [vmem:[%s7675_s6 + $0x118] sm:$0xff] }
 0x182   :  { %4789 = vrsqrt.f32 %v97_v50 }
 0x184   :  { %v4784_v38 = vpop.eup %4783 }
 0x185   :  { %v103_v40 = vmul.f32 %v4784_v38, %v5179_v39  ;;  %v545_v38 = vld [vmem:[%s7675_s6 + $0x1a8] sm:$0xff] }
 0x186   :  { %v4178_v62 = vpack.c.bf16 %v545_v38, %v544_v20  ;;  %v549_v20 = vld [vmem:[%s7675_s6 + $0x1c8] sm:$0xff] }
 0x187   :  { %v115_v39 = vmul.f32 %v3232_v42, %v103_v40  ;;  %v128_v40 = vadd.f32 %v3233_v11, %v116_v25 }
 0x188   :  { %v4786_v29 = vpop.eup %4785 }
 0x189   :  { %v127_v33 = vadd.f32 %v3233_v11, %v115_v39  ;;  %v105_v46 = vmul.f32 %v4786_v29, %v5174_v35  ;;  %v4788_v50 = vpop.eup %4787  ;;  %v4176_v35 = vpack.c.bf16 %v527_v15, %v526_v5  ;;  %v546_v29 = vld [vmem:[%s7675_s6 + $0x1b0] sm:$0xff]  ;;  %v531_v15 = vld [vmem:[%s7675_s6 + $0x138] sm:$0xff] }
 0x18a   :  { %v106_v27 = vmul.f32 %v4788_v50, %v5181_v41  ;;  %v4180_v41 = vpack.c.bf16 %v529_v55, %v528_v14  ;;  %v530_v5 = vld [vmem:[%s7675_s6 + $0x130] sm:$0xff]  ;;  %v548_v50 = vld [vmem:[%s7675_s6 + $0x1c0] sm:$0xff]  ;;  %v551_v14 = vld [vmem:[%s7675_s6 + $0x1d8] sm:$0xff] }
 0x18b   :  { %4000 = vmatmul.mubr.msk.f32.vlgmr.msra.gmra.mrb[0].mxu0 %vm40_vm0, %v127_v33  ;;  %v117_v12 = vmul.f32 %v3232_v42, %v105_v46 }
 0x18c   :  { %4002 = vmatprep.mubr.msk.f32.mxu0 %vm4839_vm3, %v4840_v31  ;;  %4173 = vmatpush3.bf16.msra.mxu0 %v4172_v53  ;;  %v4790_v39 = vpop.eup %4789  ;;  %v547_v53 = vld [vmem:[%s7675_s6 + $0x1b8] sm:$0xff]  ;;  %v118_v25 = vmul.f32 %v3232_v42, %v106_v27  ;;  %v533_v27 = vld [vmem:[%s7675_s6 + $0x148] sm:$0xff] }
 0x18d   :  { %4175 = vmatprep.subr.bf16.mxu0 %v4174_v3  ;;  %v129_v33 = vadd.f32 %v3233_v11, %v117_v12  ;;  %v107_v46 = vmul.f32 %v4790_v39, %v5177_v37  ;;  %v4182_v3 = vpack.c.bf16 %v547_v53, %v546_v29  ;;  %v4184_v37 = vpack.c.bf16 %v531_v15, %v530_v5  ;;  %v532_v12 = vld [vmem:[%s7675_s6 + $0x140] sm:$0xff]  ;;  %v534_v29 = vld [vmem:[%s7675_s6 + $0x150] sm:$0xff]  ;;  %v535_v53 = vld [vmem:[%s7675_s6 + $0x158] sm:$0xff] }
 0x18e   :  { %v130_v38 = vadd.f32 %v3233_v11, %v118_v25  ;;  %v554_v5 = vld [vmem:[%s7675_s6 + $0x1f0] sm:$0xff]  ;;  %v555_v15 = vld [vmem:[%s7675_s6 + $0x1f8] sm:$0xff] }
 0x18f   :  { %4003 = vmatmul.mubr.msk.f32.gmra.mrb[2].mxu0 %vm40_vm0, %v128_v40  ;;  %v4186_v40 = vpack.c.bf16 %v549_v20, %v548_v50  ;;  %v4198_v20 = vpack.c.bf16 %v555_v15, %v554_v5 }
 0x190   :  { %4005 = vmatprep.mubr.msk.f32.mxu0 %vm4839_vm3, %v4840_v31  ;;  %4177 = vmatpush3.bf16.msra.mxu0 %v4176_v35  ;;  %v119_v35 = vmul.f32 %v3232_v42, %v107_v46  ;;  %v4188_v42 = vpack.c.bf16 %v533_v27, %v532_v12  ;;  %v536_v46 = vld [vmem:[%s7675_s6 + $0x160] sm:$0xff] }
 0x191   :  { %4179 = vmatprep.subr.bf16.mxu0 %v4178_v62  ;;  %v550_v62 = vld [vmem:[%s7675_s6 + $0x1d0] sm:$0xff] }
 0x192   :  { %v131_v55 = vadd.f32 %v3233_v11, %v119_v35  ;;  %v4190_v39 = vpack.c.bf16 %v551_v14, %v550_v62  ;;  %v4192_v11 = vpack.c.bf16 %v535_v53, %v534_v29  ;;  %v604_v35 = vld [vmem:[%s7675_s6 + $0x380] sm:$0xff]  ;;  %v589_v53 = vld [vmem:[%s7675_s6 + $0x308] sm:$0xff] }
 0x193   :  { %4006 = vmatmul.mubr.msk.f32.gmra.mrb[4].mxu0 %vm40_vm0, %v129_v33  ;;  %v553_v33 = vld [vmem:[%s7675_s6 + $0x1e8] sm:$0xff]  ;;  %v588_v29 = vld [vmem:[%s7675_s6 + $0x300] sm:$0xff] }
 0x194   :  { %4008 = vmatprep.mubr.msk.f32.mxu0 %vm4839_vm3, %v4840_v31  ;;  %4181 = vmatpush3.bf16.msra.mxu0 %v4180_v41  ;;  %v552_v41 = vld [vmem:[%s7675_s6 + $0x1e0] sm:$0xff] }
 0x195   :  { %4183 = vmatprep.subr.bf16.mxu0 %v4182_v3  ;;  %v4194_v25 = vpack.c.bf16 %v553_v33, %v552_v41  ;;  %v537_v3 = vld [vmem:[%s7675_s6 + $0x168] sm:$0xff]  ;;  %v574_v41 = vld [vmem:[%s7675_s6 + $0x290] sm:$0xff] }
 0x196   :  { %v4196_v50 = vpack.c.bf16 %v537_v3, %v536_v46  ;;  %v606_v46 = vld [vmem:[%s7675_s6 + $0x390] sm:$0xff]  ;;  %v607_v3 = vld [vmem:[%s7675_s6 + $0x398] sm:$0xff] }
 0x197   :  { %4009 = vmatmul.mubr.msk.f32.gmra.mrb[6].mxu0 %vm40_vm0, %v130_v38  ;;  %v539_v38 = vld [vmem:[%s7675_s6 + $0x178] sm:$0xff] }
 0x198   :  { %4011 = vmatprep.mubr.msk.f32.mxu0 %vm4839_vm3, %v4840_v31  ;;  %4185 = vmatpush3.bf16.msra.mxu0 %v4184_v37  ;;  %v538_v37 = vld [vmem:[%s7675_s6 + $0x170] sm:$0xff] }
 0x199   :  { %4187 = vmatprep.subr.bf16.mxu0 %v4186_v40  ;;  %v605_v40 = vld [vmem:[%s7675_s6 + $0x388] sm:$0xff]  ;;  %v4200_v12 = vpack.c.bf16 %v539_v38, %v538_v37  ;;  %v558_v37 = vld [vmem:[%s7675_s6 + $0x210] sm:$0xff]  ;;  %v559_v38 = vld [vmem:[%s7675_s6 + $0x218] sm:$0xff] }
 0x19a   :  { %v4234_v27 = vpack.c.bf16 %v605_v40, %v604_v35 }
 0x19b   :  { %4012 = vmatmul.mubr.msk.f32.gmra.mrb[8].mxu0 %vm40_vm0, %v131_v55  ;;  %v556_v55 = vld [vmem:[%s7675_s6 + $0x200] sm:$0xff] }
 0x19c   :  { %4189 = vmatpush3.bf16.msra.mxu0 %v4188_v42 }
 0x19d   :  { %4191 = vmatprep.subr.bf16.mxu0 %v4190_v39  ;;  %v557_v39 = vld [vmem:[%s7675_s6 + $0x208] sm:$0xff] }
 0x1a0   :  { %4193 = vmatpush3.bf16.msra.mxu0 %v4192_v11  ;;  %v4204_v11 = vpack.c.bf16 %v557_v39, %v556_v55  ;;  %v4208_v55 = vpack.c.bf16 %v559_v38, %v558_v37  ;;  %v563_v37 = vld [vmem:[%s7675_s6 + $0x238] sm:$0xff] }
 0x1a1   :  { %4195 = vmatprep.subr.bf16.mxu0 %v4194_v25  ;;  %v575_v25 = vld [vmem:[%s7675_s6 + $0x298] sm:$0xff] }
 0x1a2   :  { %v4206_v40 = vpack.c.bf16 %v575_v25, %v574_v41 }
 0x1a4   :  { %4197 = vmatpush3.bf16.msra.mxu0 %v4196_v50 }
 0x1a5   :  { %4199 = vmatprep.subr.bf16.mxu0 %v4198_v20  ;;  %v4236_v20 = vpack.c.bf16 %v589_v53, %v588_v29  ;;  %v560_v29 = vld [vmem:[%s7675_s6 + $0x220] sm:$0xff]  ;;  %v561_v53 = vld [vmem:[%s7675_s6 + $0x228] sm:$0xff] }
 0x1a8   :  { %4201 = vmatpush3.bf16.msra.mxu0 %v4200_v12  ;;  %v4238_v12 = vpack.c.bf16 %v607_v3, %v606_v46  ;;  %v579_v46 = vld [vmem:[%s7675_s6 + $0x2b8] sm:$0xff]  ;;  %v610_v3 = vld [vmem:[%s7675_s6 + $0x3b0] sm:$0xff] }
 0x1a9   :  { %4235 = vmatprep.subr.bf16.mxu0 %v4234_v27  ;;  %v608_v27 = vld [vmem:[%s7675_s6 + $0x3a0] sm:$0xff] }
 0x1bc   :  { %v333_v62 = vpop.xlane.xlu0 %332 }
 0x1bd   :  { %v334_v14 = vmul.f32 0.00020120724, %v333_v62  ;;  %v609_v62 = vld [vmem:[%s7675_s6 + $0x3a8] sm:$0xff] }
 0x1be   :  { %v4242_v25 = vpack.c.bf16 %v609_v62, %v608_v27 }
 0x1bf   :  { %v335_v42 = vadd.f32 1e-05, %v334_v14 }
 0x1c1   :  { %4791 = vrsqrt.f32 %v335_v42 }
 0x1cb   :  { %v5689_v33 = vpop.eup %4791 }
 0x1cc   :  { %v338_v5 = vmul.f32 %v5689_v33, %v5189_v49  ;;  %v340_v15 = vmul.f32 %v5689_v33, %v5213_v63  ;;  %v337_v50 = vmul.f32 %v5689_v33, %v5185_v45  ;;  %v339_v35 = vmul.f32 %v5689_v33, %v5203_v2  ;;  %v590_v49 = vld [vmem:[%s7675_s6 + $0x310] sm:$0xff]  ;;  %v591_v45 = vld [vmem:[%s7675_s6 + $0x318] sm:$0xff]  ;;  %v576_v63 = vld [vmem:[%s7675_s6 + $0x2a0] sm:$0xff] }
 0x1cd   :  { %v577_v2 = vld [vmem:[%s7675_s6 + $0x2a8] sm:$0xff]  ;;  %v342_v14 = vmul.f32 %v5689_v33, %v5223_v13  ;;  %v344_v42 = vmul.f32 %v5689_v33, %v5235_v0  ;;  %v4240_v39 = vpack.c.bf16 %v591_v45, %v590_v49  ;;  %v592_v13 = vld [vmem:[%s7675_s6 + $0x320] sm:$0xff]  ;;  %v594_v49 = vld [vmem:[%s7675_s6 + $0x330] sm:$0xff] }
 0x1ce   :  { %1192 = vmatprep.mubr.f32.mxu1 %v338_v5  ;;  %1262 = vmatprep.mubr.f32.mxu0 %v340_v15  ;;  %v4210_v41 = vpack.c.bf16 %v577_v2, %v576_v63  ;;  %v593_v0 = vld [vmem:[%s7675_s6 + $0x328] sm:$0xff]  ;;  %v611_v5 = vld [vmem:[%s7675_s6 + $0x3b8] sm:$0xff]  ;;  %v4212_v15 = vpack.c.bf16 %v561_v53, %v560_v29  ;;  %v580_v63 = vld [vmem:[%s7675_s6 + $0x2c0] sm:$0xff] }
 0x1cf   :  { %1193 = vmatmul.mubr.f32.vlgmr.msra.gmra.mrb[0].mxu1 %v337_v50  ;;  %1263 = vmatmul.mubr.f32.vlgmr.msra.gmra.mrb[10].mxu0 %v339_v35  ;;  %v4244_v50 = vpack.c.bf16 %v593_v0, %v592_v13  ;;  %v4246_v35 = vpack.c.bf16 %v611_v5, %v610_v3  ;;  %v595_v45 = vld [vmem:[%s7675_s6 + $0x338] sm:$0xff]  ;;  %v613_v2 = vld [vmem:[%s7675_s6 + $0x3c8] sm:$0xff]  ;;  %v596_v29 = vld [vmem:[%s7675_s6 + $0x340] sm:$0xff] }
 0x1d0   :  { %4205 = vmatpush3.bf16.msra.mxu1 %v4204_v11  ;;  %4237 = vmatpush3.bf16.msra.mxu0 %v4236_v20  ;;  %v578_v11 = vld [vmem:[%s7675_s6 + $0x2b0] sm:$0xff]  ;;  %v4248_v62 = vpack.c.bf16 %v595_v45, %v594_v49  ;;  %v597_v53 = vld [vmem:[%s7675_s6 + $0x348] sm:$0xff]  ;;  %v615_v0 = vld [vmem:[%s7675_s6 + $0x3d8] sm:$0xff] }
 0x1d1   :  { %1332 = vmatprep.mubr.f32.mxu1 %v342_v14  ;;  %1402 = vmatprep.mubr.f32.mxu0 %v344_v42  ;;  %v562_v20 = vld [vmem:[%s7675_s6 + $0x230] sm:$0xff]  ;;  %v4214_v38 = vpack.c.bf16 %v579_v46, %v578_v11  ;;  %v564_v14 = vld [vmem:[%s7675_s6 + $0x240] sm:$0xff]  ;;  %v565_v42 = vld [vmem:[%s7675_s6 + $0x248] sm:$0xff]  ;;  %v4252_v46 = vpack.c.bf16 %v597_v53, %v596_v29 }
 0x1d2   :  { %4207 = vmatprep.subr.bf16.mxu1 %v4206_v40  ;;  %4239 = vmatprep.subr.bf16.mxu0 %v4238_v12  ;;  %v581_v40 = vld [vmem:[%s7675_s6 + $0x2c8] sm:$0xff]  ;;  %v612_v12 = vld [vmem:[%s7675_s6 + $0x3c0] sm:$0xff]  ;;  %v4216_v27 = vpack.c.bf16 %v563_v37, %v562_v20  ;;  %v614_v13 = vld [vmem:[%s7675_s6 + $0x3d0] sm:$0xff]  ;;  %v4220_v11 = vpack.c.bf16 %v565_v42, %v564_v14 }
 0x1d3   :  { %v566_v3 = vld [vmem:[%s7675_s6 + $0x250] sm:$0xff]  ;;  %v567_v5 = vld [vmem:[%s7675_s6 + $0x258] sm:$0xff]  ;;  %v616_v49 = vld [vmem:[%s7675_s6 + $0x3e0] sm:$0xff] }
 0x1d4   :  { %4209 = vmatpush3.bf16.msra.mxu1 %v4208_v55  ;;  %4241 = vmatpush3.bf16.msra.mxu0 %v4240_v39  ;;  %v4218_v55 = vpack.c.bf16 %v581_v40, %v580_v63  ;;  %v4250_v39 = vpack.c.bf16 %v613_v2, %v612_v12  ;;  %v598_v20 = vld [vmem:[%s7675_s6 + $0x350] sm:$0xff]  ;;  %v599_v37 = vld [vmem:[%s7675_s6 + $0x358] sm:$0xff]  ;;  %v617_v45 = vld [vmem:[%s7675_s6 + $0x3e8] sm:$0xff]  ;;  %v4224_v63 = vpack.c.bf16 %v567_v5, %v566_v3 }
 0x1d5   :  { %4211 = vmatprep.subr.bf16.mxu1 %v4210_v41  ;;  %4243 = vmatprep.subr.bf16.mxu0 %v4242_v25  ;;  %v582_v41 = vld [vmem:[%s7675_s6 + $0x2d0] sm:$0xff]  ;;  %v583_v25 = vld [vmem:[%s7675_s6 + $0x2d8] sm:$0xff]  ;;  %v4256_v40 = vpack.c.bf16 %v599_v37, %v598_v20  ;;  %v568_v12 = vld [vmem:[%s7675_s6 + $0x260] sm:$0xff] }
 0x1d6   :  { %v569_v2 = vld [vmem:[%s7675_s6 + $0x268] sm:$0xff]  ;;  %v600_v14 = vld [vmem:[%s7675_s6 + $0x360] sm:$0xff]  ;;  %v618_v29 = vld [vmem:[%s7675_s6 + $0x3f0] sm:$0xff] }
 0x1d7   :  { %v601_v42 = vld [vmem:[%s7675_s6 + $0x368] sm:$0xff]  ;;  %v619_v53 = vld [vmem:[%s7675_s6 + $0x3f8] sm:$0xff]  ;;  %v602_v3 = vld [vmem:[%s7675_s6 + $0x370] sm:$0xff] }
 0x1d8   :  { %4213 = vmatpush3.bf16.msra.mxu1 %v4212_v15  ;;  %4245 = vmatpush3.bf16.msra.mxu0 %v4244_v50  ;;  %v4222_v15 = vpack.c.bf16 %v583_v25, %v582_v41  ;;  %v4254_v50 = vpack.c.bf16 %v615_v0, %v614_v13  ;;  %v4228_v41 = vpack.c.bf16 %v569_v2, %v568_v12  ;;  %v570_v13 = vld [vmem:[%s7675_s6 + $0x270] sm:$0xff]  ;;  %v571_v0 = vld [vmem:[%s7675_s6 + $0x278] sm:$0xff]  ;;  %v668_v20 = vld [vmem:[%s7675_s6 + $0x580] sm:$0xff] }
 0x1d9   :  { %4215 = vmatprep.subr.bf16.mxu1 %v4214_v38  ;;  %4247 = vmatprep.subr.bf16.mxu0 %v4246_v35  ;;  %v584_v38 = vld [vmem:[%s7675_s6 + $0x2e0] sm:$0xff]  ;;  %v585_v35 = vld [vmem:[%s7675_s6 + $0x2e8] sm:$0xff]  ;;  %v4260_v25 = vpack.c.bf16 %v601_v42, %v600_v14  ;;  %v603_v5 = vld [vmem:[%s7675_s6 + $0x378] sm:$0xff] }
 0x1da   :  { %v669_v37 = vld [vmem:[%s7675_s6 + $0x588] sm:$0xff]  ;;  %v652_v12 = vld [vmem:[%s7675_s6 + $0x500] sm:$0xff]  ;;  %v670_v14 = vld [vmem:[%s7675_s6 + $0x590] sm:$0xff] }
 0x1db   :  { %v653_v2 = vld [vmem:[%s7675_s6 + $0x508] sm:$0xff]  ;;  %v671_v42 = vld [vmem:[%s7675_s6 + $0x598] sm:$0xff] }
 0x1dc   :  { %4217 = vmatpush3.bf16.msra.mxu1 %v4216_v27  ;;  %4249 = vmatpush3.bf16.msra.mxu0 %v4248_v62  ;;  %v4226_v27 = vpack.c.bf16 %v585_v35, %v584_v38  ;;  %v4258_v62 = vpack.c.bf16 %v617_v45, %v616_v49  ;;  %v4232_v38 = vpack.c.bf16 %v571_v0, %v570_v13  ;;  %v654_v13 = vld [vmem:[%s7675_s6 + $0x510] sm:$0xff] }
 0x1dd   :  { %4219 = vmatprep.subr.bf16.mxu1 %v4218_v55  ;;  %4251 = vmatprep.subr.bf16.mxu0 %v4250_v39  ;;  %v586_v55 = vld [vmem:[%s7675_s6 + $0x2f0] sm:$0xff]  ;;  %v587_v39 = vld [vmem:[%s7675_s6 + $0x2f8] sm:$0xff]  ;;  %v4264_v35 = vpack.c.bf16 %v603_v5, %v602_v3  ;;  %v4298_v45 = vpack.c.bf16 %v669_v37, %v668_v20  ;;  %v641_v3 = vld [vmem:[%s7675_s6 + $0x4a8] sm:$0xff]  ;;  %v348_v5 = vmul.f32 %v5689_v33, %v5259_v57 }
 0x1de   :  { %v625_v57 = vld [vmem:[%s7675_s6 + $0x428] sm:$0xff] }
 0x1e0   :  { %4221 = vmatpush3.bf16.msra.mxu1 %v4220_v11  ;;  %4253 = vmatpush3.bf16.msra.mxu0 %v4252_v46  ;;  %v4230_v11 = vpack.c.bf16 %v587_v39, %v586_v55  ;;  %v4262_v46 = vpack.c.bf16 %v619_v53, %v618_v29  ;;  %v341_v39 = vmul.f32 %v5689_v33, %v5217_v4 }
 0x1e1   :  { %4223 = vmatprep.subr.bf16.mxu1 %v4222_v15  ;;  %4255 = vmatprep.subr.bf16.mxu0 %v4254_v50  ;;  %v636_v15 = vld [vmem:[%s7675_s6 + $0x480] sm:$0xff]  ;;  %v637_v50 = vld [vmem:[%s7675_s6 + $0x488] sm:$0xff]  ;;  %v343_v29 = vmul.f32 %v5689_v33, %v5229_v6  ;;  %v4300_v53 = vpack.c.bf16 %v653_v2, %v652_v12  ;;  %v346_v4 = vmul.f32 %v5689_v33, %v5247_v43  ;;  %v674_v12 = vld [vmem:[%s7675_s6 + $0x5b0] sm:$0xff] }
 0x1e2   :  { %v4266_v49 = vpack.c.bf16 %v637_v50, %v636_v15  ;;  %v4302_v6 = vpack.c.bf16 %v671_v42, %v670_v14  ;;  %v672_v43 = vld [vmem:[%s7675_s6 + $0x5a0] sm:$0xff]  ;;  %v673_v15 = vld [vmem:[%s7675_s6 + $0x5a8] sm:$0xff]  ;;  %v675_v2 = vld [vmem:[%s7675_s6 + $0x5b8] sm:$0xff] }
 0x1e3   :  { %v626_v42 = vld [vmem:[%s7675_s6 + $0x430] sm:$0xff] }
 0x1e4   :  { %4225 = vmatpush3.bf16.msra.mxu1 %v4224_v63  ;;  %4257 = vmatpush3.bf16.msra.mxu0 %v4256_v40  ;;  %v620_v63 = vld [vmem:[%s7675_s6 + $0x400] sm:$0xff]  ;;  %v621_v40 = vld [vmem:[%s7675_s6 + $0x408] sm:$0xff] }
 0x1e5   :  { %4227 = vmatprep.subr.bf16.mxu1 %v4226_v27  ;;  %4259 = vmatprep.subr.bf16.mxu0 %v4258_v62  ;;  %v638_v27 = vld [vmem:[%s7675_s6 + $0x490] sm:$0xff]  ;;  %v639_v62 = vld [vmem:[%s7675_s6 + $0x498] sm:$0xff]  ;;  %v4268_v55 = vpack.c.bf16 %v621_v40, %v620_v63 }
 0x1e6   :  { %v4270_v0 = vpack.c.bf16 %v639_v62, %v638_v27  ;;  %v642_v63 = vld [vmem:[%s7675_s6 + $0x4b0] sm:$0xff]  ;;  %v643_v40 = vld [vmem:[%s7675_s6 + $0x4b8] sm:$0xff] }
 0x1e7   :  { %v4278_v14 = vpack.c.bf16 %v643_v40, %v642_v63  ;;  %v631_v63 = vld [vmem:[%s7675_s6 + $0x458] sm:$0xff]  ;;  %v662_v40 = vld [vmem:[%s7675_s6 + $0x550] sm:$0xff] }
 0x1e8   :  { %4229 = vmatpush3.bf16.msra.mxu1 %v4228_v41  ;;  %4261 = vmatpush3.bf16.msra.mxu0 %v4260_v25  ;;  %v622_v41 = vld [vmem:[%s7675_s6 + $0x410] sm:$0xff]  ;;  %v623_v25 = vld [vmem:[%s7675_s6 + $0x418] sm:$0xff] }
 0x1e9   :  { %4231 = vmatprep.subr.bf16.mxu1 %v4230_v11  ;;  %4263 = vmatprep.subr.bf16.mxu0 %v4262_v46  ;;  %v655_v11 = vld [vmem:[%s7675_s6 + $0x518] sm:$0xff]  ;;  %v640_v46 = vld [vmem:[%s7675_s6 + $0x4a0] sm:$0xff]  ;;  %v4272_v50 = vpack.c.bf16 %v623_v25, %v622_v41  ;;  %v645_v25 = vld [vmem:[%s7675_s6 + $0x4c8] sm:$0xff] }
 0x1ea   :  { %v4304_v20 = vpack.c.bf16 %v655_v11, %v654_v13  ;;  %v4274_v37 = vpack.c.bf16 %v641_v3, %v640_v46  ;;  %v644_v41 = vld [vmem:[%s7675_s6 + $0x4c0] sm:$0xff]  ;;  %v629_v3 = vld [vmem:[%s7675_s6 + $0x448] sm:$0xff] }
 0x1eb   :  { %v676_v13 = vld [vmem:[%s7675_s6 + $0x5c0] sm:$0xff]  ;;  %v4282_v11 = vpack.c.bf16 %v645_v25, %v644_v41  ;;  %v633_v41 = vld [vmem:[%s7675_s6 + $0x468] sm:$0xff] }
 0x1ec   :  { %4233 = vmatpush3.bf16.msra.mxu1 %v4232_v38  ;;  %4265 = vmatpush3.bf16.msra.mxu0 %v4264_v35  ;;  %v624_v38 = vld [vmem:[%s7675_s6 + $0x420] sm:$0xff] }
 0x1ed   :  { %4267 = vmatprep.subr.bf16.mxu1 %v4266_v49  ;;  %4299 = vmatprep.subr.bf16.mxu0 %v4298_v45  ;;  %v656_v35 = vld [vmem:[%s7675_s6 + $0x520] sm:$0xff]  ;;  %v4306_v49 = vpack.c.bf16 %v673_v15, %v672_v43  ;;  %v657_v45 = vld [vmem:[%s7675_s6 + $0x528] sm:$0xff]  ;;  %v4276_v27 = vpack.c.bf16 %v625_v57, %v624_v38  ;;  %v679_v38 = vld [vmem:[%s7675_s6 + $0x5d8] sm:$0xff] }
 0x1ee   :  { %v4308_v62 = vpack.c.bf16 %v657_v45, %v656_v35  ;;  %v628_v46 = vld [vmem:[%s7675_s6 + $0x440] sm:$0xff]  ;;  %v661_v15 = vld [vmem:[%s7675_s6 + $0x548] sm:$0xff]  ;;  %v630_v45 = vld [vmem:[%s7675_s6 + $0x450] sm:$0xff] }
 0x1ef   :  { %1333 = vmatmul.mubr.f32.vlgmr.msra.gmra.mrb[2].mxu1 %v341_v39  ;;  %1403 = vmatmul.mubr.f32.vlgmr.msra.gmra.mrb[12].mxu0 %v343_v29  ;;  %v658_v39 = vld [vmem:[%s7675_s6 + $0x530] sm:$0xff]  ;;  %v4310_v29 = vpack.c.bf16 %v675_v2, %v674_v12  ;;  %v4284_v57 = vpack.c.bf16 %v629_v3, %v628_v46  ;;  %v663_v2 = vld [vmem:[%s7675_s6 + $0x558] sm:$0xff]  ;;  %v664_v25 = vld [vmem:[%s7675_s6 + $0x560] sm:$0xff] }
 0x1f0   :  { %4269 = vmatpush3.bf16.msra.mxu1 %v4268_v55  ;;  %1472 = vmatprep.mubr.f32.mxu1 %v346_v4  ;;  %v627_v55 = vld [vmem:[%s7675_s6 + $0x438] sm:$0xff]  ;;  %v677_v4 = vld [vmem:[%s7675_s6 + $0x5c8] sm:$0xff] }
 0x1f1   :  { %4301 = vmatpush3.bf16.msra.mxu0 %v4300_v53  ;;  %1542 = vmatprep.mubr.f32.mxu0 %v348_v5  ;;  %v659_v53 = vld [vmem:[%s7675_s6 + $0x538] sm:$0xff]  ;;  %v660_v5 = vld [vmem:[%s7675_s6 + $0x540] sm:$0xff]  ;;  %v4314_v43 = vpack.c.bf16 %v677_v4, %v676_v13  ;;  %v665_v4 = vld [vmem:[%s7675_s6 + $0x568] sm:$0xff] }
 0x1f2   :  { %4271 = vmatprep.subr.bf16.mxu1 %v4270_v0  ;;  %4303 = vmatprep.subr.bf16.mxu0 %v4302_v6  ;;  %v4280_v0 = vpack.c.bf16 %v627_v55, %v626_v42  ;;  %v4312_v6 = vpack.c.bf16 %v659_v53, %v658_v39  ;;  %v4316_v35 = vpack.c.bf16 %v661_v15, %v660_v5  ;;  %v681_v42 = vld [vmem:[%s7675_s6 + $0x5e8] sm:$0xff]  ;;  %v632_v53 = vld [vmem:[%s7675_s6 + $0x460] sm:$0xff]  ;;  %v683_v46 = vld [vmem:[%s7675_s6 + $0x5f8] sm:$0xff] }
 0x1f3   :  { %v4288_v55 = vpack.c.bf16 %v631_v63, %v630_v45  ;;  %v4320_v39 = vpack.c.bf16 %v663_v2, %v662_v40  ;;  %v4292_v3 = vpack.c.bf16 %v633_v41, %v632_v53  ;;  %v4324_v5 = vpack.c.bf16 %v665_v4, %v664_v25  ;;  %v634_v15 = vld [vmem:[%s7675_s6 + $0x470] sm:$0xff]  ;;  %v733_v45 = vld [vmem:[%s7675_s6 + $0x788] sm:$0xff]  ;;  %v684_v2 = vld [vmem:[%s7675_s6 + $0x600] sm:$0xff] }
 0x1f4   :  { %4273 = vmatpush3.bf16.msra.mxu1 %v4272_v50  ;;  %v646_v50 = vld [vmem:[%s7675_s6 + $0x4d0] sm:$0xff]  ;;  %v735_v41 = vld [vmem:[%s7675_s6 + $0x798] sm:$0xff]  ;;  %v345_v25 = vmul.f32 %v5689_v33, %v5241_v51 }
 0x1f5   :  { %4305 = vmatpush3.bf16.msra.mxu0 %v4304_v20  ;;  %4275 = vmatprep.subr.bf16.mxu1 %v4274_v37  ;;  %v647_v20 = vld [vmem:[%s7675_s6 + $0x4d8] sm:$0xff]  ;;  %v678_v37 = vld [vmem:[%s7675_s6 + $0x5d0] sm:$0xff] }
 0x1f6   :  { %4307 = vmatprep.subr.bf16.mxu0 %v4306_v49  ;;  %v4286_v49 = vpack.c.bf16 %v647_v20, %v646_v50  ;;  %v4318_v12 = vpack.c.bf16 %v679_v38, %v678_v37  ;;  %v635_v50 = vld [vmem:[%s7675_s6 + $0x478] sm:$0xff]  ;;  %v666_v20 = vld [vmem:[%s7675_s6 + $0x570] sm:$0xff] }
 0x1f7   :  { %v667_v38 = vld [vmem:[%s7675_s6 + $0x578] sm:$0xff]  ;;  %v4296_v63 = vpack.c.bf16 %v635_v50, %v634_v15  ;;  %v734_v53 = vld [vmem:[%s7675_s6 + $0x790] sm:$0xff]  ;;  %v737_v50 = vld [vmem:[%s7675_s6 + $0x7a8] sm:$0xff] }
 0x1f8   :  { %4277 = vmatpush3.bf16.msra.mxu1 %v4276_v27  ;;  %v648_v27 = vld [vmem:[%s7675_s6 + $0x4e0] sm:$0xff]  ;;  %v4328_v40 = vpack.c.bf16 %v667_v38, %v666_v20  ;;  %v686_v4 = vld [vmem:[%s7675_s6 + $0x610] sm:$0xff]  ;;  %v719_v51 = vld [vmem:[%s7675_s6 + $0x718] sm:$0xff]  ;;  %v4366_v15 = vpack.c.bf16 %v735_v41, %v734_v53  ;;  %v352_v20 = vmul.f32 %v5689_v33, %v5298_v47 }
 0x1f9   :  { %4309 = vmatpush3.bf16.msra.mxu0 %v4308_v62  ;;  %4279 = vmatprep.subr.bf16.mxu1 %v4278_v14  ;;  %v649_v62 = vld [vmem:[%s7675_s6 + $0x4e8] sm:$0xff]  ;;  %v680_v14 = vld [vmem:[%s7675_s6 + $0x5e0] sm:$0xff]  ;;  %v723_v53 = vld [vmem:[%s7675_s6 + $0x738] sm:$0xff] }
 0x1fa   :  { %4311 = vmatprep.subr.bf16.mxu0 %v4310_v29  ;;  %v4290_v29 = vpack.c.bf16 %v649_v62, %v648_v27  ;;  %v4322_v13 = vpack.c.bf16 %v681_v42, %v680_v14  ;;  %v685_v27 = vld [vmem:[%s7675_s6 + $0x608] sm:$0xff]  ;;  %v716_v14 = vld [vmem:[%s7675_s6 + $0x700] sm:$0xff] }
 0x1fb   :  { %v717_v42 = vld [vmem:[%s7675_s6 + $0x708] sm:$0xff]  ;;  %v708_v41 = vld [vmem:[%s7675_s6 + $0x6c0] sm:$0xff] }
 0x1fc   :  { %4281 = vmatpush3.bf16.msra.mxu1 %v4280_v0  ;;  %v650_v0 = vld [vmem:[%s7675_s6 + $0x4f0] sm:$0xff] }
 0x1fd   :  { %4313 = vmatpush3.bf16.msra.mxu0 %v4312_v6  ;;  %4283 = vmatprep.subr.bf16.mxu1 %v4282_v11  ;;  %v651_v6 = vld [vmem:[%s7675_s6 + $0x4f8] sm:$0xff]  ;;  %v682_v11 = vld [vmem:[%s7675_s6 + $0x5f0] sm:$0xff] }
 0x1fe   :  { %4315 = vmatprep.subr.bf16.mxu0 %v4314_v43  ;;  %v4294_v43 = vpack.c.bf16 %v651_v6, %v650_v0  ;;  %v4326_v37 = vpack.c.bf16 %v683_v46, %v682_v11  ;;  %v687_v0 = vld [vmem:[%s7675_s6 + $0x618] sm:$0xff]  ;;  %v718_v6 = vld [vmem:[%s7675_s6 + $0x710] sm:$0xff]  ;;  %v347_v11 = vmul.f32 %v5689_v33, %v5253_v1  ;;  %v736_v1 = vld [vmem:[%s7675_s6 + $0x7a0] sm:$0xff] }
 0x1ff   :  { %v4368_v38 = vpack.c.bf16 %v719_v51, %v718_v6  ;;  %v4370_v47 = vpack.c.bf16 %v737_v50, %v736_v1  ;;  %v693_v51 = vld [vmem:[%s7675_s6 + $0x648] sm:$0xff]  ;;  %v711_v1 = vld [vmem:[%s7675_s6 + $0x6d8] sm:$0xff]  ;;  %v742_v50 = vld [vmem:[%s7675_s6 + $0x7d0] sm:$0xff] }
 0x200   :  { %4285 = vmatpush3.bf16.msra.mxu1 %v4284_v57  ;;  %v700_v57 = vld [vmem:[%s7675_s6 + $0x680] sm:$0xff] }
 0x201   :  { %4317 = vmatpush3.bf16.msra.mxu0 %v4316_v35  ;;  %4287 = vmatprep.subr.bf16.mxu1 %v4286_v49  ;;  %v701_v35 = vld [vmem:[%s7675_s6 + $0x688] sm:$0xff]  ;;  %v732_v49 = vld [vmem:[%s7675_s6 + $0x780] sm:$0xff] }
 0x202   :  { %4319 = vmatprep.subr.bf16.mxu0 %v4318_v12  ;;  %v4330_v12 = vpack.c.bf16 %v701_v35, %v700_v57  ;;  %v4362_v62 = vpack.c.bf16 %v733_v45, %v732_v49  ;;  %v689_v35 = vld [vmem:[%s7675_s6 + $0x628] sm:$0xff]  ;;  %v720_v49 = vld [vmem:[%s7675_s6 + $0x720] sm:$0xff] }
 0x203   :  { %v721_v45 = vld [vmem:[%s7675_s6 + $0x728] sm:$0xff] }
 0x204   :  { %4289 = vmatpush3.bf16.msra.mxu1 %v4288_v55  ;;  %v702_v55 = vld [vmem:[%s7675_s6 + $0x690] sm:$0xff] }
 0x205   :  { %4321 = vmatpush3.bf16.msra.mxu0 %v4320_v39  ;;  %4291 = vmatprep.subr.bf16.mxu1 %v4290_v29  ;;  %v703_v39 = vld [vmem:[%s7675_s6 + $0x698] sm:$0xff]  ;;  %v4332_v29 = vpack.c.bf16 %v685_v27, %v684_v2 }
 0x206   :  { %4323 = vmatprep.subr.bf16.mxu0 %v4322_v13  ;;  %v4364_v13 = vpack.c.bf16 %v717_v42, %v716_v14  ;;  %v4334_v46 = vpack.c.bf16 %v703_v39, %v702_v55  ;;  %v739_v2 = vld [vmem:[%s7675_s6 + $0x7b8] sm:$0xff]  ;;  %v690_v42 = vld [vmem:[%s7675_s6 + $0x630] sm:$0xff] }
 0x207   :  { %v691_v55 = vld [vmem:[%s7675_s6 + $0x638] sm:$0xff]  ;;  %v722_v39 = vld [vmem:[%s7675_s6 + $0x730] sm:$0xff] }
 0x208   :  { %4293 = vmatpush3.bf16.msra.mxu1 %v4292_v3  ;;  %v704_v3 = vld [vmem:[%s7675_s6 + $0x6a0] sm:$0xff]  ;;  %v4376_v6 = vpack.c.bf16 %v723_v53, %v722_v39  ;;  %v729_v53 = vld [vmem:[%s7675_s6 + $0x768] sm:$0xff] }
 0x209   :  { %4325 = vmatpush3.bf16.msra.mxu0 %v4324_v5  ;;  %4295 = vmatprep.subr.bf16.mxu1 %v4294_v43  ;;  %v705_v5 = vld [vmem:[%s7675_s6 + $0x6a8] sm:$0xff]  ;;  %v350_v43 = vmul.f32 %v5689_v33, %v5271_v9  ;;  %v688_v9 = vld [vmem:[%s7675_s6 + $0x620] sm:$0xff] }
 0x20a   :  { %4327 = vmatprep.subr.bf16.mxu0 %v4326_v37  ;;  %v4336_v37 = vpack.c.bf16 %v687_v0, %v686_v4  ;;  %v4338_v57 = vpack.c.bf16 %v705_v5, %v704_v3  ;;  %v4340_v27 = vpack.c.bf16 %v689_v35, %v688_v9  ;;  %v741_v4 = vld [vmem:[%s7675_s6 + $0x7c8] sm:$0xff]  ;;  %v4344_v0 = vpack.c.bf16 %v691_v55, %v690_v42  ;;  %v724_v3 = vld [vmem:[%s7675_s6 + $0x740] sm:$0xff]  ;;  %v694_v9 = vld [vmem:[%s7675_s6 + $0x650] sm:$0xff] }
 0x20b   :  { %v695_v35 = vld [vmem:[%s7675_s6 + $0x658] sm:$0xff]  ;;  %v696_v42 = vld [vmem:[%s7675_s6 + $0x660] sm:$0xff]  ;;  %v697_v55 = vld [vmem:[%s7675_s6 + $0x668] sm:$0xff] }
 0x20c   :  { %4297 = vmatpush3.bf16.msra.mxu1 %v4296_v63  ;;  %v706_v63 = vld [vmem:[%s7675_s6 + $0x6b0] sm:$0xff]  ;;  %v728_v39 = vld [vmem:[%s7675_s6 + $0x760] sm:$0xff] }
 0x20d   :  { %4329 = vmatpush3.bf16.msra.mxu0 %v4328_v40  ;;  %4331 = vmatprep.subr.bf16.mxu1 %v4330_v12  ;;  %v707_v40 = vld [vmem:[%s7675_s6 + $0x6b8] sm:$0xff]  ;;  %v738_v12 = vld [vmem:[%s7675_s6 + $0x7b0] sm:$0xff] }
 0x20e   :  { %4363 = vmatprep.subr.bf16.mxu0 %v4362_v62  ;;  %v4372_v62 = vpack.c.bf16 %v721_v45, %v720_v49  ;;  %v4342_v14 = vpack.c.bf16 %v707_v40, %v706_v63  ;;  %v726_v49 = vld [vmem:[%s7675_s6 + $0x750] sm:$0xff]  ;;  %v727_v45 = vld [vmem:[%s7675_s6 + $0x758] sm:$0xff]  ;;  %v712_v63 = vld [vmem:[%s7675_s6 + $0x6e0] sm:$0xff] }
 0x20f   :  { %1473 = vmatmul.mubr.f32.vlgmr.msra.gmra.mrb[4].mxu1 %v345_v25  ;;  %v709_v25 = vld [vmem:[%s7675_s6 + $0x6c8] sm:$0xff] }
 0x210   :  { %1543 = vmatmul.mubr.f32.vlgmr.msra.gmra.mrb[14].mxu0 %v347_v11  ;;  %4333 = vmatpush3.bf16.msra.mxu1 %v4332_v29  ;;  %v4374_v29 = vpack.c.bf16 %v739_v2, %v738_v12  ;;  %v4346_v11 = vpack.c.bf16 %v709_v25, %v708_v41  ;;  %v713_v40 = vld [vmem:[%s7675_s6 + $0x6e8] sm:$0xff]  ;;  %v744_v12 = vld [vmem:[%s7675_s6 + $0x7e0] sm:$0xff]  ;;  %v714_v41 = vld [vmem:[%s7675_s6 + $0x6f0] sm:$0xff] }
 0x211   :  { %1612 = vmatprep.mubr.f32.mxu1 %v350_v43  ;;  %4365 = vmatpush3.bf16.msra.mxu0 %v4364_v13  ;;  %v740_v13 = vld [vmem:[%s7675_s6 + $0x7c0] sm:$0xff]  ;;  %v725_v43 = vld [vmem:[%s7675_s6 + $0x748] sm:$0xff]  ;;  %v715_v25 = vld [vmem:[%s7675_s6 + $0x6f8] sm:$0xff] }
 0x212   :  { %1682 = vmatprep.mubr.f32.mxu0 %v352_v20  ;;  %4335 = vmatprep.subr.bf16.mxu1 %v4334_v46  ;;  %v692_v46 = vld [vmem:[%s7675_s6 + $0x640] sm:$0xff]  ;;  %v4378_v5 = vpack.c.bf16 %v741_v4, %v740_v13  ;;  %v743_v20 = vld [vmem:[%s7675_s6 + $0x7d8] sm:$0xff]  ;;  %v745_v2 = vld [vmem:[%s7675_s6 + $0x7e8] sm:$0xff] }
 0x213   :  { %4367 = vmatprep.subr.bf16.mxu0 %v4366_v15  ;;  %v710_v15 = vld [vmem:[%s7675_s6 + $0x6d0] sm:$0xff]  ;;  %v747_v4 = vld [vmem:[%s7675_s6 + $0x7f8] sm:$0xff] }
 0x214   :  { %4337 = vmatpush3.bf16.msra.mxu1 %v4336_v37  ;;  %v4348_v37 = vpack.c.bf16 %v693_v51, %v692_v46  ;;  %v746_v13 = vld [vmem:[%s7675_s6 + $0x7f0] sm:$0xff]  ;;  %v699_v51 = vld [vmem:[%s7675_s6 + $0x678] sm:$0xff] }
 0x215   :  { %4369 = vmatpush3.bf16.msra.mxu0 %v4368_v38  ;;  %4339 = vmatprep.subr.bf16.mxu1 %v4338_v57  ;;  %v4380_v38 = vpack.c.bf16 %v725_v43, %v724_v3  ;;  %v4350_v57 = vpack.c.bf16 %v711_v1, %v710_v15  ;;  %v698_v46 = vld [vmem:[%s7675_s6 + $0x670] sm:$0xff]  ;;  %v731_v43 = vld [vmem:[%s7675_s6 + $0x778] sm:$0xff]  ;;  %v764_v15 = vld [vmem:[%s7675_s6 + $0x880] sm:$0xff] }
 0x216   :  { %4371 = vmatprep.subr.bf16.mxu0 %v4370_v47  ;;  %v4382_v47 = vpack.c.bf16 %v743_v20, %v742_v50  ;;  %v730_v3 = vld [vmem:[%s7675_s6 + $0x770] sm:$0xff]  ;;  %v765_v1 = vld [vmem:[%s7675_s6 + $0x888] sm:$0xff]  ;;  %v796_v50 = vld [vmem:[%s7675_s6 + $0x980] sm:$0xff] }
 0x217   :  { %v797_v20 = vld [vmem:[%s7675_s6 + $0x988] sm:$0xff] }
 0x218   :  { %4341 = vmatpush3.bf16.msra.mxu1 %v4340_v27  ;;  %v4352_v27 = vpack.c.bf16 %v695_v35, %v694_v9  ;;  %v748_v9 = vld [vmem:[%s7675_s6 + $0x800] sm:$0xff]  ;;  %v749_v35 = vld [vmem:[%s7675_s6 + $0x808] sm:$0xff] }
 0x219   :  { %4373 = vmatpush3.bf16.msra.mxu0 %v4372_v62  ;;  %4343 = vmatprep.subr.bf16.mxu1 %v4342_v14  ;;  %v4384_v62 = vpack.c.bf16 %v727_v45, %v726_v49  ;;  %v4354_v14 = vpack.c.bf16 %v713_v40, %v712_v63  ;;  %v4426_v49 = vpack.c.bf16 %v797_v20, %v796_v50  ;;  %v781_v45 = vld [vmem:[%s7675_s6 + $0x908] sm:$0xff]  ;;  %v766_v63 = vld [vmem:[%s7675_s6 + $0x890] sm:$0xff]  ;;  %v767_v40 = vld [vmem:[%s7675_s6 + $0x898] sm:$0xff] }
 0x21a   :  { %4375 = vmatprep.subr.bf16.mxu0 %v4374_v29  ;;  %v4386_v29 = vpack.c.bf16 %v745_v2, %v744_v12  ;;  %v4396_v12 = vpack.c.bf16 %v749_v35, %v748_v9  ;;  %v798_v2 = vld [vmem:[%s7675_s6 + $0x990] sm:$0xff]  ;;  %v803_v20 = vld [vmem:[%s7675_s6 + $0x9b8] sm:$0xff] }
 0x21b   :  { %v802_v50 = vld [vmem:[%s7675_s6 + $0x9b0] sm:$0xff]  ;;  %v755_v35 = vld [vmem:[%s7675_s6 + $0x838] sm:$0xff] }
 0x21c   :  { %4345 = vmatpush3.bf16.msra.mxu1 %v4344_v0  ;;  %v4356_v0 = vpack.c.bf16 %v697_v55, %v696_v42  ;;  %v750_v42 = vld [vmem:[%s7675_s6 + $0x810] sm:$0xff]  ;;  %v751_v55 = vld [vmem:[%s7675_s6 + $0x818] sm:$0xff] }
 0x21d   :  { %4377 = vmatpush3.bf16.msra.mxu0 %v4376_v6  ;;  %4347 = vmatprep.subr.bf16.mxu1 %v4346_v11  ;;  %v4388_v6 = vpack.c.bf16 %v729_v53, %v728_v39  ;;  %v4358_v11 = vpack.c.bf16 %v715_v25, %v714_v41  ;;  %v782_v39 = vld [vmem:[%s7675_s6 + $0x910] sm:$0xff]  ;;  %v4398_v53 = vpack.c.bf16 %v767_v40, %v766_v63  ;;  %v768_v41 = vld [vmem:[%s7675_s6 + $0x8a0] sm:$0xff]  ;;  %v769_v25 = vld [vmem:[%s7675_s6 + $0x8a8] sm:$0xff] }
 0x21e   :  { %4379 = vmatprep.subr.bf16.mxu0 %v4378_v5  ;;  %v4390_v5 = vpack.c.bf16 %v747_v4, %v746_v13  ;;  %v354_v13 = vmul.f32 %v5689_v33, %v5311_v34  ;;  %v752_v34 = vld [vmem:[%s7675_s6 + $0x820] sm:$0xff]  ;;  %v754_v9 = vld [vmem:[%s7675_s6 + $0x830] sm:$0xff]  ;;  %v773_v40 = vld [vmem:[%s7675_s6 + $0x8c8] sm:$0xff] }
 0x21f   :  { %v772_v63 = vld [vmem:[%s7675_s6 + $0x8c0] sm:$0xff] }
 0x220   :  { %4349 = vmatpush3.bf16.msra.mxu1 %v4348_v37  ;;  %v4360_v37 = vpack.c.bf16 %v699_v51, %v698_v46  ;;  %v4402_v51 = vpack.c.bf16 %v769_v25, %v768_v41  ;;  %v775_v41 = vld [vmem:[%s7675_s6 + $0x8d8] sm:$0xff]  ;;  %v806_v25 = vld [vmem:[%s7675_s6 + $0x9d0] sm:$0xff] }
 0x221   :  { %4381 = vmatpush3.bf16.msra.mxu0 %v4380_v38  ;;  %4351 = vmatprep.subr.bf16.mxu1 %v4350_v57  ;;  %v4392_v38 = vpack.c.bf16 %v731_v43, %v730_v3  ;;  %v4394_v57 = vpack.c.bf16 %v765_v1, %v764_v15  ;;  %v753_v3 = vld [vmem:[%s7675_s6 + $0x828] sm:$0xff]  ;;  %v770_v15 = vld [vmem:[%s7675_s6 + $0x8b0] sm:$0xff]  ;;  %v771_v1 = vld [vmem:[%s7675_s6 + $0x8b8] sm:$0xff] }
 0x222   :  { %4383 = vmatprep.subr.bf16.mxu0 %v4382_v47  ;;  %v780_v47 = vld [vmem:[%s7675_s6 + $0x900] sm:$0xff]  ;;  %v785_v43 = vld [vmem:[%s7675_s6 + $0x928] sm:$0xff] }
 0x224   :  { %4353 = vmatpush3.bf16.msra.mxu1 %v4352_v27  ;;  %v799_v27 = vld [vmem:[%s7675_s6 + $0x998] sm:$0xff] }
 0x225   :  { %4385 = vmatpush3.bf16.msra.mxu0 %v4384_v62  ;;  %4355 = vmatprep.subr.bf16.mxu1 %v4354_v14  ;;  %v349_v62 = vmul.f32 %v5689_v33, %v5265_v61  ;;  %v4428_v14 = vpack.c.bf16 %v781_v45, %v780_v47  ;;  %v783_v61 = vld [vmem:[%s7675_s6 + $0x918] sm:$0xff]  ;;  %v4430_v4 = vpack.c.bf16 %v799_v27, %v798_v2  ;;  %v805_v2 = vld [vmem:[%s7675_s6 + $0x9c8] sm:$0xff] }
 0x226   :  { %4387 = vmatprep.subr.bf16.mxu0 %v4386_v29  ;;  %v351_v29 = vmul.f32 %v5689_v33, %v5289_v10  ;;  %v800_v10 = vld [vmem:[%s7675_s6 + $0x9a0] sm:$0xff]  ;;  %v4432_v46 = vpack.c.bf16 %v783_v61, %v782_v39  ;;  %v4438_v47 = vpack.c.bf16 %v803_v20, %v802_v50  ;;  %v787_v45 = vld [vmem:[%s7675_s6 + $0x938] sm:$0xff]  ;;  %v4408_v27 = vpack.c.bf16 %v755_v35, %v754_v9  ;;  %v774_v61 = vld [vmem:[%s7675_s6 + $0x8d0] sm:$0xff] }
 0x227   :  { %v788_v39 = vld [vmem:[%s7675_s6 + $0x940] sm:$0xff]  ;;  %v793_v9 = vld [vmem:[%s7675_s6 + $0x968] sm:$0xff]  ;;  %v778_v35 = vld [vmem:[%s7675_s6 + $0x8f0] sm:$0xff] }
 0x228   :  { %4357 = vmatpush3.bf16.msra.mxu1 %v4356_v0  ;;  %v801_v0 = vld [vmem:[%s7675_s6 + $0x9a8] sm:$0xff]  ;;  %v760_v20 = vld [vmem:[%s7675_s6 + $0x860] sm:$0xff] }
 0x229   :  { %4389 = vmatpush3.bf16.msra.mxu0 %v4388_v6  ;;  %4359 = vmatprep.subr.bf16.mxu1 %v4358_v11  ;;  %v356_v6 = vmul.f32 %v5689_v33, %v5323_v8  ;;  %v4400_v11 = vpack.c.bf16 %v751_v55, %v750_v42  ;;  %v4434_v8 = vpack.c.bf16 %v801_v0, %v800_v10  ;;  %v756_v42 = vld [vmem:[%s7675_s6 + $0x840] sm:$0xff]  ;;  %v757_v55 = vld [vmem:[%s7675_s6 + $0x848] sm:$0xff] }
 0x22a   :  { %4391 = vmatprep.subr.bf16.mxu0 %v4390_v5  ;;  %v784_v5 = vld [vmem:[%s7675_s6 + $0x920] sm:$0xff]  ;;  %v4414_v0 = vpack.c.bf16 %v775_v41, %v774_v61 }
 0x22c   :  { %4361 = vmatpush3.bf16.msra.mxu1 %v4360_v37  ;;  %v4404_v37 = vpack.c.bf16 %v753_v3, %v752_v34  ;;  %v791_v34 = vld [vmem:[%s7675_s6 + $0x958] sm:$0xff]  ;;  %v776_v3 = vld [vmem:[%s7675_s6 + $0x8e0] sm:$0xff] }
 0x22d   :  { %4393 = vmatpush3.bf16.msra.mxu0 %v4392_v38  ;;  %4395 = vmatprep.subr.bf16.mxu1 %v4394_v57  ;;  %v4436_v38 = vpack.c.bf16 %v785_v43, %v784_v5  ;;  %v4406_v57 = vpack.c.bf16 %v771_v1, %v770_v15  ;;  %v777_v5 = vld [vmem:[%s7675_s6 + $0x8e8] sm:$0xff] }
 0x22e   :  { %4427 = vmatprep.subr.bf16.mxu0 %v4426_v49  ;;  %v786_v49 = vld [vmem:[%s7675_s6 + $0x930] sm:$0xff]  ;;  %v809_v43 = vld [vmem:[%s7675_s6 + $0x9e8] sm:$0xff]  ;;  %v4418_v50 = vpack.c.bf16 %v777_v5, %v776_v3  ;;  %v863_v3 = vld [vmem:[%s7675_s6 + $0xb98] sm:$0xff]  ;;  %v353_v5 = vmul.f32 %v5689_v33, %v5305_v19 }
 0x22f   :  { %1613 = vmatmul.mubr.f32.vlgmr.msra.gmra.mrb[6].mxu1 %v349_v62  ;;  %v4440_v62 = vpack.c.bf16 %v787_v45, %v786_v49  ;;  %v779_v49 = vld [vmem:[%s7675_s6 + $0x8f8] sm:$0xff] }
 0x230   :  { %1683 = vmatmul.mubr.f32.vlgmr.msra.gmra.mrb[16].mxu0 %v351_v29  ;;  %4397 = vmatpush3.bf16.msra.mxu1 %v4396_v12  ;;  %v804_v12 = vld [vmem:[%s7675_s6 + $0x9c0] sm:$0xff]  ;;  %v811_v45 = vld [vmem:[%s7675_s6 + $0x9f8] sm:$0xff] }
 0x231   :  { %1752 = vmatprep.mubr.f32.mxu1 %v354_v13  ;;  %4429 = vmatpush3.bf16.msra.mxu0 %v4428_v14  ;;  %v4410_v14 = vpack.c.bf16 %v773_v40, %v772_v63  ;;  %v4442_v29 = vpack.c.bf16 %v805_v2, %v804_v12  ;;  %v807_v13 = vld [vmem:[%s7675_s6 + $0x9d8] sm:$0xff]  ;;  %v4422_v12 = vpack.c.bf16 %v779_v49, %v778_v35  ;;  %v762_v2 = vld [vmem:[%s7675_s6 + $0x870] sm:$0xff]  ;;  %v865_v35 = vld [vmem:[%s7675_s6 + $0xba8] sm:$0xff] }
 0x232   :  { %1822 = vmatprep.mubr.f32.mxu0 %v356_v6  ;;  %4399 = vmatprep.subr.bf16.mxu1 %v4398_v53  ;;  %v789_v53 = vld [vmem:[%s7675_s6 + $0x948] sm:$0xff]  ;;  %v758_v6 = vld [vmem:[%s7675_s6 + $0x850] sm:$0xff]  ;;  %v847_v19 = vld [vmem:[%s7675_s6 + $0xb18] sm:$0xff]  ;;  %v360_v49 = vmul.f32 %v5689_v33, %v5347_v32 }
 0x233   :  { %4431 = vmatprep.subr.bf16.mxu0 %v4430_v4  ;;  %v4412_v4 = vpack.c.bf16 %v757_v55, %v756_v42  ;;  %v4444_v10 = vpack.c.bf16 %v789_v53, %v788_v39  ;;  %v795_v42 = vld [vmem:[%s7675_s6 + $0x978] sm:$0xff]  ;;  %v828_v55 = vld [vmem:[%s7675_s6 + $0xa80] sm:$0xff]  ;;  %v829_v39 = vld [vmem:[%s7675_s6 + $0xa88] sm:$0xff] }
 0x234   :  { %4401 = vmatpush3.bf16.msra.mxu1 %v4400_v11  ;;  %v759_v11 = vld [vmem:[%s7675_s6 + $0x858] sm:$0xff]  ;;  %v861_v53 = vld [vmem:[%s7675_s6 + $0xb88] sm:$0xff] }
 0x235   :  { %4433 = vmatpush3.bf16.msra.mxu0 %v4432_v46  ;;  %4403 = vmatprep.subr.bf16.mxu1 %v4402_v51  ;;  %v790_v46 = vld [vmem:[%s7675_s6 + $0x950] sm:$0xff]  ;;  %v4446_v51 = vpack.c.bf16 %v807_v13, %v806_v25  ;;  %v4416_v15 = vpack.c.bf16 %v759_v11, %v758_v6  ;;  %v4458_v25 = vpack.c.bf16 %v829_v39, %v828_v55  ;;  %v812_v13 = vld [vmem:[%s7675_s6 + $0xa00] sm:$0xff]  ;;  %v845_v6 = vld [vmem:[%s7675_s6 + $0xb08] sm:$0xff] }
 0x236   :  { %4435 = vmatprep.subr.bf16.mxu0 %v4434_v8  ;;  %v808_v8 = vld [vmem:[%s7675_s6 + $0x9e0] sm:$0xff]  ;;  %v4448_v1 = vpack.c.bf16 %v791_v34, %v790_v46  ;;  %v830_v11 = vld [vmem:[%s7675_s6 + $0xa90] sm:$0xff]  ;;  %v831_v46 = vld [vmem:[%s7675_s6 + $0xa98] sm:$0xff] }
 0x237   :  { %v862_v34 = vld [vmem:[%s7675_s6 + $0xb90] sm:$0xff]  ;;  %v849_v32 = vld [vmem:[%s7675_s6 + $0xb28] sm:$0xff]  ;;  %v867_v55 = vld [vmem:[%s7675_s6 + $0xbb8] sm:$0xff] }
 0x238   :  { %4405 = vmatpush3.bf16.msra.mxu1 %v4404_v37  ;;  %v761_v37 = vld [vmem:[%s7675_s6 + $0x868] sm:$0xff] }
 0x239   :  { %4437 = vmatpush3.bf16.msra.mxu0 %v4436_v38  ;;  %4407 = vmatprep.subr.bf16.mxu1 %v4406_v57  ;;  %v792_v38 = vld [vmem:[%s7675_s6 + $0x960] sm:$0xff]  ;;  %v4450_v57 = vpack.c.bf16 %v809_v43, %v808_v8  ;;  %v4420_v63 = vpack.c.bf16 %v761_v37, %v760_v20  ;;  %v814_v43 = vld [vmem:[%s7675_s6 + $0xa10] sm:$0xff]  ;;  %v4462_v20 = vpack.c.bf16 %v831_v46, %v830_v11  ;;  %v837_v46 = vld [vmem:[%s7675_s6 + $0xac8] sm:$0xff] }
 0x23a   :  { %4439 = vmatprep.subr.bf16.mxu0 %v4438_v47  ;;  %v810_v47 = vld [vmem:[%s7675_s6 + $0x9f0] sm:$0xff]  ;;  %v4452_v40 = vpack.c.bf16 %v793_v9, %v792_v38  ;;  %v832_v37 = vld [vmem:[%s7675_s6 + $0xaa0] sm:$0xff]  ;;  %v833_v38 = vld [vmem:[%s7675_s6 + $0xaa8] sm:$0xff]  ;;  %v4494_v9 = vpack.c.bf16 %v863_v3, %v862_v34 }
 0x23b   :  { %v836_v11 = vld [vmem:[%s7675_s6 + $0xac0] sm:$0xff]  ;;  %v869_v34 = vld [vmem:[%s7675_s6 + $0xbc8] sm:$0xff] }
 0x23c   :  { %4409 = vmatpush3.bf16.msra.mxu1 %v4408_v27  ;;  %v763_v27 = vld [vmem:[%s7675_s6 + $0x878] sm:$0xff] }
 0x23d   :  { %4441 = vmatpush3.bf16.msra.mxu0 %v4440_v62  ;;  %4411 = vmatprep.subr.bf16.mxu1 %v4410_v14  ;;  %v794_v62 = vld [vmem:[%s7675_s6 + $0x970] sm:$0xff]  ;;  %v4454_v14 = vpack.c.bf16 %v811_v45, %v810_v47  ;;  %v4424_v61 = vpack.c.bf16 %v763_v27, %v762_v2  ;;  %v816_v45 = vld [vmem:[%s7675_s6 + $0xa20] sm:$0xff] }
 0x23e   :  { %4443 = vmatprep.subr.bf16.mxu0 %v4442_v29  ;;  %v860_v29 = vld [vmem:[%s7675_s6 + $0xb80] sm:$0xff]  ;;  %v4456_v41 = vpack.c.bf16 %v795_v42, %v794_v62  ;;  %v834_v27 = vld [vmem:[%s7675_s6 + $0xab0] sm:$0xff]  ;;  %v835_v62 = vld [vmem:[%s7675_s6 + $0xab8] sm:$0xff] }
 0x23f   :  { %v866_v42 = vld [vmem:[%s7675_s6 + $0xbb0] sm:$0xff] }
 0x240   :  { %4413 = vmatpush3.bf16.msra.mxu1 %v4412_v4  ;;  %v813_v4 = vld [vmem:[%s7675_s6 + $0xa08] sm:$0xff] }
 0x241   :  { %4445 = vmatpush3.bf16.msra.mxu0 %v4444_v10  ;;  %4415 = vmatprep.subr.bf16.mxu1 %v4414_v0  ;;  %v4490_v10 = vpack.c.bf16 %v861_v53, %v860_v29  ;;  %v844_v0 = vld [vmem:[%s7675_s6 + $0xb00] sm:$0xff] }
 0x242   :  { %4447 = vmatprep.subr.bf16.mxu0 %v4446_v51  ;;  %v4460_v51 = vpack.c.bf16 %v813_v4, %v812_v13  ;;  %v4492_v8 = vpack.c.bf16 %v845_v6, %v844_v0  ;;  %v850_v13 = vld [vmem:[%s7675_s6 + $0xb30] sm:$0xff]  ;;  %v4502_v0 = vpack.c.bf16 %v867_v55, %v866_v42  ;;  %v851_v6 = vld [vmem:[%s7675_s6 + $0xb38] sm:$0xff]  ;;  %v840_v42 = vld [vmem:[%s7675_s6 + $0xae0] sm:$0xff] }
 0x243   :  { %v841_v55 = vld [vmem:[%s7675_s6 + $0xae8] sm:$0xff] }
 0x244   :  { %4417 = vmatpush3.bf16.msra.mxu1 %v4416_v15  ;;  %v815_v15 = vld [vmem:[%s7675_s6 + $0xa18] sm:$0xff] }
 0x245   :  { %4449 = vmatpush3.bf16.msra.mxu0 %v4448_v1  ;;  %4419 = vmatprep.subr.bf16.mxu1 %v4418_v50  ;;  %v846_v1 = vld [vmem:[%s7675_s6 + $0xb10] sm:$0xff]  ;;  %v355_v50 = vmul.f32 %v5689_v33, %v5317_v17  ;;  %v864_v17 = vld [vmem:[%s7675_s6 + $0xba0] sm:$0xff]  ;;  %v4464_v47 = vpack.c.bf16 %v815_v15, %v814_v43  ;;  %v4474_v43 = vpack.c.bf16 %v837_v46, %v836_v11 }
 0x246   :  { %4451 = vmatprep.subr.bf16.mxu0 %v4450_v57  ;;  %v358_v57 = vmul.f32 %v5689_v33, %v5335_v21  ;;  %v4496_v21 = vpack.c.bf16 %v847_v19, %v846_v1  ;;  %v4498_v2 = vpack.c.bf16 %v865_v35, %v864_v17  ;;  %v820_v15 = vld [vmem:[%s7675_s6 + $0xa40] sm:$0xff]  ;;  %v821_v1 = vld [vmem:[%s7675_s6 + $0xa48] sm:$0xff]  ;;  %v870_v17 = vld [vmem:[%s7675_s6 + $0xbd0] sm:$0xff] }
 0x247   :  { %v871_v35 = vld [vmem:[%s7675_s6 + $0xbd8] sm:$0xff] }
 0x248   :  { %4421 = vmatpush3.bf16.msra.mxu1 %v4420_v63  ;;  %v4466_v63 = vpack.c.bf16 %v833_v38, %v832_v37  ;;  %v853_v38 = vld [vmem:[%s7675_s6 + $0xb48] sm:$0xff] }
 0x249   :  { %4453 = vmatpush3.bf16.msra.mxu0 %v4452_v40  ;;  %4423 = vmatprep.subr.bf16.mxu1 %v4422_v12  ;;  %v817_v40 = vld [vmem:[%s7675_s6 + $0xa28] sm:$0xff]  ;;  %v848_v12 = vld [vmem:[%s7675_s6 + $0xb20] sm:$0xff] }
 0x24a   :  { %4455 = vmatprep.subr.bf16.mxu0 %v4454_v14  ;;  %v6557_v14 = vld [vmem:[%s7678_s5] ss:$0 sm:$0xff]  ;;  %v4468_v39 = vpack.c.bf16 %v817_v40, %v816_v45  ;;  %v4500_v53 = vpack.c.bf16 %v849_v32, %v848_v12  ;;  %v823_v40 = vld [vmem:[%s7675_s6 + $0xa58] sm:$0xff]  ;;  %v854_v12 = vld [vmem:[%s7675_s6 + $0xb50] sm:$0xff] }
 0x24c   :  { %4425 = vmatpush3.bf16.msra.mxu1 %v4424_v61  ;;  %v4470_v61 = vpack.c.bf16 %v835_v62, %v834_v27  ;;  %v4510_v27 = vpack.c.bf16 %v871_v35, %v870_v17  ;;  %v855_v62 = vld [vmem:[%s7675_s6 + $0xb58] sm:$0xff] }
 0x24d   :  { %4457 = vmatpush3.bf16.msra.mxu0 %v4456_v41  ;;  %4459 = vmatprep.subr.bf16.mxu1 %v4458_v25  ;;  %v818_v41 = vld [vmem:[%s7675_s6 + $0xa30] sm:$0xff]  ;;  %v819_v25 = vld [vmem:[%s7675_s6 + $0xa38] sm:$0xff] }
 0x24e   :  { %4491 = vmatprep.subr.bf16.mxu0 %v4490_v10  ;;  %v4472_v3 = vpack.c.bf16 %v819_v25, %v818_v41  ;;  %v4512_v41 = vpack.c.bf16 %v855_v62, %v854_v12  ;;  %v4482_v25 = vpack.c.bf16 %v841_v55, %v840_v42  ;;  %v859_v35 = vld [vmem:[%s7675_s6 + $0xb78] sm:$0xff]  ;;  %v876_v12 = vld [vmem:[%s7675_s6 + $0xc00] sm:$0xff]  ;;  %v909_v42 = vld [vmem:[%s7675_s6 + $0xd08] sm:$0xff] }
 0x24f   :  { %1753 = vmatmul.mubr.f32.vlgmr.msra.gmra.mrb[8].mxu1 %v353_v5  ;;  %v908_v62 = vld [vmem:[%s7675_s6 + $0xd00] sm:$0xff]  ;;  %v894_v55 = vld [vmem:[%s7675_s6 + $0xc90] sm:$0xff] }
 0x250   :  { %1823 = vmatmul.mubr.f32.vlgmr.msra.gmra.mrb[18].mxu0 %v355_v50  ;;  %4461 = vmatpush3.bf16.msra.mxu1 %v4460_v51  ;;  %v868_v51 = vld [vmem:[%s7675_s6 + $0xbc0] sm:$0xff] }
 0x251   :  { %1892 = vmatprep.mubr.f32.mxu1 %v358_v57  ;;  %4493 = vmatpush3.bf16.msra.mxu0 %v4492_v8  ;;  %v4504_v8 = vpack.c.bf16 %v851_v6, %v850_v13  ;;  %v852_v50 = vld [vmem:[%s7675_s6 + $0xb40] sm:$0xff]  ;;  %v4506_v37 = vpack.c.bf16 %v869_v34, %v868_v51  ;;  %v838_v57 = vld [vmem:[%s7675_s6 + $0xad0] sm:$0xff]  ;;  %v857_v51 = vld [vmem:[%s7675_s6 + $0xb68] sm:$0xff] }
 0x252   :  { %1962 = vmatprep.mubr.f32.mxu0 %v360_v49  ;;  %4463 = vmatprep.subr.bf16.mxu1 %v4462_v20  ;;  %v4476_v49 = vpack.c.bf16 %v821_v1, %v820_v15  ;;  %v4508_v45 = vpack.c.bf16 %v853_v38, %v852_v50  ;;  %v824_v13 = vld [vmem:[%s7675_s6 + $0xa60] sm:$0xff]  ;;  %v842_v34 = vld [vmem:[%s7675_s6 + $0xaf0] sm:$0xff] }
 0x253   :  { %4495 = vmatprep.subr.bf16.mxu0 %v4494_v9  ;;  %v839_v9 = vld [vmem:[%s7675_s6 + $0xad8] sm:$0xff]  ;;  %v858_v38 = vld [vmem:[%s7675_s6 + $0xb70] sm:$0xff] }
 0x254   :  { %4465 = vmatpush3.bf16.msra.mxu1 %v4464_v47 }
 0x255   :  { %4497 = vmatpush3.bf16.msra.mxu0 %v4496_v21  ;;  %4467 = vmatprep.subr.bf16.mxu1 %v4466_v63  ;;  %v4478_v21 = vpack.c.bf16 %v839_v9, %v838_v57  ;;  %v822_v63 = vld [vmem:[%s7675_s6 + $0xa50] sm:$0xff] }
 0x256   :  { %4499 = vmatprep.subr.bf16.mxu0 %v4498_v2 }
 0x258   :  { %4469 = vmatpush3.bf16.msra.mxu1 %v4468_v39  ;;  %v872_v39 = vld [vmem:[%s7675_s6 + $0xbe0] sm:$0xff] }
 0x259   :  { %4501 = vmatpush3.bf16.msra.mxu0 %v4500_v53  ;;  %4471 = vmatprep.subr.bf16.mxu1 %v4470_v61  ;;  %v4480_v53 = vpack.c.bf16 %v823_v40, %v822_v63  ;;  %v4520_v63 = vpack.c.bf16 %v859_v35, %v858_v38  ;;  %v913_v38 = vld [vmem:[%s7675_s6 + $0xd28] sm:$0xff]  ;;  %v930_v35 = vld [vmem:[%s7675_s6 + $0xdb0] sm:$0xff] }
 0x25a   :  { %4503 = vmatprep.subr.bf16.mxu0 %v4502_v0  ;;  %v856_v0 = vld [vmem:[%s7675_s6 + $0xb60] sm:$0xff] }
 0x25b   :  { %v4516_v1 = vpack.c.bf16 %v857_v51, %v856_v0  ;;  %v910_v0 = vld [vmem:[%s7675_s6 + $0xd10] sm:$0xff]  ;;  %v896_v51 = vld [vmem:[%s7675_s6 + $0xca0] sm:$0xff] }
 0x25c   :  { %4473 = vmatpush3.bf16.msra.mxu1 %v4472_v3  ;;  %v843_v3 = vld [vmem:[%s7675_s6 + $0xaf8] sm:$0xff] }
 0x25d   :  { %4505 = vmatpush3.bf16.msra.mxu0 %v4504_v8  ;;  %4475 = vmatprep.subr.bf16.mxu1 %v4474_v43  ;;  %v875_v8 = vld [vmem:[%s7675_s6 + $0xbf8] sm:$0xff]  ;;  %v4486_v50 = vpack.c.bf16 %v843_v3, %v842_v34  ;;  %v897_v34 = vld [vmem:[%s7675_s6 + $0xca8] sm:$0xff]  ;;  %v362_v3 = vmul.f32 %v5689_v33, %v5359_v26  ;;  %v880_v26 = vld [vmem:[%s7675_s6 + $0xc20] sm:$0xff] }
 0x25e   :  { %v468_v29 = vpop.f32.mrb[0].mxu0  ;;  %4507 = vmatprep.subr.bf16.mxu0 %v4506_v37  ;;  %v827_v37 = vld [vmem:[%s7675_s6 + $0xa78] sm:$0xff] }
 0x25f   :  { %v6575_v4 = vadd.f32 %v6557_v14, %v468_v29  ;;  %v4001_v10 = vpop.f32.mrb[1].mxu0  ;;  %v873_v29 = vld [vmem:[%s7675_s6 + $0xbe8] sm:$0xff] }
 0x260   :  { %4477 = vmatpush3.bf16.msra.mxu1 %v4476_v49  ;;  %v825_v10 = vld [vmem:[%s7675_s6 + $0xa68] sm:$0xff]  ;;  %v4514_v46 = vpack.c.bf16 %v873_v29, %v872_v39  ;;  %v892_v49 = vld [vmem:[%s7675_s6 + $0xc80] sm:$0xff]  ;;  %v895_v39 = vld [vmem:[%s7675_s6 + $0xc98] sm:$0xff] }
 0x261   :  { %2801 = vrot.lane.b32.xlu1 %v6575_v4, %s4841_s30  ;;  %4509 = vmatpush3.bf16.msra.mxu0 %v4508_v45  ;;  %v4484_v43 = vpack.c.bf16 %v825_v10, %v824_v13  ;;  %v925_v45 = vld [vmem:[%s7675_s6 + $0xd88] sm:$0xff]  ;;  %v878_v13 = vld [vmem:[%s7675_s6 + $0xc10] sm:$0xff]  ;;  %v879_v10 = vld [vmem:[%s7675_s6 + $0xc18] sm:$0xff] }
 0x262   :  { %v473_v5 = vpop.f32.mrb[2].mxu0  ;;  %4479 = vmatprep.subr.bf16.mxu1 %v4478_v21  ;;  %4511 = vmatprep.subr.bf16.mxu0 %v4510_v27 }
 0x263   :  { %v6604_v20 = vadd.f32 %v6557_v14, %v473_v5  ;;  %v4004_v19 = vpop.f32.mrb[3].mxu0  ;;  %v874_v5 = vld [vmem:[%s7675_s6 + $0xbf0] sm:$0xff] }
 0x264   :  { %4481 = vmatpush3.bf16.msra.mxu1 %v4480_v53  ;;  %v826_v19 = vld [vmem:[%s7675_s6 + $0xa70] sm:$0xff]  ;;  %v4518_v17 = vpack.c.bf16 %v875_v8, %v874_v5  ;;  %v929_v8 = vld [vmem:[%s7675_s6 + $0xda8] sm:$0xff] }
 0x265   :  { %2803 = vrot.lane.b32.xlu1 %v6604_v20, %s4841_s30  ;;  %4513 = vmatpush3.bf16.msra.mxu0 %v4512_v41  ;;  %v4488_v21 = vpack.c.bf16 %v827_v37, %v826_v19  ;;  %v926_v53 = vld [vmem:[%s7675_s6 + $0xd90] sm:$0xff]  ;;  %v357_v41 = vmul.f32 %v5689_v33, %v5329_v18  ;;  %v911_v18 = vld [vmem:[%s7675_s6 + $0xd18] sm:$0xff]  ;;  %v881_v19 = vld [vmem:[%s7675_s6 + $0xc28] sm:$0xff] }
 0x266   :  { %v478_v47 = vpop.f32.mrb[4].mxu0  ;;  %4483 = vmatprep.subr.bf16.mxu1 %v4482_v25  ;;  %4515 = vmatprep.subr.bf16.mxu0 %v4514_v46  ;;  %v4556_v25 = vpack.c.bf16 %v909_v42, %v908_v62  ;;  %v4526_v46 = vpack.c.bf16 %v895_v39, %v894_v55  ;;  %v912_v37 = vld [vmem:[%s7675_s6 + $0xd20] sm:$0xff]  ;;  %v901_v62 = vld [vmem:[%s7675_s6 + $0xcc8] sm:$0xff] }
 0x267   :  { %v6633_v32 = vadd.f32 %v6557_v14, %v478_v47  ;;  %v4007_v2 = vpop.f32.mrb[5].mxu0  ;;  %v893_v47 = vld [vmem:[%s7675_s6 + $0xc88] sm:$0xff]  ;;  %v932_v42 = vld [vmem:[%s7675_s6 + $0xdc0] sm:$0xff] }
 0x268   :  { %4485 = vmatpush3.bf16.msra.mxu1 %v4484_v43  ;;  %v4522_v40 = vpack.c.bf16 %v893_v47, %v892_v49  ;;  %v877_v2 = vld [vmem:[%s7675_s6 + $0xc08] sm:$0xff]  ;;  %v364_v43 = vmul.f32 %v5689_v33, %v5371_v30  ;;  %v931_v49 = vld [vmem:[%s7675_s6 + $0xdb8] sm:$0xff]  ;;  %v4532_v47 = vpack.c.bf16 %v881_v19, %v880_v26  ;;  %v936_v26 = vld [vmem:[%s7675_s6 + $0xde0] sm:$0xff] }
 0x269   :  { %2805 = vrot.lane.b32.xlu1 %v6633_v32, %s4841_s30  ;;  %4517 = vmatpush3.bf16.msra.mxu0 %v4516_v1  ;;  %v4524_v29 = vpack.c.bf16 %v877_v2, %v876_v12  ;;  %v4560_v1 = vpack.c.bf16 %v911_v18, %v910_v0  ;;  %v4566_v12 = vpack.c.bf16 %v931_v49, %v930_v35  ;;  %v915_v2 = vld [vmem:[%s7675_s6 + $0xd38] sm:$0xff]  ;;  %v933_v55 = vld [vmem:[%s7675_s6 + $0xdc8] sm:$0xff]  ;;  %v902_v0 = vld [vmem:[%s7675_s6 + $0xcd0] sm:$0xff] }
 0x26a   :  { %v483_v61 = vpop.f32.mrb[6].mxu0  ;;  %4487 = vmatprep.subr.bf16.mxu1 %v4486_v50  ;;  %4519 = vmatprep.subr.bf16.mxu0 %v4518_v17  ;;  %v4530_v50 = vpack.c.bf16 %v897_v34, %v896_v51  ;;  %v899_v17 = vld [vmem:[%s7675_s6 + $0xcb8] sm:$0xff]  ;;  %v937_v19 = vld [vmem:[%s7675_s6 + $0xde8] sm:$0xff]  ;;  %v920_v35 = vld [vmem:[%s7675_s6 + $0xd60] sm:$0xff] }
 0x26b   :  { %v6662_v6 = vadd.f32 %v6557_v14, %v483_v61  ;;  %v4010_v11 = vpop.f32.mrb[7].mxu0  ;;  %v927_v61 = vld [vmem:[%s7675_s6 + $0xd98] sm:$0xff]  ;;  %v4578_v49 = vpack.c.bf16 %v937_v19, %v936_v26  ;;  %v974_v26 = vld [vmem:[%s7675_s6 + $0xf10] sm:$0xff]  ;;  %v363_v19 = vmul.f32 %v5689_v33, %v5365_v28  ;;  %v992_v28 = vld [vmem:[%s7675_s6 + $0xfa0] sm:$0xff] }
 0x26c   :  { %4489 = vmatpush3.bf16.msra.mxu1 %v4488_v21  ;;  %v359_v11 = vmul.f32 %v5689_v33, %v5341_v16  ;;  %v4558_v5 = vpack.c.bf16 %v927_v61, %v926_v53  ;;  %v928_v16 = vld [vmem:[%s7675_s6 + $0xda0] sm:$0xff]  ;;  %v882_v21 = vld [vmem:[%s7675_s6 + $0xc30] sm:$0xff]  ;;  %v935_v18 = vld [vmem:[%s7675_s6 + $0xdd8] sm:$0xff] }
 0x26d   :  { %4521 = vmatpush3.bf16.msra.mxu0 %v4520_v63  ;;  %4523 = vmatprep.subr.bf16.mxu1 %v4522_v40  ;;  %v4562_v30 = vpack.c.bf16 %v929_v8, %v928_v16  ;;  %v883_v63 = vld [vmem:[%s7675_s6 + $0xc38] sm:$0xff]  ;;  %v914_v40 = vld [vmem:[%s7675_s6 + $0xd30] sm:$0xff]  ;;  %v884_v61 = vld [vmem:[%s7675_s6 + $0xc40] sm:$0xff] }
 0x26e   :  { %v488_v15 = vpop.f32.mrb[8].mxu0  ;;  %v4536_v39 = vpack.c.bf16 %v883_v63, %v882_v21  ;;  %v887_v16 = vld [vmem:[%s7675_s6 + $0xc58] sm:$0xff]  ;;  %v918_v8 = vld [vmem:[%s7675_s6 + $0xd50] sm:$0xff] }
 0x26f   :  { %v6689_v57 = vadd.f32 %v6557_v14, %v488_v15  ;;  %v4013_v9 = vpop.f32.mrb[9].mxu0  ;;  %v924_v14 = vld [vmem:[%s7675_s6 + $0xd80] sm:$0xff]  ;;  %1893 = vmatmul.mubr.f32.vlgmr.msra.gmra.mrb[10].mxu1 %v357_v41  ;;  %v4528_v15 = vpack.c.bf16 %v879_v10, %v878_v13  ;;  %v885_v41 = vld [vmem:[%s7675_s6 + $0xc48] sm:$0xff]  ;;  %v4570_v13 = vpack.c.bf16 %v933_v55, %v932_v42  ;;  %v938_v21 = vld [vmem:[%s7675_s6 + $0xdf0] sm:$0xff] }
 0x270   :  { %v4554_v27 = vpack.c.bf16 %v925_v45, %v924_v14  ;;  %1963 = vmatmul.mubr.f32.vlgmr.msra.gmra.mrb[20].mxu0 %v359_v11  ;;  %4525 = vmatpush3.bf16.msra.mxu1 %v4524_v29  ;;  %v898_v9 = vld [vmem:[%s7675_s6 + $0xcb0] sm:$0xff]  ;;  %v4564_v14 = vpack.c.bf16 %v913_v38, %v912_v37  ;;  %v4568_v29 = vpack.c.bf16 %v915_v2, %v914_v40  ;;  %v917_v10 = vld [vmem:[%s7675_s6 + $0xd48] sm:$0xff]  ;;  %v903_v11 = vld [vmem:[%s7675_s6 + $0xcd8] sm:$0xff] }
 0x271   :  { %2809 = vrot.lane.b32.xlu1 %v6689_v57, %s4841_s30  ;;  %2032 = vmatprep.mubr.f32.mxu1 %v362_v3  ;;  %v4534_v45 = vpack.c.bf16 %v899_v17, %v898_v9  ;;  %v4540_v51 = vpack.c.bf16 %v885_v41, %v884_v61  ;;  %v4542_v3 = vpack.c.bf16 %v903_v11, %v902_v0  ;;  %v888_v9 = vld [vmem:[%s7675_s6 + $0xc60] sm:$0xff]  ;;  %v889_v17 = vld [vmem:[%s7675_s6 + $0xc68] sm:$0xff]  ;;  %v939_v63 = vld [vmem:[%s7675_s6 + $0xdf8] sm:$0xff] }
 0x272   :  { %4555 = vmatprep.subr.bf16.mxu0 %v4554_v27  ;;  %2102 = vmatprep.mubr.f32.mxu0 %v364_v43  ;;  %v900_v27 = vld [vmem:[%s7675_s6 + $0xcc0] sm:$0xff]  ;;  %v4548_v40 = vpack.c.bf16 %v889_v17, %v888_v9  ;;  %v922_v42 = vld [vmem:[%s7675_s6 + $0xd70] sm:$0xff]  ;;  %v4582_v55 = vpack.c.bf16 %v939_v63, %v938_v21  ;;  %v989_v41 = vld [vmem:[%s7675_s6 + $0xf88] sm:$0xff]  ;;  %v366_v9 = vmul.f32 %v5689_v33, %v5404_v36 }
 0x273   :  { %4557 = vmatpush3.bf16.msra.mxu0 %v4556_v25  ;;  %4527 = vmatprep.subr.bf16.mxu1 %v4526_v46  ;;  %v4538_v53 = vpack.c.bf16 %v901_v62, %v900_v27  ;;  %v916_v25 = vld [vmem:[%s7675_s6 + $0xd40] sm:$0xff]  ;;  %v934_v46 = vld [vmem:[%s7675_s6 + $0xdd0] sm:$0xff]  ;;  %v891_v62 = vld [vmem:[%s7675_s6 + $0xc78] sm:$0xff] }
 0x274   :  { %4559 = vmatprep.subr.bf16.mxu0 %v4558_v5  ;;  %4529 = vmatpush3.bf16.msra.mxu1 %v4528_v15  ;;  %v4572_v34 = vpack.c.bf16 %v917_v10, %v916_v25  ;;  %v886_v5 = vld [vmem:[%s7675_s6 + $0xc50] sm:$0xff]  ;;  %v4574_v43 = vpack.c.bf16 %v935_v18, %v934_v46  ;;  %v919_v15 = vld [vmem:[%s7675_s6 + $0xd58] sm:$0xff]  ;;  %v988_v61 = vld [vmem:[%s7675_s6 + $0xf80] sm:$0xff] }
 0x275   :  { %4531 = vmatprep.subr.bf16.mxu1 %v4530_v50  ;;  %v905_v50 = vld [vmem:[%s7675_s6 + $0xce8] sm:$0xff]  ;;  %v4544_v37 = vpack.c.bf16 %v887_v16, %v886_v5  ;;  %v890_v27 = vld [vmem:[%s7675_s6 + $0xc70] sm:$0xff]  ;;  %v940_v0 = vld [vmem:[%s7675_s6 + $0xe00] sm:$0xff]  ;;  %v4618_v46 = vpack.c.bf16 %v989_v41, %v988_v61 }
 0x276   :  { %v4552_v25 = vpack.c.bf16 %v891_v62, %v890_v27  ;;  %v941_v11 = vld [vmem:[%s7675_s6 + $0xe08] sm:$0xff]  ;;  %v972_v18 = vld [vmem:[%s7675_s6 + $0xf00] sm:$0xff]  ;;  %v990_v16 = vld [vmem:[%s7675_s6 + $0xf90] sm:$0xff] }
 0x277   :  { %4561 = vmatpush3.bf16.msra.mxu0 %v4560_v1  ;;  %v904_v1 = vld [vmem:[%s7675_s6 + $0xce0] sm:$0xff]  ;;  %v4588_v5 = vpack.c.bf16 %v941_v11, %v940_v0  ;;  %v945_v21 = vld [vmem:[%s7675_s6 + $0xe28] sm:$0xff]  ;;  %v994_v27 = vld [vmem:[%s7675_s6 + $0xfb0] sm:$0xff] }
 0x278   :  { %4563 = vmatprep.subr.bf16.mxu0 %v4562_v30  ;;  %4533 = vmatpush3.bf16.msra.mxu1 %v4532_v47  ;;  %v4576_v30 = vpack.c.bf16 %v919_v15, %v918_v8  ;;  %v4546_v38 = vpack.c.bf16 %v905_v50, %v904_v1  ;;  %v921_v47 = vld [vmem:[%s7675_s6 + $0xd68] sm:$0xff]  ;;  %v991_v8 = vld [vmem:[%s7675_s6 + $0xf98] sm:$0xff]  ;;  %v942_v1 = vld [vmem:[%s7675_s6 + $0xe10] sm:$0xff] }
 0x279   :  { %4535 = vmatprep.subr.bf16.mxu1 %v4534_v45  ;;  %v907_v45 = vld [vmem:[%s7675_s6 + $0xcf8] sm:$0xff]  ;;  %v4622_v17 = vpack.c.bf16 %v991_v8, %v990_v16  ;;  %v944_v36 = vld [vmem:[%s7675_s6 + $0xe20] sm:$0xff]  ;;  %v978_v61 = vld [vmem:[%s7675_s6 + $0xf30] sm:$0xff] }
 0x27a   :  { %v943_v50 = vld [vmem:[%s7675_s6 + $0xe18] sm:$0xff]  ;;  %v976_v63 = vld [vmem:[%s7675_s6 + $0xf20] sm:$0xff]  ;;  %v997_v11 = vld [vmem:[%s7675_s6 + $0xfc8] sm:$0xff] }
 0x27b   :  { %4565 = vmatpush3.bf16.msra.mxu0 %v4564_v14  ;;  %v906_v14 = vld [vmem:[%s7675_s6 + $0xcf0] sm:$0xff]  ;;  %v995_v62 = vld [vmem:[%s7675_s6 + $0xfb8] sm:$0xff]  ;;  %v996_v0 = vld [vmem:[%s7675_s6 + $0xfc0] sm:$0xff] }
 0x27c   :  { %4567 = vmatprep.subr.bf16.mxu0 %v4566_v12  ;;  %4537 = vmatpush3.bf16.msra.mxu1 %v4536_v39  ;;  %v4580_v12 = vpack.c.bf16 %v921_v47, %v920_v35  ;;  %v4550_v2 = vpack.c.bf16 %v907_v45, %v906_v14  ;;  %v923_v39 = vld [vmem:[%s7675_s6 + $0xd78] sm:$0xff]  ;;  %v993_v35 = vld [vmem:[%s7675_s6 + $0xfa8] sm:$0xff]  ;;  %v4592_v47 = vpack.c.bf16 %v943_v50, %v942_v1  ;;  %v998_v1 = vld [vmem:[%s7675_s6 + $0xfd0] sm:$0xff] }
 0x27d   :  { %4539 = vmatprep.subr.bf16.mxu1 %v4538_v53  ;;  %v957_v53 = vld [vmem:[%s7675_s6 + $0xe88] sm:$0xff]  ;;  %v4630_v41 = vpack.c.bf16 %v995_v62, %v994_v27  ;;  %v4634_v16 = vpack.c.bf16 %v997_v11, %v996_v0  ;;  %v999_v50 = vld [vmem:[%s7675_s6 + $0xfd8] sm:$0xff]  ;;  %v970_v62 = vld [vmem:[%s7675_s6 + $0xef0] sm:$0xff] }
 0x27e   :  { %v981_v8 = vld [vmem:[%s7675_s6 + $0xf48] sm:$0xff]  ;;  %v954_v11 = vld [vmem:[%s7675_s6 + $0xe70] sm:$0xff] }
 0x27f   :  { %4569 = vmatpush3.bf16.msra.mxu0 %v4568_v29  ;;  %v956_v29 = vld [vmem:[%s7675_s6 + $0xe80] sm:$0xff]  ;;  %v985_v27 = vld [vmem:[%s7675_s6 + $0xf68] sm:$0xff] }
 0x280   :  { %4571 = vmatprep.subr.bf16.mxu0 %v4570_v13  ;;  %4541 = vmatpush3.bf16.msra.mxu1 %v4540_v51  ;;  %v4584_v13 = vpack.c.bf16 %v923_v39, %v922_v42  ;;  %v4586_v10 = vpack.c.bf16 %v957_v53, %v956_v29  ;;  %v973_v51 = vld [vmem:[%s7675_s6 + $0xf08] sm:$0xff]  ;;  %v4596_v42 = vpack.c.bf16 %v945_v21, %v944_v36  ;;  %v946_v29 = vld [vmem:[%s7675_s6 + $0xe30] sm:$0xff]  ;;  %v947_v53 = vld [vmem:[%s7675_s6 + $0xe38] sm:$0xff] }
 0x281   :  { %4543 = vmatprep.subr.bf16.mxu1 %v4542_v3  ;;  %v959_v3 = vld [vmem:[%s7675_s6 + $0xe98] sm:$0xff]  ;;  %v4620_v15 = vpack.c.bf16 %v973_v51, %v972_v18  ;;  %v952_v21 = vld [vmem:[%s7675_s6 + $0xe60] sm:$0xff] }
 0x283   :  { %4573 = vmatpush3.bf16.msra.mxu0 %v4572_v34  ;;  %v958_v34 = vld [vmem:[%s7675_s6 + $0xe90] sm:$0xff] }
 0x284   :  { %4575 = vmatprep.subr.bf16.mxu0 %v4574_v43  ;;  %4545 = vmatpush3.bf16.msra.mxu1 %v4544_v37  ;;  %v361_v43 = vmul.f32 %v5689_v33, %v5353_v23  ;;  %v4590_v37 = vpack.c.bf16 %v959_v3, %v958_v34  ;;  %v975_v23 = vld [vmem:[%s7675_s6 + $0xf18] sm:$0xff]  ;;  %v948_v34 = vld [vmem:[%s7675_s6 + $0xe40] sm:$0xff]  ;;  %v949_v3 = vld [vmem:[%s7675_s6 + $0xe48] sm:$0xff] }
 0x285   :  { %4547 = vmatprep.subr.bf16.mxu1 %v4546_v38  ;;  %v961_v38 = vld [vmem:[%s7675_s6 + $0xea8] sm:$0xff]  ;;  %v4624_v14 = vpack.c.bf16 %v975_v23, %v974_v26  ;;  %v4604_v26 = vpack.c.bf16 %v949_v3, %v948_v34  ;;  %v950_v23 = vld [vmem:[%s7675_s6 + $0xe50] sm:$0xff]  ;;  %v987_v3 = vld [vmem:[%s7675_s6 + $0xf78] sm:$0xff] }
 0x287   :  { %4577 = vmatpush3.bf16.msra.mxu0 %v4576_v30  ;;  %v960_v30 = vld [vmem:[%s7675_s6 + $0xea0] sm:$0xff] }
 0x288   :  { %4579 = vmatprep.subr.bf16.mxu0 %v4578_v49  ;;  %4549 = vmatpush3.bf16.msra.mxu1 %v4548_v40  ;;  %v368_v49 = vmul.f32 %v5689_v33, %v5434_v48  ;;  %v4594_v45 = vpack.c.bf16 %v961_v38, %v960_v30  ;;  %v4626_v48 = vpack.c.bf16 %v993_v35, %v992_v28  ;;  %v977_v40 = vld [vmem:[%s7675_s6 + $0xf28] sm:$0xff]  ;;  %v951_v30 = vld [vmem:[%s7675_s6 + $0xe58] sm:$0xff]  ;;  %v982_v38 = vld [vmem:[%s7675_s6 + $0xf50] sm:$0xff] }
 0x289   :  { %4551 = vmatprep.subr.bf16.mxu1 %v4550_v2  ;;  %v963_v2 = vld [vmem:[%s7675_s6 + $0xeb8] sm:$0xff]  ;;  %v968_v28 = vld [vmem:[%s7675_s6 + $0xee0] sm:$0xff]  ;;  %v969_v35 = vld [vmem:[%s7675_s6 + $0xee8] sm:$0xff] }
 0x28a   :  { %v4610_v36 = vpack.c.bf16 %v969_v35, %v968_v28  ;;  %v1054_v35 = vld [vmem:[%s7675_s6 + $0x1190] sm:$0xff] }
 0x28b   :  { %4581 = vmatpush3.bf16.msra.mxu0 %v4580_v12  ;;  %v962_v12 = vld [vmem:[%s7675_s6 + $0xeb0] sm:$0xff] }
 0x28c   :  { %4583 = vmatprep.subr.bf16.mxu0 %v4582_v55  ;;  %4553 = vmatpush3.bf16.msra.mxu1 %v4552_v25  ;;  %v4628_v55 = vpack.c.bf16 %v977_v40, %v976_v63  ;;  %v4598_v39 = vpack.c.bf16 %v963_v2, %v962_v12  ;;  %v979_v25 = vld [vmem:[%s7675_s6 + $0xf38] sm:$0xff]  ;;  %v953_v63 = vld [vmem:[%s7675_s6 + $0xe68] sm:$0xff] }
 0x28d   :  { %4587 = vmatprep.subr.bf16.mxu1 %v4586_v10  ;;  %v965_v10 = vld [vmem:[%s7675_s6 + $0xec8] sm:$0xff]  ;;  %v4632_v18 = vpack.c.bf16 %v979_v25, %v978_v61  ;;  %v1003_v61 = vld [vmem:[%s7675_s6 + $0xff8] sm:$0xff] }
 0x28f   :  { %4585 = vmatpush3.bf16.msra.mxu0 %v4584_v13  ;;  %2033 = vmatmul.mubr.f32.vlgmr.msra.gmra.mrb[12].mxu1 %v361_v43  ;;  %v964_v13 = vld [vmem:[%s7675_s6 + $0xec0] sm:$0xff]  ;;  %v966_v43 = vld [vmem:[%s7675_s6 + $0xed0] sm:$0xff] }
 0x290   :  { %4619 = vmatprep.subr.bf16.mxu0 %v4618_v46  ;;  %4589 = vmatpush3.bf16.msra.mxu1 %v4588_v5  ;;  %v4600_v46 = vpack.c.bf16 %v947_v53, %v946_v29  ;;  %v4602_v51 = vpack.c.bf16 %v965_v10, %v964_v13  ;;  %v980_v5 = vld [vmem:[%s7675_s6 + $0xf40] sm:$0xff]  ;;  %v1002_v53 = vld [vmem:[%s7675_s6 + $0xff0] sm:$0xff]  ;;  %v4612_v13 = vpack.c.bf16 %v953_v63, %v952_v21 }
 0x291   :  { %2172 = vmatprep.mubr.f32.mxu1 %v366_v9  ;;  %4591 = vmatprep.subr.bf16.mxu1 %v4590_v37  ;;  %v4638_v9 = vpack.c.bf16 %v999_v50, %v998_v1  ;;  %v4646_v34 = vpack.c.bf16 %v1003_v61, %v1002_v53  ;;  %v1038_v21 = vld [vmem:[%s7675_s6 + $0x1110] sm:$0xff]  ;;  %v367_v63 = vmul.f32 %v5689_v33, %v5419_v56  ;;  %v1056_v56 = vld [vmem:[%s7675_s6 + $0x11a0] sm:$0xff]  ;;  %v1009_v53 = vld [vmem:[%s7675_s6 + $0x1028] sm:$0xff] }
 0x292   :  { %2103 = vmatmul.mubr.f32.vlgmr.msra.gmra.mrb[22].mxu0 %v363_v19  ;;  %v4636_v19 = vpack.c.bf16 %v981_v8, %v980_v5  ;;  %v1020_v5 = vld [vmem:[%s7675_s6 + $0x1080] sm:$0xff] }
 0x293   :  { %4621 = vmatpush3.bf16.msra.mxu0 %v4620_v15  ;;  %2242 = vmatprep.mubr.f32.mxu0 %v368_v49  ;;  %v967_v15 = vld [vmem:[%s7675_s6 + $0xed8] sm:$0xff]  ;;  %v1000_v49 = vld [vmem:[%s7675_s6 + $0xfe0] sm:$0xff] }
 0x294   :  { %4623 = vmatprep.subr.bf16.mxu0 %v4622_v17  ;;  %4593 = vmatpush3.bf16.msra.mxu1 %v4592_v47  ;;  %v4606_v37 = vpack.c.bf16 %v967_v15, %v966_v43  ;;  %v983_v17 = vld [vmem:[%s7675_s6 + $0xf58] sm:$0xff]  ;;  %v1001_v47 = vld [vmem:[%s7675_s6 + $0xfe8] sm:$0xff]  ;;  %v1052_v8 = vld [vmem:[%s7675_s6 + $0x1180] sm:$0xff] }
 0x295   :  { %4595 = vmatprep.subr.bf16.mxu1 %v4594_v45  ;;  %v4640_v45 = vpack.c.bf16 %v983_v17, %v982_v38  ;;  %v4642_v2 = vpack.c.bf16 %v1001_v47, %v1000_v49  ;;  %v1053_v43 = vld [vmem:[%s7675_s6 + $0x1188] sm:$0xff]  ;;  %v1023_v17 = vld [vmem:[%s7675_s6 + $0x1098] sm:$0xff]  ;;  %v365_v47 = vmul.f32 %v5689_v33, %v5386_v58  ;;  %v1040_v61 = vld [vmem:[%s7675_s6 + $0x1120] sm:$0xff] }
 0x296   :  { %v1037_v38 = vld [vmem:[%s7675_s6 + $0x1108] sm:$0xff]  ;;  %v1055_v49 = vld [vmem:[%s7675_s6 + $0x1198] sm:$0xff] }
 0x297   :  { %4625 = vmatpush3.bf16.msra.mxu0 %v4624_v14  ;;  %v4608_v14 = vpack.c.bf16 %v951_v30, %v950_v23  ;;  %v4682_v23 = vpack.c.bf16 %v1053_v43, %v1052_v8  ;;  %v1036_v30 = vld [vmem:[%s7675_s6 + $0x1100] sm:$0xff]  ;;  %v1039_v58 = vld [vmem:[%s7675_s6 + $0x1118] sm:$0xff]  ;;  %v1029_v43 = vld [vmem:[%s7675_s6 + $0x10c8] sm:$0xff] }
 0x298   :  { %4627 = vmatprep.subr.bf16.mxu0 %v4626_v48  ;;  %4597 = vmatpush3.bf16.msra.mxu1 %v4596_v42  ;;  %v984_v48 = vld [vmem:[%s7675_s6 + $0xf60] sm:$0xff]  ;;  %v971_v42 = vld [vmem:[%s7675_s6 + $0xef8] sm:$0xff] }
 0x299   :  { %4599 = vmatprep.subr.bf16.mxu1 %v4598_v39  ;;  %v4644_v10 = vpack.c.bf16 %v985_v27, %v984_v48  ;;  %v4614_v0 = vpack.c.bf16 %v971_v42, %v970_v62  ;;  %v4686_v27 = vpack.c.bf16 %v1055_v49, %v1054_v35  ;;  %v1057_v62 = vld [vmem:[%s7675_s6 + $0x11a8] sm:$0xff]  ;;  %v372_v42 = vmul.f32 %v5689_v33, %v5473_v60  ;;  %v1028_v8 = vld [vmem:[%s7675_s6 + $0x10c0] sm:$0xff]  ;;  %v1031_v35 = vld [vmem:[%s7675_s6 + $0x10d8] sm:$0xff] }
 0x29a   :  { %v4690_v60 = vpack.c.bf16 %v1057_v62, %v1056_v56  ;;  %v1062_v49 = vld [vmem:[%s7675_s6 + $0x11d0] sm:$0xff]  ;;  %v1065_v56 = vld [vmem:[%s7675_s6 + $0x11e8] sm:$0xff] }
 0x29b   :  { %4629 = vmatpush3.bf16.msra.mxu0 %v4628_v55  ;;  %v3240_v55 = vld [vmem:[%s7679_s7] ss:$0 sm:$0xff] }
 0x29c   :  { %4631 = vmatprep.subr.bf16.mxu0 %v4630_v41  ;;  %4601 = vmatpush3.bf16.msra.mxu1 %v4600_v46  ;;  %v955_v46 = vld [vmem:[%s7675_s6 + $0xe78] sm:$0xff] }
 0x29d   :  { %4603 = vmatprep.subr.bf16.mxu1 %v4602_v51  ;;  %v4616_v1 = vpack.c.bf16 %v955_v46, %v954_v11 }
 0x29f   :  { %4633 = vmatpush3.bf16.msra.mxu0 %v4632_v18  ;;  %v986_v18 = vld [vmem:[%s7675_s6 + $0xf70] sm:$0xff] }
 0x2a0   :  { %4635 = vmatprep.subr.bf16.mxu0 %v4634_v16  ;;  %4605 = vmatpush3.bf16.msra.mxu1 %v4604_v26  ;;  %v1021_v16 = vld [vmem:[%s7675_s6 + $0x1088] sm:$0xff]  ;;  %v4648_v50 = vpack.c.bf16 %v987_v3, %v986_v18  ;;  %v1042_v3 = vld [vmem:[%s7675_s6 + $0x1130] sm:$0xff] }
 0x2a1   :  { %4607 = vmatprep.subr.bf16.mxu1 %v4606_v37  ;;  %v4650_v26 = vpack.c.bf16 %v1021_v16, %v1020_v5  ;;  %v1005_v37 = vld [vmem:[%s7675_s6 + $0x1008] sm:$0xff]  ;;  %v1043_v16 = vld [vmem:[%s7675_s6 + $0x1138] sm:$0xff] }
 0x2a2   :  { %v3312_v40 = vpop.f32.mrb[0].mxu1  ;;  %v3347_v12 = vpop.f32.mrb[10].mxu0 }
 0x2a3   :  { %4637 = vmatpush3.bf16.msra.mxu0 %v4636_v19  ;;  %v3313_v39 = vpop.f32.mrb[1].mxu1  ;;  %v3348_v29 = vpop.f32.mrb[11].mxu0  ;;  %v1004_v19 = vld [vmem:[%s7675_s6 + $0x1000] sm:$0xff] }
 0x2a4   :  { %4639 = vmatprep.subr.bf16.mxu0 %v4638_v9  ;;  %v3314_v41 = vadd.f32 %v3313_v39, %v3312_v40  ;;  %v3349_v25 = vadd.f32 %v3348_v29, %v3347_v12  ;;  %4609 = vmatpush3.bf16.msra.mxu1 %v4608_v14  ;;  %v1022_v9 = vld [vmem:[%s7675_s6 + $0x1090] sm:$0xff]  ;;  %v4652_v28 = vpack.c.bf16 %v1005_v37, %v1004_v19  ;;  %v1024_v40 = vld [vmem:[%s7675_s6 + $0x10a0] sm:$0xff]  ;;  %v1025_v12 = vld [vmem:[%s7675_s6 + $0x10a8] sm:$0xff] }
 0x2a5   :  { %4611 = vmatprep.subr.bf16.mxu1 %v4610_v36  ;;  %v4684_v14 = vpack.c.bf16 %v1037_v38, %v1036_v30  ;;  %v1007_v36 = vld [vmem:[%s7675_s6 + $0x1018] sm:$0xff]  ;;  %v4654_v48 = vpack.c.bf16 %v1023_v17, %v1022_v9  ;;  %v4688_v39 = vpack.c.bf16 %v1039_v58, %v1038_v21  ;;  %v4658_v29 = vpack.c.bf16 %v1025_v12, %v1024_v40  ;;  %v1013_v30 = vld [vmem:[%s7675_s6 + $0x1048] sm:$0xff]  ;;  %v1044_v38 = vld [vmem:[%s7675_s6 + $0x1140] sm:$0xff] }
 0x2a6   :  { %v1195_v51 = vadd.f32 %v3314_v41, %v3240_v55  ;;  %v1041_v41 = vld [vmem:[%s7675_s6 + $0x1128] sm:$0xff]  ;;  %v4696_v19 = vpack.c.bf16 %v1043_v16, %v1042_v3  ;;  %v4666_v37 = vpack.c.bf16 %v1029_v43, %v1028_v8  ;;  %v1014_v21 = vld [vmem:[%s7675_s6 + $0x1050] sm:$0xff]  ;;  %v1047_v40 = vld [vmem:[%s7675_s6 + $0x1158] sm:$0xff] }
 0x2a7   :  { %4641 = vmatpush3.bf16.msra.mxu0 %v4640_v45  ;;  %v1006_v45 = vld [vmem:[%s7675_s6 + $0x1010] sm:$0xff]  ;;  %v4692_v46 = vpack.c.bf16 %v1041_v41, %v1040_v61  ;;  %v1045_v17 = vld [vmem:[%s7675_s6 + $0x1148] sm:$0xff]  ;;  %v1032_v12 = vld [vmem:[%s7675_s6 + $0x10e0] sm:$0xff] }
 0x2a8   :  { %4643 = vmatprep.subr.bf16.mxu0 %v4642_v2  ;;  %v7111_v15 = vadd.f32 %v3349_v25, %v1195_v51  ;;  %4613 = vmatpush3.bf16.msra.mxu1 %v4612_v13  ;;  %v370_v2 = vmul.f32 %v5689_v33, %v5461_v44  ;;  %v4656_v55 = vpack.c.bf16 %v1007_v36, %v1006_v45  ;;  %v1008_v44 = vld [vmem:[%s7675_s6 + $0x1020] sm:$0xff]  ;;  %v1026_v25 = vld [vmem:[%s7675_s6 + $0x10b0] sm:$0xff]  ;;  %v1027_v13 = vld [vmem:[%s7675_s6 + $0x10b8] sm:$0xff] }
 0x2a9   :  { %4615 = vmatprep.subr.bf16.mxu1 %v4614_v0  ;;  %v1059_v0 = vld [vmem:[%s7675_s6 + $0x11b8] sm:$0xff]  ;;  %v4660_v11 = vpack.c.bf16 %v1009_v53, %v1008_v44  ;;  %v4662_v18 = vpack.c.bf16 %v1027_v13, %v1026_v25  ;;  %v1010_v51 = vld [vmem:[%s7675_s6 + $0x1030] sm:$0xff]  ;;  %v4700_v45 = vpack.c.bf16 %v1045_v17, %v1044_v38  ;;  %v1048_v44 = vld [vmem:[%s7675_s6 + $0x1160] sm:$0xff] }
 0x2aa   :  { %v1049_v41 = vld [vmem:[%s7675_s6 + $0x1168] sm:$0xff]  ;;  %v1034_v25 = vld [vmem:[%s7675_s6 + $0x10f0] sm:$0xff]  ;;  %v1035_v13 = vld [vmem:[%s7675_s6 + $0x10f8] sm:$0xff] }
 0x2ab   :  { %4645 = vmatpush3.bf16.msra.mxu0 %v4644_v10  ;;  %v1058_v10 = vld [vmem:[%s7675_s6 + $0x11b0] sm:$0xff]  ;;  %v4708_v3 = vpack.c.bf16 %v1049_v41, %v1048_v44  ;;  %v1019_v8 = vld [vmem:[%s7675_s6 + $0x1078] sm:$0xff]  ;;  %v1069_v17 = vld [vmem:[%s7675_s6 + $0x1208] sm:$0xff] }
 0x2ac   :  { %4647 = vmatprep.subr.bf16.mxu0 %v4646_v34  ;;  %4617 = vmatpush3.bf16.msra.mxu1 %v4616_v1  ;;  %v1011_v34 = vld [vmem:[%s7675_s6 + $0x1038] sm:$0xff]  ;;  %v4694_v5 = vpack.c.bf16 %v1059_v0, %v1058_v10  ;;  %v1060_v1 = vld [vmem:[%s7675_s6 + $0x11c0] sm:$0xff]  ;;  %v1018_v16 = vld [vmem:[%s7675_s6 + $0x1070] sm:$0xff] }
 0x2ad   :  { %4651 = vmatprep.subr.bf16.mxu1 %v4650_v26  ;;  %v4664_v26 = vpack.c.bf16 %v1011_v34, %v1010_v51  ;;  %v1050_v43 = vld [vmem:[%s7675_s6 + $0x1170] sm:$0xff]  ;;  %v1091_v44 = vld [vmem:[%s7675_s6 + $0x12b8] sm:$0xff] }
 0x2ae   :  { %v1074_v41 = vld [vmem:[%s7675_s6 + $0x1230] sm:$0xff] }
 0x2af   :  { %4649 = vmatpush3.bf16.msra.mxu0 %v4648_v50  ;;  %2173 = vmatmul.mubr.f32.vlgmr.msra.gmra.mrb[14].mxu1 %v365_v47  ;;  %v1061_v50 = vld [vmem:[%s7675_s6 + $0x11c8] sm:$0xff]  ;;  %v1063_v47 = vld [vmem:[%s7675_s6 + $0x11d8] sm:$0xff] }
 0x2b0   :  { %4683 = vmatprep.subr.bf16.mxu0 %v4682_v23  ;;  %4653 = vmatpush3.bf16.msra.mxu1 %v4652_v28  ;;  %v1012_v23 = vld [vmem:[%s7675_s6 + $0x1040] sm:$0xff]  ;;  %v4698_v9 = vpack.c.bf16 %v1061_v50, %v1060_v1  ;;  %v1030_v28 = vld [vmem:[%s7675_s6 + $0x10d0] sm:$0xff]  ;;  %v4702_v58 = vpack.c.bf16 %v1063_v47, %v1062_v49  ;;  %v1087_v47 = vld [vmem:[%s7675_s6 + $0x1298] sm:$0xff] }
 0x2b1   :  { %2312 = vmatprep.mubr.f32.mxu1 %v370_v2  ;;  %4655 = vmatprep.subr.bf16.mxu1 %v4654_v48  ;;  %v4670_v36 = vpack.c.bf16 %v1031_v35, %v1030_v28  ;;  %v1046_v48 = vld [vmem:[%s7675_s6 + $0x1150] sm:$0xff]  ;;  %v1033_v2 = vld [vmem:[%s7675_s6 + $0x10e8] sm:$0xff]  ;;  %v1100_v28 = vld [vmem:[%s7675_s6 + $0x1300] sm:$0xff] }
 0x2b2   :  { %2243 = vmatmul.mubr.f32.vlgmr.msra.gmra.mrb[24].mxu0 %v367_v63  ;;  %v1015_v63 = vld [vmem:[%s7675_s6 + $0x1058] sm:$0xff]  ;;  %v1101_v35 = vld [vmem:[%s7675_s6 + $0x1308] sm:$0xff]  ;;  %v1086_v49 = vld [vmem:[%s7675_s6 + $0x1290] sm:$0xff] }
 0x2b3   :  { %4685 = vmatpush3.bf16.msra.mxu0 %v4684_v14  ;;  %2382 = vmatprep.mubr.f32.mxu0 %v372_v42  ;;  %v4668_v14 = vpack.c.bf16 %v1013_v30, %v1012_v23  ;;  %v4672_v62 = vpack.c.bf16 %v1015_v63, %v1014_v21  ;;  %v4704_v42 = vpack.c.bf16 %v1047_v40, %v1046_v48  ;;  %v1070_v21 = vld [vmem:[%s7675_s6 + $0x1210] sm:$0xff]  ;;  %v1071_v63 = vld [vmem:[%s7675_s6 + $0x1218] sm:$0xff] }
 0x2b4   :  { %4687 = vmatprep.subr.bf16.mxu0 %v4686_v27  ;;  %4657 = vmatpush3.bf16.msra.mxu1 %v4656_v55  ;;  %v1064_v27 = vld [vmem:[%s7675_s6 + $0x11e0] sm:$0xff]  ;;  %v4674_v55 = vpack.c.bf16 %v1033_v2, %v1032_v12  ;;  %v4680_v30 = vpack.c.bf16 %v1019_v8, %v1018_v16  ;;  %v1102_v48 = vld [vmem:[%s7675_s6 + $0x1310] sm:$0xff]  ;;  %v1103_v40 = vld [vmem:[%s7675_s6 + $0x1318] sm:$0xff] }
 0x2b5   :  { %4659 = vmatprep.subr.bf16.mxu1 %v4658_v29  ;;  %v1017_v29 = vld [vmem:[%s7675_s6 + $0x1068] sm:$0xff]  ;;  %v1088_v12 = vld [vmem:[%s7675_s6 + $0x12a0] sm:$0xff]  ;;  %v1094_v8 = vld [vmem:[%s7675_s6 + $0x12d0] sm:$0xff] }
 0x2b6   :  { %v1089_v2 = vld [vmem:[%s7675_s6 + $0x12a8] sm:$0xff] }
 0x2b7   :  { %4689 = vmatpush3.bf16.msra.mxu0 %v4688_v39  ;;  %v1016_v39 = vld [vmem:[%s7675_s6 + $0x1060] sm:$0xff]  ;;  %v1109_v16 = vld [vmem:[%s7675_s6 + $0x1348] sm:$0xff] }
 0x2b8   :  { %4691 = vmatprep.subr.bf16.mxu0 %v4690_v60  ;;  %4661 = vmatpush3.bf16.msra.mxu1 %v4660_v11  ;;  %v4706_v60 = vpack.c.bf16 %v1065_v56, %v1064_v27  ;;  %v1066_v11 = vld [vmem:[%s7675_s6 + $0x11f0] sm:$0xff]  ;;  %v4676_v34 = vpack.c.bf16 %v1017_v29, %v1016_v39  ;;  %v374_v27 = vmul.f32 %v5689_v33, %v5489_v24  ;;  %v1104_v39 = vld [vmem:[%s7675_s6 + $0x1320] sm:$0xff]  ;;  %v1105_v24 = vld [vmem:[%s7675_s6 + $0x1328] sm:$0xff] }
 0x2b9   :  { %4663 = vmatprep.subr.bf16.mxu1 %v4662_v18  ;;  %v4750_v56 = vpack.c.bf16 %v1103_v40, %v1102_v48  ;;  %v1090_v29 = vld [vmem:[%s7675_s6 + $0x12b0] sm:$0xff] }
 0x2bb   :  { %4693 = vmatpush3.bf16.msra.mxu0 %v4692_v46  ;;  %v1067_v46 = vld [vmem:[%s7675_s6 + $0x11f8] sm:$0xff] }
 0x2bc   :  { %4695 = vmatprep.subr.bf16.mxu0 %v4694_v5  ;;  %4665 = vmatpush3.bf16.msra.mxu1 %v4664_v26  ;;  %v4678_v5 = vpack.c.bf16 %v1035_v13, %v1034_v25  ;;  %v4710_v50 = vpack.c.bf16 %v1067_v46, %v1066_v11  ;;  %v1051_v26 = vld [vmem:[%s7675_s6 + $0x1178] sm:$0xff]  ;;  %v1106_v13 = vld [vmem:[%s7675_s6 + $0x1330] sm:$0xff]  ;;  %v1093_v11 = vld [vmem:[%s7675_s6 + $0x12c8] sm:$0xff] }
 0x2bd   :  { %4667 = vmatprep.subr.bf16.mxu1 %v4666_v37  ;;  %v1085_v37 = vld [vmem:[%s7675_s6 + $0x1288] sm:$0xff]  ;;  %v1075_v25 = vld [vmem:[%s7675_s6 + $0x1238] sm:$0xff] }
 0x2be   :  { %v4728_v46 = vpack.c.bf16 %v1075_v25, %v1074_v41 }
 0x2bf   :  { %4697 = vmatpush3.bf16.msra.mxu0 %v4696_v19  ;;  %v1084_v19 = vld [vmem:[%s7675_s6 + $0x1280] sm:$0xff] }
 0x2c0   :  { %4699 = vmatprep.subr.bf16.mxu0 %v4698_v9  ;;  %4669 = vmatpush3.bf16.msra.mxu1 %v4668_v14  ;;  %v4714_v38 = vpack.c.bf16 %v1085_v37, %v1084_v19  ;;  %v1068_v9 = vld [vmem:[%s7675_s6 + $0x1200] sm:$0xff]  ;;  %v1078_v19 = vld [vmem:[%s7675_s6 + $0x1250] sm:$0xff]  ;;  %v1079_v37 = vld [vmem:[%s7675_s6 + $0x1258] sm:$0xff] }
 0x2c1   :  { %4671 = vmatprep.subr.bf16.mxu1 %v4670_v36  ;;  %v4716_v14 = vpack.c.bf16 %v1069_v17, %v1068_v9  ;;  %v4747_v36 = vpack.c.bf16 %v1101_v35, %v1100_v28  ;;  %v1097_v9 = vld [vmem:[%s7675_s6 + $0x12e8] sm:$0xff]  ;;  %v4736_v17 = vpack.c.bf16 %v1079_v37, %v1078_v19 }
 0x2c2   :  { %v3382_v53 = vpop.f32.mrb[2].mxu1  ;;  %v3417_v61 = vpop.f32.mrb[12].mxu0 }
 0x2c3   :  { %4701 = vmatpush3.bf16.msra.mxu0 %v4700_v45  ;;  %v3383_v10 = vpop.f32.mrb[3].mxu1  ;;  %v3418_v0 = vpop.f32.mrb[13].mxu0  ;;  %v369_v45 = vmul.f32 %v5689_v33, %v5449_v7  ;;  %v4718_v7 = vpack.c.bf16 %v1087_v47, %v1086_v49  ;;  %v1080_v49 = vld [vmem:[%s7675_s6 + $0x1260] sm:$0xff]  ;;  %v1081_v47 = vld [vmem:[%s7675_s6 + $0x1268] sm:$0xff] }
 0x2c4   :  { %4703 = vmatprep.subr.bf16.mxu0 %v4702_v58  ;;  %v3384_v18 = vadd.f32 %v3383_v10, %v3382_v53  ;;  %v3419_v51 = vadd.f32 %v3418_v0, %v3417_v61  ;;  %4673 = vmatpush3.bf16.msra.mxu1 %v4672_v62  ;;  %v371_v58 = vmul.f32 %v5689_v33, %v5467_v59  ;;  %v1107_v10 = vld [vmem:[%s7675_s6 + $0x1338] sm:$0xff]  ;;  %v1092_v0 = vld [vmem:[%s7675_s6 + $0x12c0] sm:$0xff] }
 0x2c5   :  { %4675 = vmatprep.subr.bf16.mxu1 %v4674_v55  ;;  %v4720_v59 = vpack.c.bf16 %v1071_v63, %v1070_v21  ;;  %v4722_v62 = vpack.c.bf16 %v1089_v2, %v1088_v12  ;;  %v1073_v55 = vld [vmem:[%s7675_s6 + $0x1228] sm:$0xff]  ;;  %v4753_v61 = vpack.c.bf16 %v1105_v24, %v1104_v39  ;;  %v1098_v21 = vld [vmem:[%s7675_s6 + $0x12f0] sm:$0xff]  ;;  %v1099_v63 = vld [vmem:[%s7675_s6 + $0x12f8] sm:$0xff]  ;;  %v4740_v12 = vpack.c.bf16 %v1081_v47, %v1080_v49 }
 0x2c6   :  { %v1335_v1 = vadd.f32 %v3384_v18, %v7111_v15  ;;  %v4712_v15 = vpack.c.bf16 %v1051_v26, %v1050_v43  ;;  %v4756_v18 = vpack.c.bf16 %v1107_v10, %v1106_v13  ;;  %v1095_v43 = vld [vmem:[%s7675_s6 + $0x12d8] sm:$0xff]  ;;  %v375_v24 = vmul.f32 %v5689_v33, %v5485_v54 }
 0x2c7   :  { %4705 = vmatpush3.bf16.msra.mxu0 %v4704_v42  ;;  %v1072_v42 = vld [vmem:[%s7675_s6 + $0x1220] sm:$0xff]  ;;  %v4734_v26 = vpack.c.bf16 %v1095_v43, %v1094_v8 }
 0x2c8   :  { %4707 = vmatprep.subr.bf16.mxu0 %v4706_v60  ;;  %v7308_v23 = vadd.f32 %v3419_v51, %v1335_v1  ;;  %4677 = vmatpush3.bf16.msra.mxu1 %v4676_v34  ;;  %v4724_v53 = vpack.c.bf16 %v1073_v55, %v1072_v42  ;;  %v4726_v60 = vpack.c.bf16 %v1091_v44, %v1090_v29  ;;  %v1076_v34 = vld [vmem:[%s7675_s6 + $0x1240] sm:$0xff] }
 0x2c9   :  { %4679 = vmatprep.subr.bf16.mxu1 %v4678_v5  ;;  %v4730_v51 = vpack.c.bf16 %v1093_v11, %v1092_v0  ;;  %v1108_v5 = vld [vmem:[%s7675_s6 + $0x1340] sm:$0xff] }
 0x2cb   :  { %4709 = vmatpush3.bf16.msra.mxu0 %v4708_v3  ;;  %v1077_v3 = vld [vmem:[%s7675_s6 + $0x1248] sm:$0xff] }
 0x2cc   :  { %4711 = vmatprep.subr.bf16.mxu0 %v4710_v50  ;;  %4681 = vmatpush3.bf16.msra.mxu1 %v4680_v30  ;;  %v4732_v1 = vpack.c.bf16 %v1077_v3, %v1076_v34  ;;  %v4759_v50 = vpack.c.bf16 %v1109_v16, %v1108_v5  ;;  %v1110_v30 = vld [vmem:[%s7675_s6 + $0x1350] sm:$0xff] }
 0x2cd   :  { %4715 = vmatprep.subr.bf16.mxu1 %v4714_v38  ;;  %v1096_v38 = vld [vmem:[%s7675_s6 + $0x12e0] sm:$0xff] }
 0x2ce   :  { %v4738_v35 = vpack.c.bf16 %v1097_v9, %v1096_v38 }
 0x2cf   :  { %4713 = vmatpush3.bf16.msra.mxu0 %v4712_v15  ;;  %2313 = vmatmul.mubr.f32.vlgmr.msra.gmra.mrb[16].mxu1 %v369_v45  ;;  %v1111_v15 = vld [vmem:[%s7675_s6 + $0x1358] sm:$0xff] }
 0x2d0   :  { %4746 = vmatprep.subr.bf16.mxu0 %v4838_v22  ;;  %4717 = vmatpush3.bf16.msra.mxu1 %v4716_v14  ;;  %v4762_v28 = vpack.c.bf16 %v1111_v15, %v1110_v30  ;;  %v1112_v14 = vld [vmem:[%s7675_s6 + $0x1360] sm:$0xff] }
 0x2d1   :  { %2452 = vmatprep.mubr.f32.mxu1 %v374_v27  ;;  %4719 = vmatprep.subr.bf16.mxu1 %v4718_v7 }
 0x2d2   :  { %2383 = vmatmul.mubr.f32.vlgmr.msra.gmra.mrb[26].mxu0 %v371_v58 }
 0x2d3   :  { %4748 = vmatpush3.bf16.msra.mxu0 %v4747_v36  ;;  %4042 = vmatprep.mubr.msk.f32.mxu0 %vm4839_vm3, %v4840_v31  ;;  %v1113_v36 = vld [vmem:[%s7675_s6 + $0x1368] sm:$0x3] }
 0x2d4   :  { %4749 = vmatprep.subr.bf16.mxu0 %v4838_v22  ;;  %4721 = vmatpush3.bf16.msra.mxu1 %v4720_v59  ;;  %v4765_v27 = vpack.c.bf16 %v1113_v36, %v1112_v14  ;;  %v4742_v59 = vpack.c.bf16 %v1099_v63, %v1098_v21 }
 0x2d5   :  { %4723 = vmatprep.subr.bf16.mxu1 %v4722_v62  ;;  %v1083_v62 = vld [vmem:[%s7675_s6 + $0x1278] sm:$0xff] }
 0x2d7   :  { %4751 = vmatpush3.bf16.msra.mxu0 %v4750_v56  ;;  %v1082_v56 = vld [vmem:[%s7675_s6 + $0x1270] sm:$0xff]  ;;  %s4843_s6 = smov 112  }
 0x2d8   :  { %4752 = vmatprep.subr.bf16.mxu0 %v4838_v22  ;;  %4725 = vmatpush3.bf16.msra.mxu1 %v4724_v53  ;;  %v4744_v39 = vpack.c.bf16 %v1083_v62, %v1082_v56 }
 0x2d9   :  { %4727 = vmatprep.subr.bf16.mxu1 %v4726_v60 }
 0x2db   :  { %4754 = vmatpush3.bf16.msra.mxu0 %v4753_v61 }
 0x2dc   :  { %4755 = vmatprep.subr.bf16.mxu0 %v4838_v22  ;;  %4729 = vmatpush3.bf16.msra.mxu1 %v4728_v46 }
 0x2dd   :  { %4731 = vmatprep.subr.bf16.mxu1 %v4730_v51 }
 0x2df   :  { %4757 = vmatpush3.bf16.msra.mxu0 %v4756_v18 }
 0x2e0   :  { %4758 = vmatprep.subr.bf16.mxu0 %v4838_v22  ;;  %4733 = vmatpush3.bf16.msra.mxu1 %v4732_v1 }
 0x2e1   :  { %4735 = vmatprep.subr.bf16.mxu1 %v4734_v26 }
 0x2e2   :  { %v3452_v45 = vpop.f32.mrb[4].mxu1 }
 0x2e3   :  { %4760 = vmatpush3.bf16.msra.mxu0 %v4759_v50  ;;  %v3487_v48 = vpop.f32.mrb[14].mxu0  ;;  %v3453_v58 = vpop.f32.mrb[5].mxu1 }
 0x2e4   :  { %4761 = vmatprep.subr.bf16.mxu0 %v4838_v22  ;;  %v3454_v7 = vadd.f32 %v3453_v58, %v3452_v45  ;;  %v3488_v40 = vpop.f32.mrb[15].mxu0  ;;  %4737 = vmatpush3.bf16.msra.mxu1 %v4736_v17 }
 0x2e5   :  { %v3489_v2 = vadd.f32 %v3488_v40, %v3487_v48  ;;  %4739 = vmatprep.subr.bf16.mxu1 %v4738_v35 }
 0x2e6   :  { %v1475_v42 = vadd.f32 %v3454_v7, %v7308_v23  ;;  %v373_v23 = vmul.f32 %v5689_v33, %v5479_v52 }
 0x2e7   :  { %4763 = vmatpush3.bf16.msra.mxu0 %v4762_v28 }
 0x2e8   :  { %4764 = vmatprep.subr.bf16.mxu0 %v4838_v22  ;;  %v1545_v55 = vadd.f32 %v3489_v2, %v1475_v42  ;;  %4741 = vmatpush3.bf16.msra.mxu1 %v4740_v12 }
 0x2e9   :  { %4743 = vmatprep.subr.bf16.mxu1 %v4742_v59 }
 0x2eb   :  { %4767 = vmatpush3.bf16.msk.msra.mxu0 %vm4766_vm6, %v4765_v27 }
 0x2ec   :  { %4045 = vmatprep.subr.mxu0 %v4840_v31  ;;  %4745 = vmatpush3.bf16.msra.mxu1 %v4744_v39 }
 0x2ed   :  { %4771 = vmatprep.subr.mxu1 %v4840_v31 }
 0x2ee   :  { %4043 = vmatmul.mubr.msk.f32.vlgmr.msra.gmra.mrb[28].mxu0 %vm208_vm2, %v375_v24 }
 0x2ef   :  { %4047 = vmatprep.mubr.msk.f32.mxu0 %vm4839_vm3, %v4840_v31  ;;  %2453 = vmatmul.mubr.f32.vlgmr.msra.gmra.mrb[18].mxu1 %v373_v23 }
 0x2f0   :  { %4053 = vmatprep.mubr.msk.f32.mxu1 %vm4839_vm3, %v4840_v31 }
 0x302   :  { %v3522_v29 = vpop.f32.mrb[6].mxu1 }
 0x303   :  { %v3557_v44 = vpop.f32.mrb[16].mxu0  ;;  %v3523_v54 = vpop.f32.mrb[7].mxu1 }
 0x304   :  { %v3524_v53 = vadd.f32 %v3523_v54, %v3522_v29  ;;  %v3558_v61 = vpop.f32.mrb[17].mxu0 }
 0x305   :  { %v3559_v60 = vadd.f32 %v3558_v61, %v3557_v44 }
 0x306   :  { %v1615_v41 = vadd.f32 %v3524_v53, %v1545_v55 }
 0x308   :  { %v1685_v25 = vadd.f32 %v3559_v60, %v1615_v41 }
 0x322   :  { %v3592_v13 = vpop.f32.mrb[8].mxu1 }
 0x323   :  { %v3627_v10 = vpop.f32.mrb[18].mxu0  ;;  %v3593_v52 = vpop.f32.mrb[9].mxu1 }
 0x324   :  { %v3594_v33 = vadd.f32 %v3593_v52, %v3592_v13  ;;  %v3628_v0 = vpop.f32.mrb[19].mxu0 }
 0x325   :  { %v3629_v11 = vadd.f32 %v3628_v0, %v3627_v10 }
 0x326   :  { %v1755_v46 = vadd.f32 %v3594_v33, %v1685_v25 }
 0x328   :  { %v1825_v18 = vadd.f32 %v3629_v11, %v1755_v46 }
 0x342   :  { %v3662_v51 = vpop.f32.mrb[10].mxu1 }
 0x343   :  { %v3697_v34 = vpop.f32.mrb[20].mxu0  ;;  %v3663_v3 = vpop.f32.mrb[11].mxu1 }
 0x344   :  { %v3664_v5 = vadd.f32 %v3663_v3, %v3662_v51  ;;  %v3698_v16 = vpop.f32.mrb[21].mxu0 }
 0x345   :  { %v3699_v8 = vadd.f32 %v3698_v16, %v3697_v34 }
 0x346   :  { %v1895_v43 = vadd.f32 %v3664_v5, %v1825_v18 }
 0x348   :  { %v1965_v1 = vadd.f32 %v3699_v8, %v1895_v43 }
 0x362   :  { %v3732_v50 = vpop.f32.mrb[12].mxu1 }
 0x363   :  { %v3733_v19 = vpop.f32.mrb[13].mxu1 }
 0x364   :  { %v3734_v37 = vadd.f32 %v3733_v19, %v3732_v50 }
 0x365   :  { %v3767_v26 = vpop.f32.mrb[22].mxu0 }
 0x366   :  { %v3768_v30 = vpop.f32.mrb[23].mxu0  ;;  %v2035_v38 = vadd.f32 %v3734_v37, %v1965_v1 }
 0x367   :  { %v3769_v15 = vadd.f32 %v3768_v30, %v3767_v26 }
 0x369   :  { %v2105_v9 = vadd.f32 %v3769_v15, %v2035_v38 }
 0x382   :  { %v3802_v17 = vpop.f32.mrb[14].mxu1 }
 0x383   :  { %v3803_v35 = vpop.f32.mrb[15].mxu1 }
 0x384   :  { %v3804_v49 = vadd.f32 %v3803_v35, %v3802_v17 }
 0x385   :  { %v3837_v28 = vpop.f32.mrb[24].mxu0 }
 0x386   :  { %v3838_v47 = vpop.f32.mrb[25].mxu0  ;;  %v2175_v45 = vadd.f32 %v3804_v49, %v2105_v9 }
 0x387   :  { %v3839_v14 = vadd.f32 %v3838_v47, %v3837_v28 }
 0x389   :  { %v2245_v36 = vadd.f32 %v3839_v14, %v2175_v45 }
 0x3a2   :  { %v3872_v21 = vpop.f32.mrb[16].mxu1 }
 0x3a3   :  { %v3873_v48 = vpop.f32.mrb[17].mxu1 }
 0x3a4   :  { %v3874_v58 = vadd.f32 %v3873_v48, %v3872_v21 }
 0x3a5   :  { %v3907_v63 = vpop.f32.mrb[26].mxu0 }
 0x3a6   :  { %v3908_v7 = vpop.f32.mrb[27].mxu0  ;;  %v2315_v12 = vadd.f32 %v3874_v58, %v2245_v36 }
 0x3a7   :  { %v3909_v40 = vadd.f32 %v3908_v7, %v3907_v63 }
 0x3a9   :  { %v2385_v2 = vadd.f32 %v3909_v40, %v2315_v12 }
 0x3c1   :  { %v2524_v27 = vpop.f32.mrb[28].mxu0 }
 0x3c2   :  { %v4044_v59 = vpop.f32.mrb[29].mxu0  ;;  %v3942_v56 = vpop.f32.mrb[18].mxu1 }
 0x3c3   :  { %v3943_v62 = vpop.f32.mrb[19].mxu1 }
 0x3c4   :  { %v3944_v42 = vadd.f32 %v3943_v62, %v3942_v56 }
 0x3c6   :  { %v2455_v55 = vadd.f32 %v3944_v42, %v2385_v2 }
 0x3c8   :  { %v7470_v39 = vadd.f32 %v2524_v27, %v2455_v55 }
 0x3ca   :  { %2811 = vrot.lane.b32.xlu0 %v7470_v39, %s4841_s30  ;;  %4046 = vmatpush3.xpose.msk.msra.mxu0 %vm2528_vm7, %v7470_v39 }
 0x3cb   :  { %4772 = vmatpush3.xpose.msk.msra.mxu1 %vm2528_vm7, %v7470_v39  ;;  %4062 = vmatprep.subr.mxu0 %v4840_v31 }
 0x3cc   :  { %4079 = vmatprep.subr.mxu1 %v4840_v31 }
 0x3cd   :  { %4048 = vmatmul.mubr.msk.f32.vlgmr.msra.gmra.mrb[30].mxu0 %vm2528_vm7, %v6575_v4  ;;  %v2802_v4 = vpop.permute.xlu1 %2801 }
 0x3ce   :  { %4054 = vmatmul.mubr.msk.f32.vlgmr.msra.gmra.mrb[20].mxu1 %vm2528_vm7, %v6633_v32  ;;  %2807 = vrot.lane.b32.xlu0 %v6662_v6, %s4841_s30  ;;  %s4844_s30 = smov 104  }
 0x3cf   :  { %4050 = vmatprep.mubr.msk.f32.mxu0 %vm4839_vm3, %v4840_v31  ;;  %4056 = vmatprep.mubr.msk.f32.mxu1 %vm4839_vm3, %v4840_v31 }
 0x3d1   :  { %4051 = vmatmul.mubr.msk.f32.gmra.mrb[32].mxu0 %vm2528_vm7, %v6604_v20  ;;  %v2804_v20 = vpop.permute.xlu1 %2803 }
 0x3d2   :  { %4057 = vmatmul.mubr.msk.f32.gmra.mrb[22].mxu1 %vm2528_vm7, %v6662_v6  ;;  %4064 = vmatprep.mubr.msk.f32.mxu0 %vm4839_vm3, %v4840_v31 }
 0x3d3   :  { %4059 = vmatprep.mubr.msk.f32.mxu1 %vm4839_vm3, %v4840_v31 }
 0x3d5   :  { %v2806_v6 = vpop.permute.xlu1 %2805 }
 0x3d6   :  { %4060 = vmatmul.mubr.msk.f32.gmra.mrb[24].mxu1 %vm2528_vm7, %v6689_v57 }
 0x3d7   :  { %4081 = vmatprep.mubr.msk.f32.mxu1 %vm4839_vm3, %v4840_v31 }
 0x43c   :  { %v2812_v32 = vpop.permute.xlu0 %2811 }
 0x43d   :  { %4080 = vmatpush3.xpose.msk.msra.mxu1 %vm2528_vm7, %v2812_v32 }
 0x43e   :  { %4768 = vmatprep.subr.bf16.mxu1 %v4838_v22  ;;  %v2810_v22 = vpop.permute.xlu1 %2809 }
 0x440   :  { %4082 = vmatmul.mubr.msk.f32.vlgmr.msra.gmra.mrb[26].mxu1 %vm2528_vm7, %v2802_v4  ;;  %v2808_v57 = vpop.permute.xlu0 %2807 }
 0x441   :  { %4084 = vmatprep.mubr.msk.f32.mxu1 %vm4839_vm3, %v4840_v31 }
 0x444   :  { %4085 = vmatmul.mubr.msk.f32.gmra.mrb[28].mxu1 %vm2528_vm7, %v2804_v20 }
 0x445   :  { %4087 = vmatprep.mubr.msk.f32.mxu1 %vm4839_vm3, %v4840_v31 }
 0x448   :  { %4088 = vmatmul.mubr.msk.f32.gmra.mrb[30].mxu1 %vm2528_vm7, %v2806_v6 }
 0x449   :  { %4090 = vmatprep.mubr.msk.f32.mxu1 %vm4839_vm3, %v4840_v31 }
 0x44c   :  { %4091 = vmatmul.mubr.msk.f32.gmra.mrb[32].mxu1 %vm2528_vm7, %v2808_v57 }
 0x44d   :  { %4093 = vmatprep.mubr.msk.f32.mxu1 %vm4839_vm3, %v4840_v31 }
 0x450   :  { %4094 = vmatmul.mubr.msk.f32.gmra.mrb[34].mxu1 %vm2528_vm7, %v2810_v22 }
 0x451   :  { %4117 = vmatprep.mubr.msk.f32.mxu1 %vm4839_vm3, %v4840_v31 }
 0x4a0   :  { %v2613_v24 = vpop.f32.mrb[30].mxu0 }
 0x4a1   :  { %v2623_v23 = vpop.f32.mrb[20].mxu1  ;;  %v4049_v29 = vpop.f32.mrb[31].mxu0  ;;  %v2637_v44 = vsel %vm2528_vm7, %v2613_v24, -inf }
 0x4a2   :  { %v4055_v54 = vpop.f32.mrb[21].mxu1  ;;  %2638 = vmax.xlane.f32.xlu0 %v2637_v44  ;;  %v2643_v41 = vsel %vm2528_vm7, %v2623_v23, -inf }
 0x4a4   :  { %v2618_v53 = vpop.f32.mrb[32].mxu0 }
 0x4a5   :  { %v2628_v61 = vpop.f32.mrb[22].mxu1  ;;  %v4052_v60 = vpop.f32.mrb[33].mxu0  ;;  %v2640_v25 = vsel %vm2528_vm7, %v2618_v53, -inf }
 0x4a6   :  { %v4058_v13 = vpop.f32.mrb[23].mxu1  ;;  %2644 = vmax.xlane.f32.xlu0 %v2643_v41  ;;  %2641 = vmax.xlane.f32.xlu1 %v2640_v25  ;;  %v2646_v52 = vsel %vm2528_vm7, %v2628_v61, -inf }
 0x4a9   :  { %v2633_v10 = vpop.f32.mrb[24].mxu1 }
 0x4aa   :  { %v4061_v33 = vpop.f32.mrb[25].mxu1  ;;  %2647 = vmax.xlane.f32.xlu0 %v2646_v52  ;;  %v2650_v0 = vsel %vm2649_vm8, %v2633_v10, -inf }
 0x4ae   :  { %2651 = vmax.xlane.f32.xlu0 %v2650_v0 }
 0x513   :  { %v2891_v11 = vpop.f32.mrb[26].mxu1 }
 0x514   :  { %v4083_v46 = vpop.f32.mrb[27].mxu1  ;;  %v2915_v18 = vsel %vm2528_vm7, %v2891_v11, -inf }
 0x515   :  { %2916 = vmax.xlane.f32.xlu1 %v2915_v18 }
 0x517   :  { %v2896_v51 = vpop.f32.mrb[28].mxu1 }
 0x518   :  { %v4086_v34 = vpop.f32.mrb[29].mxu1  ;;  %v2918_v3 = vsel %vm2528_vm7, %v2896_v51, -inf }
 0x519   :  { %2919 = vmax.xlane.f32.xlu0 %v2918_v3 }
 0x51b   :  { %v2901_v5 = vpop.f32.mrb[30].mxu1 }
 0x51c   :  { %v4089_v16 = vpop.f32.mrb[31].mxu1  ;;  %v2921_v8 = vsel %vm2528_vm7, %v2901_v5, -inf }
 0x51d   :  { %2922 = vmax.xlane.f32.xlu1 %v2921_v8 }
 0x51f   :  { %v2906_v43 = vpop.f32.mrb[32].mxu1 }
 0x520   :  { %v4092_v1 = vpop.f32.mrb[33].mxu1  ;;  %v2924_v50 = vsel %vm2528_vm7, %v2906_v43, -inf }
 0x521   :  { %2925 = vmax.xlane.f32.xlu0 %v2924_v50 }
 0x523   :  { %v2911_v26 = vpop.f32.mrb[34].mxu1 }
 0x524   :  { %v4095_v19 = vpop.f32.mrb[35].mxu1  ;;  %v2927_v37 = vsel %vm2649_vm8, %v2911_v26, -inf }
 0x525   :  { %2928 = vmax.xlane.f32.xlu1 %v2927_v37 }
 0x52f   :  { %v2639_v30 = vpop.xlane.xlu0 %2638 }
 0x530   :  { %v2653_v15 = vsub.f32 %v2613_v24, %v2639_v30 }
 0x532   :  { %v2658_v38 = vmul.f32 1.442695, %v2653_v15 }
 0x533   :  { %v2645_v9 = vpop.xlane.xlu0 %2644  ;;  %v2642_v17 = vpop.xlane.xlu1 %2641 }
 0x534   :  { %4793 = vpow2.f32 %v2658_v38  ;;  %v2655_v28 = vsub.f32 %v2623_v23, %v2645_v9  ;;  %v2654_v35 = vsub.f32 %v2618_v53, %v2642_v17 }
 0x536   :  { %v2662_v49 = vmul.f32 1.442695, %v2655_v28  ;;  %v2660_v47 = vmul.f32 1.442695, %v2654_v35 }
 0x537   :  { %v2648_v14 = vpop.xlane.xlu0 %2647 }
 0x538   :  { %4795 = vpow2.f32 %v2662_v49  ;;  %v2656_v45 = vsub.f32 %v2628_v61, %v2648_v14 }
 0x539   :  { %4797 = vpow2.f32 %v2660_v47 }
 0x53a   :  { %v2664_v36 = vmul.f32 1.442695, %v2656_v45 }
 0x53b   :  { %v2652_v21 = vpop.xlane.xlu0 %2651 }
 0x53c   :  { %4799 = vpow2.f32 %v2664_v36  ;;  %v2657_v63 = vsub.f32 %v2633_v10, %v2652_v21 }
 0x53e   :  { %v7529_v48 = vpop.eup %4793  ;;  %v2666_v58 = vmul.f32 1.442695, %v2657_v63 }
 0x53f   :  { %v2668_v7 = vsel %vm2528_vm7, %v7529_v48, 0.0 }
 0x540   :  { %4801 = vpow2.f32 %v2666_v58  ;;  %2669 = vadd.xlane.f32.xlu0 %v2668_v7 }
 0x542   :  { %v7533_v40 = vpop.eup %4795 }
 0x543   :  { %v7535_v12 = vpop.eup %4797  ;;  %v2674_v2 = vsel %vm2528_vm7, %v7533_v40, 0.0 }
 0x544   :  { %2675 = vadd.xlane.f32.xlu0 %v2674_v2  ;;  %v2671_v27 = vsel %vm2528_vm7, %v7535_v12, 0.0  ;;  %v3103_v2 = vld [vmem:[%s7680_s8] sm:$0xff] }
 0x545   :  { %2672 = vadd.xlane.f32.xlu1 %v2671_v27  ;;  %v3104_v27 = vld [vmem:[%s7680_s8 + $0x8] sm:$0xff] }
 0x546   :  { %v7541_v59 = vpop.eup %4799 }
 0x547   :  { %v2677_v56 = vsel %vm2528_vm7, %v7541_v59, 0.0 }
 0x549   :  { %2678 = vadd.xlane.f32.xlu1 %v2677_v56 }
 0x54a   :  { %v7545_v62 = vpop.eup %4801 }
 0x54b   :  { %v2680_v42 = vsel %vm2649_vm8, %v7545_v62, 0.0 }
 0x54c   :  { %2681 = vadd.xlane.f32.xlu0 %v2680_v42 }
 0x5a2   :  { %v2917_v55 = vpop.xlane.xlu1 %2916 }
 0x5a3   :  { %v2930_v4 = vsub.f32 %v2891_v11, %v2917_v55 }
 0x5a5   :  { %v2935_v32 = vmul.f32 1.442695, %v2930_v4 }
 0x5a6   :  { %v2920_v20 = vpop.xlane.xlu0 %2919 }
 0x5a7   :  { %4803 = vpow2.f32 %v2935_v32  ;;  %v2931_v6 = vsub.f32 %v2896_v51, %v2920_v20 }
 0x5a9   :  { %v2937_v57 = vmul.f32 1.442695, %v2931_v6 }
 0x5aa   :  { %v2923_v22 = vpop.xlane.xlu1 %2922 }
 0x5ab   :  { %4805 = vpow2.f32 %v2937_v57  ;;  %v2932_v24 = vsub.f32 %v2901_v5, %v2923_v22 }
 0x5ad   :  { %v2939_v23 = vmul.f32 1.442695, %v2932_v24 }
 0x5ae   :  { %v2926_v29 = vpop.xlane.xlu0 %2925 }
 0x5af   :  { %4807 = vpow2.f32 %v2939_v23  ;;  %v2933_v44 = vsub.f32 %v2906_v43, %v2926_v29 }
 0x5b1   :  { %v7549_v54 = vpop.eup %4803  ;;  %v2941_v53 = vmul.f32 1.442695, %v2933_v44 }
 0x5b2   :  { %v2929_v61 = vpop.xlane.xlu1 %2928  ;;  %v2945_v60 = vsel %vm2528_vm7, %v7549_v54, 0.0 }
 0x5b3   :  { %4809 = vpow2.f32 %v2941_v53  ;;  %v2934_v41 = vsub.f32 %v2911_v26, %v2929_v61  ;;  %2946 = vadd.xlane.f32.xlu1 %v2945_v60 }
 0x5b5   :  { %v7553_v25 = vpop.eup %4805  ;;  %v2943_v13 = vmul.f32 1.442695, %v2934_v41 }
 0x5b6   :  { %v2948_v10 = vsel %vm2528_vm7, %v7553_v25, 0.0 }
 0x5b7   :  { %4811 = vpow2.f32 %v2943_v13  ;;  %2949 = vadd.xlane.f32.xlu0 %v2948_v10 }
 0x5b9   :  { %v7557_v52 = vpop.eup %4807 }
 0x5ba   :  { %v2951_v33 = vsel %vm2528_vm7, %v7557_v52, 0.0 }
 0x5bb   :  { %2952 = vadd.xlane.f32.xlu0 %v2951_v33 }
 0x5bd   :  { %v7561_v0 = vpop.eup %4809 }
 0x5be   :  { %v2954_v11 = vsel %vm2528_vm7, %v7561_v0, 0.0 }
 0x5bf   :  { %2955 = vadd.xlane.f32.xlu0 %v2954_v11 }
 0x5c1   :  { %v7565_v46 = vpop.eup %4811 }
 0x5c2   :  { %v2957_v18 = vsel %vm2649_vm8, %v7565_v46, 0.0 }
 0x5c3   :  { %2958 = vadd.xlane.f32.xlu0 %v2957_v18 }
 0x5c4   :  { %2693 = vrot.lane.b32.xlu1 %v7470_v39, %s4843_s6 }
 0x5cd   :  { %v2670_v51 = vpop.xlane.xlu0 %2669 }
 0x5ce   :  { %4813 = vrcp.f32 %v2670_v51 }
 0x5d1   :  { %v2676_v3 = vpop.xlane.xlu0 %2675 }
 0x5d2   :  { %v2673_v34 = vpop.xlane.xlu1 %2672 }
 0x5d3   :  { %4815 = vrcp.f32 %v2673_v34 }
 0x5d4   :  { %4817 = vrcp.f32 %v2676_v3  ;;  %v3265_v3 = vld [vmem:[%s7681_s9] ss:$0 sm:$0xff] }
 0x5d6   :  { %v2679_v5 = vpop.xlane.xlu1 %2678 }
 0x5d7   :  { %4819 = vrcp.f32 %v2679_v5 }
 0x5d8   :  { %v4814_v43 = vpop.eup %4813 }
 0x5d9   :  { %2970 = vrot.lane.b32.xlu0 %v7470_v39, %s4844_s30  ;;  %v2682_v16 = vpop.xlane.xlu0 %2681  ;;  %v2684_v1 = vmul.f32 %v4814_v43, %v7529_v48  ;;  %v4833_v43 = vld [vmem:[%s7672_s0] sm:$0xff] }
 0x5da   :  { %4821 = vrcp.f32 %v2682_v16 }
 0x5dd   :  { %v4816_v19 = vpop.eup %4815 }
 0x5de   :  { %v2686_v37 = vmul.f32 %v4816_v19, %v7535_v12  ;;  %v4818_v30 = vpop.eup %4817  ;;  %v4834_v19 = vld [vmem:[%s7672_s0 + $0x8] sm:$0xff] }
 0x5df   :  { %v2688_v38 = vmul.f32 %v4818_v30, %v7533_v40 }
 0x5e1   :  { %v4820_v9 = vpop.eup %4819 }
 0x5e2   :  { %v2690_v28 = vmul.f32 %v4820_v9, %v7541_v59  ;;  %v4769_v59 = vpack.c.bf16 %v3104_v27, %v3103_v2 }
 0x5e4   :  { %v4822_v35 = vpop.eup %4821  ;;  %4770 = vmatpush3.bf16.msra.mxu1 %v4769_v59 }
 0x5e5   :  { %v2692_v47 = vmul.f32 %v4822_v35, %v7545_v62 }
 0x640   :  { %v2947_v8 = vpop.xlane.xlu1 %2946 }
 0x641   :  { %4823 = vrcp.f32 %v2947_v8 }
 0x644   :  { %v2950_v50 = vpop.xlane.xlu0 %2949  ;;  %v2694_v26 = vpop.permute.xlu1 %2693 }
 0x645   :  { %4063 = vmatpush3.msra.mxu0 %v2694_v26  ;;  %4825 = vrcp.f32 %v2950_v50 }
 0x646   :  { %4065 = vmatmul.mubr.msk.f32.vlgmr.msra.gmra.mrb[34].mxu0 %vm2528_vm7, %v2684_v1  ;;  %4096 = vmatprep.subr.mxu0 %v4840_v31 }
 0x647   :  { %4067 = vmatprep.mubr.msk.f32.mxu0 %vm4839_vm3, %v4840_v31 }
 0x648   :  { %v2953_v39 = vpop.xlane.xlu0 %2952 }
 0x649   :  { %4827 = vrcp.f32 %v2953_v39 }
 0x64a   :  { %4068 = vmatmul.mubr.msk.f32.gmra.mrb[36].mxu0 %vm2528_vm7, %v2686_v37 }
 0x64b   :  { %4070 = vmatprep.mubr.msk.f32.mxu0 %vm4839_vm3, %v4840_v31  ;;  %v4824_v14 = vpop.eup %4823 }
 0x64c   :  { %v2956_v15 = vpop.xlane.xlu0 %2955  ;;  %v2961_v45 = vmul.f32 %v4824_v14, %v7549_v54 }
 0x64d   :  { %4829 = vrcp.f32 %v2956_v15 }
 0x64e   :  { %4071 = vmatmul.mubr.msk.f32.gmra.mrb[38].mxu0 %vm2528_vm7, %v2688_v38  ;;  %v4835_v38 = vld [vmem:[%s7672_s0 + $0x10] sm:$0xff] }
 0x64f   :  { %4073 = vmatprep.mubr.msk.f32.mxu0 %vm4839_vm3, %v4840_v31  ;;  %v4826_v36 = vpop.eup %4825 }
 0x650   :  { %v2959_v17 = vpop.xlane.xlu0 %2958  ;;  %v2963_v21 = vmul.f32 %v4826_v36, %v7553_v25 }
 0x651   :  { %4831 = vrcp.f32 %v2959_v17 }
 0x652   :  { %4074 = vmatmul.mubr.msk.f32.gmra.mrb[40].mxu0 %vm2528_vm7, %v2690_v28 }
 0x653   :  { %4076 = vmatprep.mubr.msk.f32.mxu0 %vm4839_vm3, %v4840_v31  ;;  %v4828_v63 = vpop.eup %4827 }
 0x654   :  { %v2971_v49 = vpop.permute.xlu0 %2970  ;;  %v2965_v48 = vmul.f32 %v4828_v63, %v7557_v52 }
 0x655   :  { %4097 = vmatpush3.msra.mxu0 %v2971_v49  ;;  %v4836_v49 = vld [vmem:[%s7672_s0 + $0x18] sm:$0xff] }
 0x656   :  { %4077 = vmatmul.mubr.msk.f32.gmra.mrb[42].mxu0 %vm2528_vm7, %v2692_v47 }
 0x657   :  { %4098 = vmatprep.mubr.msk.f32.mxu0 %vm4839_vm3, %v4840_v31  ;;  %v4830_v58 = vpop.eup %4829 }
 0x658   :  { %v2967_v7 = vmul.f32 %v4830_v58, %v7561_v0 }
 0x65a   :  { %4099 = vmatmul.mubr.msk.f32.vlgmr.msra.gmra.mrb[44].mxu0 %vm2528_vm7, %v2961_v45 }
 0x65b   :  { %4101 = vmatprep.mubr.msk.f32.mxu0 %vm4839_vm3, %v4840_v31  ;;  %v4832_v40 = vpop.eup %4831 }
 0x65c   :  { %v2969_v12 = vmul.f32 %v4832_v40, %v7565_v46 }
 0x65e   :  { %4102 = vmatmul.mubr.msk.f32.gmra.mrb[46].mxu0 %vm2528_vm7, %v2963_v21  ;;  %v4837_v21 = vld [vmem:[%s7672_s0 + $0x20] sm:$0x3] }
 0x65f   :  { %4104 = vmatprep.mubr.msk.f32.mxu0 %vm4839_vm3, %v4840_v31 }
 0x662   :  { %4105 = vmatmul.mubr.msk.f32.gmra.mrb[48].mxu0 %vm2528_vm7, %v2965_v48 }
 0x663   :  { %4107 = vmatprep.mubr.msk.f32.mxu0 %vm4839_vm3, %v4840_v31 }
 0x666   :  { %4108 = vmatmul.mubr.msk.f32.gmra.mrb[50].mxu0 %vm2528_vm7, %v2967_v7 }
 0x667   :  { %4110 = vmatprep.mubr.msk.f32.mxu0 %vm4839_vm3, %v4840_v31 }
 0x66a   :  { %4111 = vmatmul.mubr.msk.f32.gmra.mrb[52].mxu0 %vm2528_vm7, %v2969_v12 }
 0x719   :  { %v2777_v56 = vpop.f32.mrb[34].mxu0 }
 0x71a   :  { %v4066_v62 = vpop.f32.mrb[35].mxu0 }
 0x71d   :  { %v2782_v42 = vpop.f32.mrb[36].mxu0 }
 0x71e   :  { %v4069_v55 = vpop.f32.mrb[37].mxu0 }
 0x721   :  { %v2787_v4 = vpop.f32.mrb[38].mxu0 }
 0x722   :  { %v4072_v32 = vpop.f32.mrb[39].mxu0 }
 0x725   :  { %v2792_v20 = vpop.f32.mrb[40].mxu0 }
 0x726   :  { %v4075_v6 = vpop.f32.mrb[41].mxu0 }
 0x729   :  { %v2797_v57 = vpop.f32.mrb[42].mxu0 }
 0x72a   :  { %v4078_v22 = vpop.f32.mrb[43].mxu0 }
 0x72d   :  { %v3054_v24 = vpop.f32.mrb[44].mxu0 }
 0x72e   :  { %3083 = vrot.lane.b32.xlu1 %v3054_v24, %s4845_s11  ;;  %v4100_v23 = vpop.f32.mrb[45].mxu0 }
 0x731   :  { %v3059_v29 = vpop.f32.mrb[46].mxu0 }
 0x732   :  { %3085 = vrot.lane.b32.xlu1 %v3059_v29, %s4845_s11  ;;  %v4103_v44 = vpop.f32.mrb[47].mxu0 }
 0x735   :  { %v3064_v54 = vpop.f32.mrb[48].mxu0 }
 0x736   :  { %3087 = vrot.lane.b32.xlu1 %v3064_v54, %s4845_s11  ;;  %v4106_v53 = vpop.f32.mrb[49].mxu0 }
 0x739   :  { %v3069_v61 = vpop.f32.mrb[50].mxu0 }
 0x73a   :  { %3089 = vrot.lane.b32.xlu1 %v3069_v61, %s4845_s11  ;;  %v4109_v60 = vpop.f32.mrb[51].mxu0 }
 0x73d   :  { %v3074_v41 = vpop.f32.mrb[52].mxu0 }
 0x73e   :  { %3091 = vrot.lane.b32.xlu1 %v3074_v41, %s4845_s11  ;;  %v4112_v25 = vpop.f32.mrb[53].mxu0 }
 0x7a0   :  { %v3084_v13 = vpop.permute.xlu1 %3083 }
 0x7a1   :  { %v3098_v10 = vsel %vm2528_vm7, %v2777_v56, %v3084_v13 }
 0x7a2   :  { %4118 = vmatmul.mubr.msk.f32.vlgmr.msra.gmra.mrb[36].mxu1 %vm3112_vm9, %v3098_v10 }
 0x7a3   :  { %4120 = vmatprep.mubr.msk.f32.mxu1 %vm4839_vm3, %v4840_v31 }
 0x7a4   :  { %v3086_v52 = vpop.permute.xlu1 %3085 }
 0x7a5   :  { %v3099_v33 = vsel %vm2528_vm7, %v2782_v42, %v3086_v52 }
 0x7a6   :  { %4121 = vmatmul.mubr.msk.f32.gmra.mrb[38].mxu1 %vm3112_vm9, %v3099_v33 }
 0x7a7   :  { %4123 = vmatprep.mubr.msk.f32.mxu1 %vm4839_vm3, %v4840_v31 }
 0x7a8   :  { %v3088_v0 = vpop.permute.xlu1 %3087 }
 0x7a9   :  { %v3100_v11 = vsel %vm2528_vm7, %v2787_v4, %v3088_v0 }
 0x7aa   :  { %4124 = vmatmul.mubr.msk.f32.gmra.mrb[40].mxu1 %vm3112_vm9, %v3100_v11 }
 0x7ab   :  { %4126 = vmatprep.mubr.msk.f32.mxu1 %vm4839_vm3, %v4840_v31 }
 0x7ac   :  { %v3090_v46 = vpop.permute.xlu1 %3089 }
 0x7ad   :  { %v3101_v18 = vsel %vm2528_vm7, %v2792_v20, %v3090_v46 }
 0x7ae   :  { %4127 = vmatmul.mubr.msk.f32.gmra.mrb[42].mxu1 %vm3112_vm9, %v3101_v18 }
 0x7af   :  { %4129 = vmatprep.mubr.msk.f32.mxu1 %vm4839_vm3, %v4840_v31 }
 0x7b0   :  { %v3092_v51 = vpop.permute.xlu1 %3091 }
 0x7b1   :  { %v3102_v34 = vsel %vm2528_vm7, %v2797_v57, %v3092_v51 }
 0x7b2   :  { %4130 = vmatmul.mubr.msk.f32.gmra.mrb[44].mxu1 %vm3112_vm9, %v3102_v34 }
 0x875   :  { %v3194_v5 = vpop.f32.mrb[36].mxu1 }
 0x876   :  { %v3195_v16 = vadd.f32 %v3265_v3, %v3194_v5  ;;  %v4119_v8 = vpop.f32.mrb[37].mxu1 }
 0x878   :  { %v3218_v1 = vadd.f32 %v4833_v43, %v3195_v16 }
 0x879   :  { %v3199_v50 = vpop.f32.mrb[38].mxu1 }
 0x87a   :  { %3223 = vst.msk [vmem:[%s7682_s10] sm:$0xff] %vm40_vm0, %v3218_v1  ;;  %v3200_v31 = vadd.f32 %v3265_v3, %v3199_v50  ;;  %v4122_v26 = vpop.f32.mrb[39].mxu1 }
 0x87c   :  { %v3219_v39 = vadd.f32 %v4834_v19, %v3200_v31 }
 0x87d   :  { %v3204_v37 = vpop.f32.mrb[40].mxu1 }
 0x87e   :  { %3224 = vst.msk [vmem:[%s7682_s10 + $0x8] sm:$0xff] %vm40_vm0, %v3219_v39  ;;  %v3205_v30 = vadd.f32 %v3265_v3, %v3204_v37  ;;  %v4125_v15 = vpop.f32.mrb[41].mxu1 }
 0x880   :  { %v3220_v9 = vadd.f32 %v4835_v38, %v3205_v30 }
 0x881   :  { %v3209_v17 = vpop.f32.mrb[42].mxu1 }
 0x882   :  { %3225 = vst.msk [vmem:[%s7682_s10 + $0x10] sm:$0xff] %vm40_vm0, %v3220_v9  ;;  %v3210_v28 = vadd.f32 %v3265_v3, %v3209_v17  ;;  %v4128_v35 = vpop.f32.mrb[43].mxu1 }
 0x884   :  { %v3221_v47 = vadd.f32 %v4836_v49, %v3210_v28 }
 0x885   :  { %v3214_v14 = vpop.f32.mrb[44].mxu1 }
 0x886   :  { %3226 = vst.msk [vmem:[%s7682_s10 + $0x18] sm:$0xff] %vm40_vm0, %v3221_v47  ;;  %v3215_v45 = vadd.f32 %v3265_v3, %v3214_v14  ;;  %v4131_v36 = vpop.f32.mrb[45].mxu1 }
 0x888   :  { %v3222_v63 = vadd.f32 %v4837_v21, %v3215_v45 }
 0x88a   :  { %3227 = vst.msk [vmem:[%s7682_s10 + $0x20] sm:$0x3] %vm53_vm1, %v3222_v63 }

</bundles_post_ra>
